<compile_context>
chip_gen: v7x
topology: tpu7x:2x2x1
jax: 0.10.0
libtpu: 0.0.40
codegen_flags: <defaults>
</compile_context>

<pallas_src>
import functools

import jax
import jax.numpy as jnp
from jax.experimental import pallas as pl
from jax.experimental.pallas import tpu as pltpu

_EPS = 1e-5              # nn.BatchNorm2d default eps
_TILE_M_TARGET = 1024    # rows per M tile (sweep 512-2048 at real sizes)


def _vmem_limit_bytes():
    """Raise the scoped-VMEM limit (defaults are 16/32 MiB). Best-effort per-chip
    query; the 48 MiB fallback leaves headroom even on v7x's 64 MiB VMEM."""
    try:
        cap = pltpu.get_tpu_info().vmem_capacity_bytes
        return int(min(cap - (16 << 20), 112 << 20))
    except Exception:  # best-effort query only
        return 48 << 20


_PARALLEL = pltpu.CompilerParams(dimension_semantics=("parallel",),
                                 vmem_limit_bytes=_vmem_limit_bytes())


def _pad128(n):
    return ((n + 127) // 128) * 128


def _pick_tile(m, target=_TILE_M_TARGET):
    assert m % 8 == 0, m
    t = min(m, target)
    t -= t % 8
    while m % t:
        t -= 8
    return t


def _pick_row_tile(n_rows, wout, target=_TILE_M_TARGET):
    """Pick tr dividing n_rows (= N*H_out) so tm = tr*wout is a multiple of 8 (or the
    full extent) and tm is as close to `target` as possible."""
    best = None
    for tr in range(1, n_rows + 1):
        if n_rows % tr:
            continue
        tm = tr * wout
        if tm % 8 and tr != n_rows:
            continue
        if tm <= target:
            best = tr
        else:
            if best is None:
                best = tr
            break
    return best if best is not None else n_rows


# ----------------------------- Pallas kernels ----------------------------- #

def _mm_stats_kernel(x_ref, w_ref, y_ref, st_ref):
    """1x1 conv tile: y = x @ w (bf16 MXU, f32 acc) + per-tile BN partial stats.
    Stats from the f32 accumulator; activation stored bf16."""
    y = jnp.dot(x_ref[...], w_ref[...], preferred_element_type=jnp.float32)
    y_ref[...] = y.astype(y_ref.dtype)
    st_ref[0] = jnp.concatenate(
        [jnp.sum(y, axis=0, keepdims=True),
         jnp.sum(y * y, axis=0, keepdims=True)], axis=0)


def _bn_mm_stats_kernel(y_in_ref, sc_ref, sh_ref, w_ref, y_ref, st_ref):
    """Previous stage's BN+ReLU fused into the load (f32 math), then 1x1 conv."""
    a = jnp.maximum(y_in_ref[...].astype(jnp.float32) * sc_ref[...] + sh_ref[...], 0.0)
    a = a.astype(jnp.bfloat16)
    y = jnp.dot(a, w_ref[...], preferred_element_type=jnp.float32)
    y_ref[...] = y.astype(y_ref.dtype)
    st_ref[0] = jnp.concatenate(
        [jnp.sum(y, axis=0, keepdims=True),
         jnp.sum(y * y, axis=0, keepdims=True)], axis=0)


def _bn_mm_x2_stats_kernel(y_in_ref, sc_ref, sh_ref, w3_ref, xs_ref, ws_ref,
                           y3_ref, ysc_ref, st3_ref, stsc_ref, *, c1):
    """conv3 tile with the projection-shortcut matmul fused on the same row tile.
    xs_ref is a parity-grouped view of x: (tr, 1, wout, s*c1) -> keep the first c1
    lanes (column parity 0) == x[:, ::s, ::s, :] rows for this tile (no XLA gather)."""
    a = jnp.maximum(y_in_ref[...].astype(jnp.float32) * sc_ref[...] + sh_ref[...], 0.0)
    a = a.astype(jnp.bfloat16)
    y3 = jnp.dot(a, w3_ref[...], preferred_element_type=jnp.float32)

    tr, _, wout, sc1 = xs_ref.shape
    xs = xs_ref[...].reshape(tr * wout, sc1)[:, :c1]
    ysc = jnp.dot(xs, ws_ref[...], preferred_element_type=jnp.float32)

    y3_ref[...] = y3.astype(y3_ref.dtype)
    ysc_ref[...] = ysc.astype(ysc_ref.dtype)
    st3_ref[0] = jnp.concatenate(
        [jnp.sum(y3, axis=0, keepdims=True),
         jnp.sum(y3 * y3, axis=0, keepdims=True)], axis=0)
    stsc_ref[0] = jnp.concatenate(
        [jnp.sum(ysc, axis=0, keepdims=True),
         jnp.sum(ysc * ysc, axis=0, keepdims=True)], axis=0)


def _conv3x3_stats_kernel(y1_ref, w2_ref, sc_ref, sh_ref, y2_ref, st_ref, pad_ref,
                          *, stride, c):
    """One image: BN1+ReLU on load, 3x3 stride-s conv as ONE fused K=9*c MXU matmul
    built from a zero-bordered VMEM halo scratch (parity-grouped layout so stride-2
    taps are plain static slices), + BN2 partial stats from the f32 accumulator."""
    s = stride
    h, wg, sc_dim = y1_ref.shape[1], y1_ref.shape[2], y1_ref.shape[3]
    hg = h // s                     # output rows ; wg = output cols
    hw = hg * wg

    a = y1_ref[0]                                            # (h, W/s, s*c) bf16
    a = jnp.maximum(a.astype(jnp.float32) * sc_ref[...] + sh_ref[...], 0.0)
    a = a.astype(jnp.bfloat16).reshape(hg, s, wg, sc_dim)    # row-parity split (free)

    # Zero only the 1-wide halo border; the interior is fully overwritten below.
    zrow = jnp.zeros((1, s, wg + 2, sc_dim), jnp.bfloat16)
    zcol = jnp.zeros((hg + 2, s, 1, sc_dim), jnp.bfloat16)
    pad_ref[0:1] = zrow
    pad_ref[hg + 1:hg + 2] = zrow
    pad_ref[:, :, 0:1] = zcol
    pad_ref[:, :, wg + 1:wg + 2] = zcol
    pad_ref[1:1 + hg, :, 1:1 + wg, :] = a

    # Build the (hw, 9*c) im2col slab in VMEM and do a single K=9*c matmul
    # (fills the 256-deep MXU instead of 9 half-filled K=c matmuls + 8 VPU adds).
    taps = []
    for ky in range(3):
        dy = ky - 1
        rp = dy % s
        r0 = (dy - rp) // s + 1
        for kx in range(3):
            dx = kx - 1
            cp = dx % s
            c0 = (dx - cp) // s + 1
            taps.append(pad_ref[r0:r0 + hg, rp, c0:c0 + wg, cp * c:(cp + 1) * c]
                        .reshape(hw, c))
    slab = jnp.concatenate(taps, axis=-1)                    # (hw, 9*c) bf16
    acc = jnp.dot(slab, w2_ref[...], preferred_element_type=jnp.float32)

    y2_ref[0] = acc.astype(y2_ref.dtype)
    st_ref[0] = jnp.concatenate(
        [jnp.sum(acc, axis=0, keepdims=True),
         jnp.sum(acc * acc, axis=0, keepdims=True)], axis=0)


def _bn_add_relu_kernel(y3_ref, s3_ref, b3_ref, res_ref, rs_ref, rb_ref, out_ref):
    """BN3 + (BN-ed) shortcut + residual add + ReLU epilogue (f32 math)."""
    y = y3_ref[...].astype(jnp.float32) * s3_ref[...] + b3_ref[...]
    r = res_ref[...].astype(jnp.float32) * rs_ref[...] + rb_ref[...]
    out_ref[...] = jnp.maximum(y + r, 0.0)


# --------------------------- pallas_call wrappers -------------------------- #

def _conv1x1_stats(x, w):
    m, cin = x.shape
    cout = w.shape[1]
    tm = _pick_tile(m)
    nt = m // tm
    return pl.pallas_call(
        _mm_stats_kernel,
        grid=(nt,),
        in_specs=[pl.BlockSpec((tm, cin), lambda i: (i, 0)),
                  pl.BlockSpec((cin, cout), lambda i: (0, 0))],
        out_specs=[pl.BlockSpec((tm, cout), lambda i: (i, 0)),
                   pl.BlockSpec((1, 2, cout), lambda i: (i, 0, 0))],
        out_shape=[jax.ShapeDtypeStruct((m, cout), jnp.bfloat16),
                   jax.ShapeDtypeStruct((nt, 2, cout), jnp.float32)],
        compiler_params=_PARALLEL,
    )(x, w)


def _conv3x3_stats(y1g, w2, scale1, shift1, *, stride):
    n, h, wg, sc = y1g.shape
    s = stride
    c = sc // s
    hg = h // s
    hw = hg * wg
    return pl.pallas_call(
        functools.partial(_conv3x3_stats_kernel, stride=s, c=c),
        grid=(n,),
        in_specs=[pl.BlockSpec((1, h, wg, sc), lambda b: (b, 0, 0, 0)),
                  pl.BlockSpec(w2.shape, lambda b: (0, 0)),
                  pl.BlockSpec((1, 1, sc), lambda b: (0, 0, 0)),
                  pl.BlockSpec((1, 1, sc), lambda b: (0, 0, 0))],
        out_specs=[pl.BlockSpec((1, hw, c), lambda b: (b, 0, 0)),
                   pl.BlockSpec((1, 2, c), lambda b: (b, 0, 0))],
        out_shape=[jax.ShapeDtypeStruct((n, hw, c), jnp.bfloat16),
                   jax.ShapeDtypeStruct((n, 2, c), jnp.float32)],
        scratch_shapes=[pltpu.VMEM((hg + 2, s, wg + 2, sc), jnp.bfloat16)],
        compiler_params=_PARALLEL,
    )(y1g, w2, scale1, shift1)


def _conv3_proj_stats(y2, scale2, shift2, w3, x_g, ws):
    m, c2 = y2.shape
    c3 = w3.shape[1]
    c1 = ws.shape[0]
    n_rows, _, wout, sc1 = x_g.shape
    tr = _pick_row_tile(n_rows, wout)
    tm = tr * wout
    nt = m // tm
    return pl.pallas_call(
        functools.partial(_bn_mm_x2_stats_kernel, c1=c1),
        grid=(nt,),
        in_specs=[pl.BlockSpec((tm, c2), lambda i: (i, 0)),
                  pl.BlockSpec((1, c2), lambda i: (0, 0)),
                  pl.BlockSpec((1, c2), lambda i: (0, 0)),
                  pl.BlockSpec((c2, c3), lambda i: (0, 0)),
                  pl.BlockSpec((tr, 1, wout, sc1), lambda i: (i, 0, 0, 0)),
                  pl.BlockSpec((c1, c3), lambda i: (0, 0))],
        out_specs=[pl.BlockSpec((tm, c3), lambda i: (i, 0)),
                   pl.BlockSpec((tm, c3), lambda i: (i, 0)),
                   pl.BlockSpec((1, 2, c3), lambda i: (i, 0, 0)),
                   pl.BlockSpec((1, 2, c3), lambda i: (i, 0, 0))],
        out_shape=[jax.ShapeDtypeStruct((m, c3), jnp.bfloat16),
                   jax.ShapeDtypeStruct((m, c3), jnp.bfloat16),
                   jax.ShapeDtypeStruct((nt, 2, c3), jnp.float32),
                   jax.ShapeDtypeStruct((nt, 2, c3), jnp.float32)],
        compiler_params=_PARALLEL,
    )(y2, scale2, shift2, w3, x_g, ws)


def _conv3_stats(y2, scale2, shift2, w3):
    m, c2 = y2.shape
    c3 = w3.shape[1]
    tm = _pick_tile(m)
    nt = m // tm
    return pl.pallas_call(
        _bn_mm_stats_kernel,
        grid=(nt,),
        in_specs=[pl.BlockSpec((tm, c2), lambda i: (i, 0)),
                  pl.BlockSpec((1, c2), lambda i: (0, 0)),
                  pl.BlockSpec((1, c2), lambda i: (0, 0)),
                  pl.BlockSpec((c2, c3), lambda i: (0, 0))],
        out_specs=[pl.BlockSpec((tm, c3), lambda i: (i, 0)),
                   pl.BlockSpec((1, 2, c3), lambda i: (i, 0, 0))],
        out_shape=[jax.ShapeDtypeStruct((m, c3), jnp.bfloat16),
                   jax.ShapeDtypeStruct((nt, 2, c3), jnp.float32)],
        compiler_params=_PARALLEL,
    )(y2, scale2, shift2, w3)


def _bn_add_relu(y3, scale3, shift3, res, res_scale, res_shift):
    m, c3 = y3.shape
    tm = _pick_tile(m)
    return pl.pallas_call(
        _bn_add_relu_kernel,
        grid=(m // tm,),
        in_specs=[pl.BlockSpec((tm, c3), lambda i: (i, 0)),
                  pl.BlockSpec((1, c3), lambda i: (0, 0)),
                  pl.BlockSpec((1, c3), lambda i: (0, 0)),
                  pl.BlockSpec((tm, c3), lambda i: (i, 0)),
                  pl.BlockSpec((1, c3), lambda i: (0, 0)),
                  pl.BlockSpec((1, c3), lambda i: (0, 0))],
        out_specs=pl.BlockSpec((tm, c3), lambda i: (i, 0)),
        out_shape=jax.ShapeDtypeStruct((m, c3), jnp.float32),
        compiler_params=_PARALLEL,
    )(y3, scale3, shift3, res, res_scale, res_shift)


# ------------------------------- JAX glue --------------------------------- #

def _bn_scale_shift(stats_partial, m, gamma, beta):
    """Reduce per-tile (num_tiles, 2, C) sum/sumsq into train-mode BN scale/shift."""
    tot = jnp.sum(stats_partial, axis=0)                 # (2, C)
    mean = tot[0:1] / m
    var = jnp.maximum(tot[1:2] / m - mean * mean, 0.0)   # clamp: f32 cancellation
    inv = jax.lax.rsqrt(var + _EPS)
    scale = gamma * inv
    shift = beta - mean * scale
    return scale, shift


def _pad_mat(w, r, c):
    return jnp.pad(w, ((0, r - w.shape[0]), (0, c - w.shape[1]))).astype(jnp.bfloat16)


def _pad_vec(v, c):
    return jnp.pad(v, ((0, 0), (0, c - v.shape[1]))).astype(jnp.float32)


def init_params(key, in_channels, mid_channels, stride):
    """Deterministic synthetic parameters (shapes follow the PyTorch module)."""
    out_channels = mid_channels * 4
    ks = jax.random.split(key, 12)

    def conv_w(k, shape, fan_in):
        return jax.random.normal(k, shape, jnp.float32) / jnp.sqrt(float(fan_in))

    params = {
        "w1": conv_w(ks[0], (in_channels, mid_channels), in_channels),
        "g1": 1.0 + 0.1 * jax.random.normal(ks[1], (1, mid_channels), jnp.float32),
        "b1": 0.1 * jax.random.normal(ks[2], (1, mid_channels), jnp.float32),
        "w2": conv_w(ks[3], (3, 3, mid_channels, mid_channels), 9 * mid_channels),
        "g2": 1.0 + 0.1 * jax.random.normal(ks[4], (1, mid_channels), jnp.float32),
        "b2": 0.1 * jax.random.normal(ks[5], (1, mid_channels), jnp.float32),
        "w3": conv_w(ks[6], (mid_channels, out_channels), mid_channels),
        "g3": 1.0 + 0.1 * jax.random.normal(ks[7], (1, out_channels), jnp.float32),
        "b3": 0.1 * jax.random.normal(ks[8], (1, out_channels), jnp.float32),
    }
    if stride != 1 or in_channels != out_channels:
        params["ws"] = conv_w(ks[9], (in_channels, out_channels), in_channels)
        params["gs"] = 1.0 + 0.1 * jax.random.normal(ks[10], (1, out_channels), jnp.float32)
        params["bs"] = 0.1 * jax.random.normal(ks[11], (1, out_channels), jnp.float32)
    return params


@functools.partial(jax.jit, static_argnames=("stride",))
def bottleneck_block(params, x_nchw, *, stride):
    """Forward pass equivalent to BottleneckBlock.forward (train-mode BN)."""
    n, cin, h, w_sp = x_nchw.shape
    mid = params["w1"].shape[1]
    out_c = 4 * mid
    s = stride
    hout, wout = h // s, w_sp // s
    m1, m2 = n * h * w_sp, n * hout * wout

    c1, c2, c3 = _pad128(cin), _pad128(mid), _pad128(out_c)

    # Parameter prep: pad channels to lane-dense multiples of 128 (padded gamma/beta
    # are zero so padded lanes stay exactly zero), weights -> bf16 for the MXU.
    w1 = _pad_mat(params["w1"], c1, c2)
    w2 = jnp.pad(params["w2"].reshape(9, mid, mid),
                 ((0, 0), (0, c2 - mid), (0, c2 - mid))).astype(jnp.bfloat16)
    w2 = w2.reshape(9 * c2, c2)                 # fused-K layout for the single matmul
    w3 = _pad_mat(params["w3"], c2, c3)
    g1, b1 = _pad_vec(params["g1"], c2), _pad_vec(params["b1"], c2)
    g2, b2 = _pad_vec(params["g2"], c2), _pad_vec(params["b2"], c2)
    g3, b3 = _pad_vec(params["g3"], c3), _pad_vec(params["b3"], c3)

    # Input: NCHW -> NHWC, pad channels, cast to bf16.
    x = jnp.transpose(x_nchw, (0, 2, 3, 1)).astype(jnp.float32)
    x = jnp.pad(x, ((0, 0), (0, 0), (0, 0), (0, c1 - cin))).astype(jnp.bfloat16)
    x_flat = x.reshape(m1, c1)

    # conv1 (1x1) + BN1 partial statistics (M tiled over a parallel grid).
    y1, st1 = _conv1x1_stats(x_flat, w1)
    scale1, shift1 = _bn_scale_shift(st1, m1, g1, b1)

    # conv2 (3x3, stride, pad=1): BN1+ReLU fused into the load; im2col slab built
    # inside the kernel from a VMEM halo scratch (no im2col through HBM). The
    # column-parity grouped reshape below is layout-preserving (free).
    y1g = y1.reshape(n, h, w_sp // s, s * c2)
    s1g = jnp.tile(scale1, (1, s)).reshape(1, 1, s * c2)
    h1g = jnp.tile(shift1, (1, s)).reshape(1, 1, s * c2)
    y2, st2 = _conv3x3_stats(y1g, w2, s1g, h1g, stride=s)
    scale2, shift2 = _bn_scale_shift(st2, m2, g2, b2)

    y2_flat = y2.reshape(m2, c2)

    # conv3 (1x1) + BN3 stats; projection-shortcut matmul (+ its stats) fused in.
    if "ws" in params:
        ws = _pad_mat(params["ws"], c1, c3)
        gs, bs = _pad_vec(params["gs"], c3), _pad_vec(params["bs"], c3)
        # Strided shortcut input loaded in-kernel via a parity-grouped BlockSpec on
        # this free reshape of x (replaces the wrapper-side x[:, ::s, ::s, :] gather).
        x_g = x.reshape(n * hout, s, wout, s * c1)
        y3, ysc, st3, stsc = _conv3_proj_stats(y2_flat, scale2, shift2, w3, x_g, ws)
        res_scale, res_shift = _bn_scale_shift(stsc, m2, gs, bs)
        res = ysc
    else:
        assert s == 1 and cin == out_c  # identity shortcut invariant
        y3, st3 = _conv3_stats(y2_flat, scale2, shift2, w3)
        res = x_flat
        res_scale = jnp.ones((1, c3), jnp.float32)
        res_shift = jnp.zeros((1, c3), jnp.float32)
    scale3, shift3 = _bn_scale_shift(st3, m2, g3, b3)

    # BN3 + shortcut + residual add + ReLU epilogue (f32 block output).
    out = _bn_add_relu(y3, scale3, shift3, res, res_scale, res_shift)
    out = out[:, :out_c].reshape(n, hout, wout, out_c)
    return jnp.transpose(out, (0, 3, 1, 2))  # NHWC -> NCHW


# ------------------------ pure-JAX reference (check) ----------------------- #

def _reference_block(params, x_nchw, *, stride):
    """f32 reference mirroring the kernel's bf16 rounding points (bf16 intermediates,
    BN stats from f32 values, normalization applied to the bf16-rounded values)."""
    s = stride

    def r16(v):  # bf16 round-trip
        return v.astype(jnp.bfloat16).astype(jnp.float32)

    def bn(y, g, b):
        mean = y.mean((0, 1, 2))
        var = jnp.maximum((y * y).mean((0, 1, 2)) - mean * mean, 0.0)
        return (r16(y) - mean) * jax.lax.rsqrt(var + _EPS) * g.reshape(-1) + b.reshape(-1)

    x = r16(jnp.transpose(x_nchw, (0, 2, 3, 1)).astype(jnp.float32))
    w1, w2, w3 = r16(params["w1"]), r16(params["w2"]), r16(params["w3"])

    y1 = jnp.einsum("nhwc,cd->nhwd", x, w1)
    a1 = r16(jnp.maximum(bn(y1, params["g1"], params["b1"]), 0.0))
    y2 = jax.lax.conv_general_dilated(a1, w2, (s, s), ((1, 1), (1, 1)),
                                      dimension_numbers=("NHWC", "HWIO", "NHWC"))
    a2 = r16(jnp.maximum(bn(y2, params["g2"], params["b2"]), 0.0))
    y3 = bn(jnp.einsum("nhwc,cd->nhwd", a2, w3), params["g3"], params["b3"])
    if "ws" in params:
        ws = r16(params["ws"])
        sc = bn(jnp.einsum("nhwc,cd->nhwd", x[:, ::s, ::s, :], ws),
                params["gs"], params["bs"])
    else:
        sc = x
    out = jnp.maximum(y3 + sc, 0.0)
    return jnp.transpose(out, (0, 3, 1, 2))


def _rel_err(a, b):
    num = jnp.sqrt(jnp.sum((a - b) ** 2))
    den = jnp.sqrt(jnp.sum(b ** 2)) + 1e-6
    return float(num / den)


# --------------------------------- main ------------------------------------ #

if __name__ == "__main__":
    key = jax.random.PRNGKey(0)
    kp, kx, kp2, kx2 = jax.random.split(key, 4)

    # Projection-shortcut config (stride 2), like a ResNet downsampling block.
    in_c, mid, stride = 16, 8, 2
    n, h, w = 2, 16, 16
    params = init_params(kp, in_c, mid, stride)
    x = jax.random.normal(kx, (n, in_c, h, w), jnp.float32)  # NCHW, like PyTorch
    y = jax.block_until_ready(bottleneck_block(params, x, stride=stride))
    assert y.shape == (n, 4 * mid, h // stride, w // stride), y.shape
    assert bool(jnp.all(y >= 0.0))
    err = _rel_err(y, _reference_block(params, x, stride=stride))
    assert err < 2e-2, err

    # Identity-shortcut config (stride 1, in_channels == 4*mid).
    in_c2, mid2, stride2 = 32, 8, 1
    params2 = init_params(kp2, in_c2, mid2, stride2)
    x2 = jax.random.normal(kx2, (n, in_c2, h, w), jnp.float32)
    y2 = jax.block_until_ready(bottleneck_block(params2, x2, stride=stride2))
    assert y2.shape == (n, 4 * mid2, h, w), y2.shape
    assert bool(jnp.all(y2 >= 0.0))
    err2 = _rel_err(y2, _reference_block(params2, x2, stride=stride2))
    assert err2 < 2e-2, err2

    print("KERNEL_OK")
</pallas_src>

<mosaic_0001>
module attributes {stable_mosaic.version = 11 : i64} {
  func.func @_mm_stats_kernel(%arg0: i32, %arg1: memref<512x128xbf16, #tpu.memory_space<vmem>>, %arg2: memref<128x128xbf16, #tpu.memory_space<vmem>>, %arg3: memref<512x128xbf16, #tpu.memory_space<vmem>>, %arg4: memref<1x2x128xf32, #tpu.memory_space<vmem>>) attributes {dimension_semantics = [#tpu.dimension_semantics<parallel>], iteration_bounds = array<i64: 1>, scalar_prefetch = 0 : i64, scratch_operands = 0 : i64, tpu.core_type = #tpu.core_type<tc>, window_params = [{transform_indices = @transform_0, window_bounds = array<i64: 512, 128>}, {pipeline_mode = #tpu.pipeline_mode<synchronous>, transform_indices = @transform_1, window_bounds = array<i64: 128, 128>}, {transform_indices = @transform_2, window_bounds = array<i64: 512, 128>}, {transform_indices = @transform_3, window_bounds = array<i64: 1, 2, 128>}]} {
    %c0 = arith.constant 0 : index
    %c0_0 = arith.constant 0 : index
    %0 = vector.load %arg1[%c0, %c0_0] : memref<512x128xbf16, #tpu.memory_space<vmem>>, vector<512x128xbf16>
    %c0_1 = arith.constant 0 : index
    %c0_2 = arith.constant 0 : index
    %1 = vector.load %arg2[%c0_1, %c0_2] : memref<128x128xbf16, #tpu.memory_space<vmem>>, vector<128x128xbf16>
    %cst = arith.constant dense<0.000000e+00> : vector<512x128xf32>
    %2 = tpu.matmul %0, %1, %cst {dimension_numbers = #tpu.dot_dimension_numbers<[1], [0], [0], [1], [0, 0, 1, 1], [], []>} : vector<512x128xbf16>, vector<128x128xbf16>, vector<512x128xf32> -> vector<512x128xf32>
    %3 = arith.truncf %2 : vector<512x128xf32> to vector<512x128xbf16>
    %c0_3 = arith.constant 0 : index
    %c0_4 = arith.constant 0 : index
    %4 = vector.load %arg3[%c0_3, %c0_4] : memref<512x128xbf16, #tpu.memory_space<vmem>>, vector<512x128xbf16>
    tpu.vector_store %arg3[%c0_3, %c0_4], %3 {strides = array<i32>} : memref<512x128xbf16, #tpu.memory_space<vmem>>, vector<512x128xbf16>,
    %cst_5 = arith.constant dense<0.000000e+00> : vector<128xf32>
    %5 = vector.multi_reduction <add>, %2, %cst_5 [0] : vector<512x128xf32> to vector<128xf32>
    %6 = vector.shape_cast %5 : vector<128xf32> to vector<1x128xf32>
    %7 = arith.mulf %2, %2 : vector<512x128xf32>
    %cst_6 = arith.constant dense<0.000000e+00> : vector<128xf32>
    %8 = vector.multi_reduction <add>, %7, %cst_6 [0] : vector<512x128xf32> to vector<128xf32>
    %9 = vector.shape_cast %8 : vector<128xf32> to vector<1x128xf32>
    %10 = tpu.concatenate %6, %9 in 0 : vector<1x128xf32>, vector<1x128xf32> -> vector<2x128xf32>
    %c0_7 = arith.constant 0 : index
    %c0_8 = arith.constant 0 : index
    %c0_9 = arith.constant 0 : index
    %11 = vector.load %arg4[%c0_7, %c0_8, %c0_9] : memref<1x2x128xf32, #tpu.memory_space<vmem>>, vector<1x2x128xf32>
    %12 = vector.shape_cast %11 : vector<1x2x128xf32> to vector<2x128xf32>
    %13 = vector.shape_cast %10 : vector<2x128xf32> to vector<1x2x128xf32>
    tpu.vector_store %arg4[%c0_7, %c0_8, %c0_9], %13 {strides = array<i32>} : memref<1x2x128xf32, #tpu.memory_space<vmem>>, vector<1x2x128xf32>,
    return
  }
  func.func @transform_0(%arg0: i32) -> (i32, i32) {
    %c0_i32 = arith.constant 0 : i32
    %c0_i32_0 = arith.constant 0 : i32
    return %arg0, %c0_i32 : i32, i32
  }
  func.func @transform_1(%arg0: i32) -> (i32, i32) {
    %c0_i32 = arith.constant 0 : i32
    %c0_i32_0 = arith.constant 0 : i32
    %c0_i32_1 = arith.constant 0 : i32
    return %c0_i32, %c0_i32_0 : i32, i32
  }
  func.func @transform_2(%arg0: i32) -> (i32, i32) {
    %c0_i32 = arith.constant 0 : i32
    %c0_i32_0 = arith.constant 0 : i32
    return %arg0, %c0_i32 : i32, i32
  }
  func.func @transform_3(%arg0: i32) -> (i32, i32, i32) {
    %c0_i32 = arith.constant 0 : i32
    %c0_i32_0 = arith.constant 0 : i32
    %c0_i32_1 = arith.constant 0 : i32
    return %arg0, %c0_i32, %c0_i32_0 : i32, i32, i32
  }
}

module attributes {stable_mosaic.version = 11 : i64} {
  func.func @_conv3x3_stats_kernel(%arg0: i32, %arg1: memref<1x16x8x256xbf16, #tpu.memory_space<vmem>>, %arg2: memref<1152x128xbf16, #tpu.memory_space<vmem>>, %arg3: memref<1x1x256xf32, #tpu.memory_space<vmem>>, %arg4: memref<1x1x256xf32, #tpu.memory_space<vmem>>, %arg5: memref<1x64x128xbf16, #tpu.memory_space<vmem>>, %arg6: memref<1x2x128xf32, #tpu.memory_space<vmem>>, %arg7: memref<10x2x10x256xbf16, #tpu.memory_space<vmem>>) attributes {dimension_semantics = [#tpu.dimension_semantics<parallel>], iteration_bounds = array<i64: 2>, scalar_prefetch = 0 : i64, scratch_operands = 1 : i64, tpu.core_type = #tpu.core_type<tc>, window_params = [{transform_indices = @transform_0, window_bounds = array<i64: 1, 16, 8, 256>}, {pipeline_mode = #tpu.pipeline_mode<synchronous>, transform_indices = @transform_1, window_bounds = array<i64: 1152, 128>}, {pipeline_mode = #tpu.pipeline_mode<synchronous>, transform_indices = @transform_2, window_bounds = array<i64: 1, 1, 256>}, {pipeline_mode = #tpu.pipeline_mode<synchronous>, transform_indices = @transform_3, window_bounds = array<i64: 1, 1, 256>}, {transform_indices = @transform_4, window_bounds = array<i64: 1, 64, 128>}, {transform_indices = @transform_5, window_bounds = array<i64: 1, 2, 128>}]} {
    %c0 = arith.constant 0 : index
    %c0_0 = arith.constant 0 : index
    %c0_1 = arith.constant 0 : index
    %c0_2 = arith.constant 0 : index
    %0 = vector.load %arg1[%c0, %c0_0, %c0_1, %c0_2] : memref<1x16x8x256xbf16, #tpu.memory_space<vmem>>, vector<1x16x8x256xbf16>
    %1 = vector.shape_cast %0 : vector<1x16x8x256xbf16> to vector<16x8x256xbf16>
    %2 = arith.extf %1 : vector<16x8x256xbf16> to vector<16x8x256xf32>
    %c0_3 = arith.constant 0 : index
    %c0_4 = arith.constant 0 : index
    %c0_5 = arith.constant 0 : index
    %3 = vector.load %arg3[%c0_3, %c0_4, %c0_5] : memref<1x1x256xf32, #tpu.memory_space<vmem>>, vector<1x1x256xf32>
    %4 = vector.broadcast %3 : vector<1x1x256xf32> to vector<16x8x256xf32>
    %5 = arith.mulf %2, %4 : vector<16x8x256xf32>
    %c0_6 = arith.constant 0 : index
    %c0_7 = arith.constant 0 : index
    %c0_8 = arith.constant 0 : index
    %6 = vector.load %arg4[%c0_6, %c0_7, %c0_8] : memref<1x1x256xf32, #tpu.memory_space<vmem>>, vector<1x1x256xf32>
    %7 = vector.broadcast %6 : vector<1x1x256xf32> to vector<16x8x256xf32>
    %8 = arith.addf %5, %7 : vector<16x8x256xf32>
    %cst = arith.constant 0.000000e+00 : f32
    %9 = vector.broadcast %cst : f32 to vector<16x8x256xf32>
    %10 = arith.maximumf %8, %9 : vector<16x8x256xf32>
    %11 = arith.truncf %10 : vector<16x8x256xf32> to vector<16x8x256xbf16>
    %12 = vector.shape_cast %11 : vector<16x8x256xbf16> to vector<8x2x8x256xbf16>
    %cst_9 = arith.constant 0.000000e+00 : bf16
    %13 = vector.broadcast %cst_9 : bf16 to vector<1x2x10x256xbf16>
    %cst_10 = arith.constant 0.000000e+00 : bf16
    %14 = vector.broadcast %cst_10 : bf16 to vector<10x2x1x256xbf16>
    %c0_11 = arith.constant 0 : index
    %c0_12 = arith.constant 0 : index
    %c0_13 = arith.constant 0 : index
    %c0_14 = arith.constant 0 : index
    %15 = vector.load %arg7[%c0_11, %c0_12, %c0_13, %c0_14] : memref<10x2x10x256xbf16, #tpu.memory_space<vmem>>, vector<1x2x10x256xbf16>
    tpu.vector_store %arg7[%c0_11, %c0_12, %c0_13, %c0_14], %13 {strides = array<i32>} : memref<10x2x10x256xbf16, #tpu.memory_space<vmem>>, vector<1x2x10x256xbf16>,
    %c9 = arith.constant 9 : index
    %c0_15 = arith.constant 0 : index
    %c0_16 = arith.constant 0 : index
    %c0_17 = arith.constant 0 : index
    %16 = vector.load %arg7[%c9, %c0_15, %c0_16, %c0_17] : memref<10x2x10x256xbf16, #tpu.memory_space<vmem>>, vector<1x2x10x256xbf16>
    tpu.vector_store %arg7[%c9, %c0_15, %c0_16, %c0_17], %13 {strides = array<i32>} : memref<10x2x10x256xbf16, #tpu.memory_space<vmem>>, vector<1x2x10x256xbf16>,
    %c0_18 = arith.constant 0 : index
    %c0_19 = arith.constant 0 : index
    %c0_20 = arith.constant 0 : index
    %c0_21 = arith.constant 0 : index
    %17 = vector.load %arg7[%c0_18, %c0_19, %c0_20, %c0_21] : memref<10x2x10x256xbf16, #tpu.memory_space<vmem>>, vector<10x2x1x256xbf16>
    tpu.vector_store %arg7[%c0_18, %c0_19, %c0_20, %c0_21], %14 {strides = array<i32>} : memref<10x2x10x256xbf16, #tpu.memory_space<vmem>>, vector<10x2x1x256xbf16>,
    %c0_22 = arith.constant 0 : index
    %c0_23 = arith.constant 0 : index
    %c9_24 = arith.constant 9 : index
    %c0_25 = arith.constant 0 : index
    %18 = vector.load %arg7[%c0_22, %c0_23, %c9_24, %c0_25] : memref<10x2x10x256xbf16, #tpu.memory_space<vmem>>, vector<10x2x1x256xbf16>
    tpu.vector_store %arg7[%c0_22, %c0_23, %c9_24, %c0_25], %14 {strides = array<i32>} : memref<10x2x10x256xbf16, #tpu.memory_space<vmem>>, vector<10x2x1x256xbf16>,
    %c1 = arith.constant 1 : index
    %c0_26 = arith.constant 0 : index
    %c1_27 = arith.constant 1 : index
    %c0_28 = arith.constant 0 : index
    %19 = vector.load %arg7[%c1, %c0_26, %c1_27, %c0_28] : memref<10x2x10x256xbf16, #tpu.memory_space<vmem>>, vector<8x2x8x256xbf16>
    tpu.vector_store %arg7[%c1, %c0_26, %c1_27, %c0_28], %12 {strides = array<i32>} : memref<10x2x10x256xbf16, #tpu.memory_space<vmem>>, vector<8x2x8x256xbf16>,
    %c0_29 = arith.constant 0 : index
    %c1_30 = arith.constant 1 : index
    %c0_31 = arith.constant 0 : index
    %c128 = arith.constant 128 : index
    %20 = vector.load %arg7[%c0_29, %c1_30, %c0_31, %c128] : memref<10x2x10x256xbf16, #tpu.memory_space<vmem>>, vector<8x1x8x128xbf16>
    %21 = vector.shape_cast %20 : vector<8x1x8x128xbf16> to vector<8x8x128xbf16>
    %22 = vector.shape_cast %21 : vector<8x8x128xbf16> to vector<64x128xbf16>
    %c0_32 = arith.constant 0 : index
    %c1_33 = arith.constant 1 : index
    %c1_34 = arith.constant 1 : index
    %c0_35 = arith.constant 0 : index
    %23 = vector.load %arg7[%c0_32, %c1_33, %c1_34, %c0_35] : memref<10x2x10x256xbf16, #tpu.memory_space<vmem>>, vector<8x1x8x128xbf16>
    %24 = vector.shape_cast %23 : vector<8x1x8x128xbf16> to vector<8x8x128xbf16>
    %25 = vector.shape_cast %24 : vector<8x8x128xbf16> to vector<64x128xbf16>
    %c0_36 = arith.constant 0 : index
    %c1_37 = arith.constant 1 : index
    %c1_38 = arith.constant 1 : index
    %c128_39 = arith.constant 128 : index
    %26 = vector.load %arg7[%c0_36, %c1_37, %c1_38, %c128_39] : memref<10x2x10x256xbf16, #tpu.memory_space<vmem>>, vector<8x1x8x128xbf16>
    %27 = vector.shape_cast %26 : vector<8x1x8x128xbf16> to vector<8x8x128xbf16>
    %28 = vector.shape_cast %27 : vector<8x8x128xbf16> to vector<64x128xbf16>
    %c1_40 = arith.constant 1 : index
    %c0_41 = arith.constant 0 : index
    %c0_42 = arith.constant 0 : index
    %c128_43 = arith.constant 128 : index
    %29 = vector.load %arg7[%c1_40, %c0_41, %c0_42, %c128_43] : memref<10x2x10x256xbf16, #tpu.memory_space<vmem>>, vector<8x1x8x128xbf16>
    %30 = vector.shape_cast %29 : vector<8x1x8x128xbf16> to vector<8x8x128xbf16>
    %31 = vector.shape_cast %30 : vector<8x8x128xbf16> to vector<64x128xbf16>
    %c1_44 = arith.constant 1 : index
    %c0_45 = arith.constant 0 : index
    %c1_46 = arith.constant 1 : index
    %c0_47 = arith.constant 0 : index
    %32 = vector.load %arg7[%c1_44, %c0_45, %c1_46, %c0_47] : memref<10x2x10x256xbf16, #tpu.memory_space<vmem>>, vector<8x1x8x128xbf16>
    %33 = vector.shape_cast %32 : vector<8x1x8x128xbf16> to vector<8x8x128xbf16>
    %34 = vector.shape_cast %33 : vector<8x8x128xbf16> to vector<64x128xbf16>
    %c1_48 = arith.constant 1 : index
    %c0_49 = arith.constant 0 : index
    %c1_50 = arith.constant 1 : index
    %c128_51 = arith.constant 128 : index
    %35 = vector.load %arg7[%c1_48, %c0_49, %c1_50, %c128_51] : memref<10x2x10x256xbf16, #tpu.memory_space<vmem>>, vector<8x1x8x128xbf16>
    %36 = vector.shape_cast %35 : vector<8x1x8x128xbf16> to vector<8x8x128xbf16>
    %37 = vector.shape_cast %36 : vector<8x8x128xbf16> to vector<64x128xbf16>
    %c1_52 = arith.constant 1 : index
    %c1_53 = arith.constant 1 : index
    %c0_54 = arith.constant 0 : index
    %c128_55 = arith.constant 128 : index
    %38 = vector.load %arg7[%c1_52, %c1_53, %c0_54, %c128_55] : memref<10x2x10x256xbf16, #tpu.memory_space<vmem>>, vector<8x1x8x128xbf16>
    %39 = vector.shape_cast %38 : vector<8x1x8x128xbf16> to vector<8x8x128xbf16>
    %40 = vector.shape_cast %39 : vector<8x8x128xbf16> to vector<64x128xbf16>
    %c1_56 = arith.constant 1 : index
    %c1_57 = arith.constant 1 : index
    %c1_58 = arith.constant 1 : index
    %c0_59 = arith.constant 0 : index
    %41 = vector.load %arg7[%c1_56, %c1_57, %c1_58, %c0_59] : memref<10x2x10x256xbf16, #tpu.memory_space<vmem>>, vector<8x1x8x128xbf16>
    %42 = vector.shape_cast %41 : vector<8x1x8x128xbf16> to vector<8x8x128xbf16>
    %43 = vector.shape_cast %42 : vector<8x8x128xbf16> to vector<64x128xbf16>
    %c1_60 = arith.constant 1 : index
    %c1_61 = arith.constant 1 : index
    %c1_62 = arith.constant 1 : index
    %c128_63 = arith.constant 128 : index
    %44 = vector.load %arg7[%c1_60, %c1_61, %c1_62, %c128_63] : memref<10x2x10x256xbf16, #tpu.memory_space<vmem>>, vector<8x1x8x128xbf16>
    %45 = vector.shape_cast %44 : vector<8x1x8x128xbf16> to vector<8x8x128xbf16>
    %46 = vector.shape_cast %45 : vector<8x8x128xbf16> to vector<64x128xbf16>
    %47 = tpu.concatenate %22, %25, %28, %31, %34, %37, %40, %43, %46 in 1 : vector<64x128xbf16>, vector<64x128xbf16>, vector<64x128xbf16>, vector<64x128xbf16>, vector<64x128xbf16>, vector<64x128xbf16>, vector<64x128xbf16>, vector<64x128xbf16>, vector<64x128xbf16> -> vector<64x1152xbf16>
    %c0_64 = arith.constant 0 : index
    %c0_65 = arith.constant 0 : index
    %48 = vector.load %arg2[%c0_64, %c0_65] : memref<1152x128xbf16, #tpu.memory_space<vmem>>, vector<1152x128xbf16>
    %cst_66 = arith.constant dense<0.000000e+00> : vector<64x128xf32>
    %49 = tpu.matmul %47, %48, %cst_66 {dimension_numbers = #tpu.dot_dimension_numbers<[1], [0], [0], [1], [0, 0, 1, 1], [], []>} : vector<64x1152xbf16>, vector<1152x128xbf16>, vector<64x128xf32> -> vector<64x128xf32>
    %50 = arith.truncf %49 : vector<64x128xf32> to vector<64x128xbf16>
    %c0_67 = arith.constant 0 : index
    %c0_68 = arith.constant 0 : index
    %c0_69 = arith.constant 0 : index
    %51 = vector.load %arg5[%c0_67, %c0_68, %c0_69] : memref<1x64x128xbf16, #tpu.memory_space<vmem>>, vector<1x64x128xbf16>
    %52 = vector.shape_cast %51 : vector<1x64x128xbf16> to vector<64x128xbf16>
    %53 = vector.shape_cast %50 : vector<64x128xbf16> to vector<1x64x128xbf16>
    tpu.vector_store %arg5[%c0_67, %c0_68, %c0_69], %53 {strides = array<i32>} : memref<1x64x128xbf16, #tpu.memory_space<vmem>>, vector<1x64x128xbf16>,
    %cst_70 = arith.constant dense<0.000000e+00> : vector<128xf32>
    %54 = vector.multi_reduction <add>, %49, %cst_70 [0] : vector<64x128xf32> to vector<128xf32>
    %55 = vector.shape_cast %54 : vector<128xf32> to vector<1x128xf32>
    %56 = arith.mulf %49, %49 : vector<64x128xf32>
    %cst_71 = arith.constant dense<0.000000e+00> : vector<128xf32>
    %57 = vector.multi_reduction <add>, %56, %cst_71 [0] : vector<64x128xf32> to vector<128xf32>
    %58 = vector.shape_cast %57 : vector<128xf32> to vector<1x128xf32>
    %59 = tpu.concatenate %55, %58 in 0 : vector<1x128xf32>, vector<1x128xf32> -> vector<2x128xf32>
    %c0_72 = arith.constant 0 : index
    %c0_73 = arith.constant 0 : index
    %c0_74 = arith.constant 0 : index
    %60 = vector.load %arg6[%c0_72, %c0_73, %c0_74] : memref<1x2x128xf32, #tpu.memory_space<vmem>>, vector<1x2x128xf32>
    %61 = vector.shape_cast %60 : vector<1x2x128xf32> to vector<2x128xf32>
    %62 = vector.shape_cast %59 : vector<2x128xf32> to vector<1x2x128xf32>
    tpu.vector_store %arg6[%c0_72, %c0_73, %c0_74], %62 {strides = array<i32>} : memref<1x2x128xf32, #tpu.memory_space<vmem>>, vector<1x2x128xf32>,
    return
  }
  func.func @transform_0(%arg0: i32) -> (i32, i32, i32, i32) {
    %c0_i32 = arith.constant 0 : i32
    %c0_i32_0 = arith.constant 0 : i32
    %c0_i32_1 = arith.constant 0 : i32
    %c0_i32_2 = arith.constant 0 : i32
    return %arg0, %c0_i32, %c0_i32_0, %c0_i32_1 : i32, i32, i32, i32
  }
  func.func @transform_1(%arg0: i32) -> (i32, i32) {
    %c0_i32 = arith.constant 0 : i32
    %c0_i32_0 = arith.constant 0 : i32
    %c0_i32_1 = arith.constant 0 : i32
    return %c0_i32, %c0_i32_0 : i32, i32
  }
  func.func @transform_2(%arg0: i32) -> (i32, i32, i32) {
    %c0_i32 = arith.constant 0 : i32
    %c0_i32_0 = arith.constant 0 : i32
    %c0_i32_1 = arith.constant 0 : i32
    %c0_i32_2 = arith.constant 0 : i32
    return %c0_i32, %c0_i32_0, %c0_i32_1 : i32, i32, i32
  }
  func.func @transform_3(%arg0: i32) -> (i32, i32, i32) {
    %c0_i32 = arith.constant 0 : i32
    %c0_i32_0 = arith.constant 0 : i32
    %c0_i32_1 = arith.constant 0 : i32
    %c0_i32_2 = arith.constant 0 : i32
    return %c0_i32, %c0_i32_0, %c0_i32_1 : i32, i32, i32
  }
  func.func @transform_4(%arg0: i32) -> (i32, i32, i32) {
    %c0_i32 = arith.constant 0 : i32
    %c0_i32_0 = arith.constant 0 : i32
    %c0_i32_1 = arith.constant 0 : i32
    return %arg0, %c0_i32, %c0_i32_0 : i32, i32, i32
  }
  func.func @transform_5(%arg0: i32) -> (i32, i32, i32) {
    %c0_i32 = arith.constant 0 : i32
    %c0_i32_0 = arith.constant 0 : i32
    %c0_i32_1 = arith.constant 0 : i32
    return %arg0, %c0_i32, %c0_i32_0 : i32, i32, i32
  }
}

module attributes {stable_mosaic.version = 11 : i64} {
  func.func @_bn_mm_x2_stats_kernel(%arg0: i32, %arg1: memref<128x128xbf16, #tpu.memory_space<vmem>>, %arg2: memref<1x128xf32, #tpu.memory_space<vmem>>, %arg3: memref<1x128xf32, #tpu.memory_space<vmem>>, %arg4: memref<128x128xbf16, #tpu.memory_space<vmem>>, %arg5: memref<16x1x8x256xbf16, #tpu.memory_space<vmem>>, %arg6: memref<128x128xbf16, #tpu.memory_space<vmem>>, %arg7: memref<128x128xbf16, #tpu.memory_space<vmem>>, %arg8: memref<128x128xbf16, #tpu.memory_space<vmem>>, %arg9: memref<1x2x128xf32, #tpu.memory_space<vmem>>, %arg10: memref<1x2x128xf32, #tpu.memory_space<vmem>>) attributes {dimension_semantics = [#tpu.dimension_semantics<parallel>], iteration_bounds = array<i64: 1>, scalar_prefetch = 0 : i64, scratch_operands = 0 : i64, tpu.core_type = #tpu.core_type<tc>, window_params = [{transform_indices = @transform_0, window_bounds = array<i64: 128, 128>}, {pipeline_mode = #tpu.pipeline_mode<synchronous>, transform_indices = @transform_1, window_bounds = array<i64: 1, 128>}, {pipeline_mode = #tpu.pipeline_mode<synchronous>, transform_indices = @transform_2, window_bounds = array<i64: 1, 128>}, {pipeline_mode = #tpu.pipeline_mode<synchronous>, transform_indices = @transform_3, window_bounds = array<i64: 128, 128>}, {transform_indices = @transform_4, window_bounds = array<i64: 16, 1, 8, 256>}, {pipeline_mode = #tpu.pipeline_mode<synchronous>, transform_indices = @transform_5, window_bounds = array<i64: 128, 128>}, {transform_indices = @transform_6, window_bounds = array<i64: 128, 128>}, {transform_indices = @transform_7, window_bounds = array<i64: 128, 128>}, {transform_indices = @transform_8, window_bounds = array<i64: 1, 2, 128>}, {transform_indices = @transform_9, window_bounds = array<i64: 1, 2, 128>}]} {
    %c0 = arith.constant 0 : index
    %c0_0 = arith.constant 0 : index
    %0 = vector.load %arg1[%c0, %c0_0] : memref<128x128xbf16, #tpu.memory_space<vmem>>, vector<128x128xbf16>
    %1 = arith.extf %0 : vector<128x128xbf16> to vector<128x128xf32>
    %c0_1 = arith.constant 0 : index
    %c0_2 = arith.constant 0 : index
    %2 = vector.load %arg2[%c0_1, %c0_2] : memref<1x128xf32, #tpu.memory_space<vmem>>, vector<1x128xf32>
    %3 = vector.broadcast %2 : vector<1x128xf32> to vector<128x128xf32>
    %4 = arith.mulf %1, %3 : vector<128x128xf32>
    %c0_3 = arith.constant 0 : index
    %c0_4 = arith.constant 0 : index
    %5 = vector.load %arg3[%c0_3, %c0_4] : memref<1x128xf32, #tpu.memory_space<vmem>>, vector<1x128xf32>
    %6 = vector.broadcast %5 : vector<1x128xf32> to vector<128x128xf32>
    %7 = arith.addf %4, %6 : vector<128x128xf32>
    %cst = arith.constant 0.000000e+00 : f32
    %8 = vector.broadcast %cst : f32 to vector<128x128xf32>
    %9 = arith.maximumf %7, %8 : vector<128x128xf32>
    %10 = arith.truncf %9 : vector<128x128xf32> to vector<128x128xbf16>
    %c0_5 = arith.constant 0 : index
    %c0_6 = arith.constant 0 : index
    %11 = vector.load %arg4[%c0_5, %c0_6] : memref<128x128xbf16, #tpu.memory_space<vmem>>, vector<128x128xbf16>
    %cst_7 = arith.constant dense<0.000000e+00> : vector<128x128xf32>
    %12 = tpu.matmul %10, %11, %cst_7 {dimension_numbers = #tpu.dot_dimension_numbers<[1], [0], [0], [1], [0, 0, 1, 1], [], []>} : vector<128x128xbf16>, vector<128x128xbf16>, vector<128x128xf32> -> vector<128x128xf32>
    %c0_8 = arith.constant 0 : index
    %c0_9 = arith.constant 0 : index
    %c0_10 = arith.constant 0 : index
    %c0_11 = arith.constant 0 : index
    %13 = vector.load %arg5[%c0_8, %c0_9, %c0_10, %c0_11] : memref<16x1x8x256xbf16, #tpu.memory_space<vmem>>, vector<16x1x8x256xbf16>
    %14 = vector.shape_cast %13 : vector<16x1x8x256xbf16> to vector<128x256xbf16>
    %15 = vector.extract_strided_slice %14 {offsets = [0, 0], sizes = [128, 128], strides = [1, 1]} : vector<128x256xbf16> to vector<128x128xbf16>
    %c0_12 = arith.constant 0 : index
    %c0_13 = arith.constant 0 : index
    %16 = vector.load %arg6[%c0_12, %c0_13] : memref<128x128xbf16, #tpu.memory_space<vmem>>, vector<128x128xbf16>
    %cst_14 = arith.constant dense<0.000000e+00> : vector<128x128xf32>
    %17 = tpu.matmul %15, %16, %cst_14 {dimension_numbers = #tpu.dot_dimension_numbers<[1], [0], [0], [1], [0, 0, 1, 1], [], []>} : vector<128x128xbf16>, vector<128x128xbf16>, vector<128x128xf32> -> vector<128x128xf32>
    %18 = arith.truncf %12 : vector<128x128xf32> to vector<128x128xbf16>
    %c0_15 = arith.constant 0 : index
    %c0_16 = arith.constant 0 : index
    %19 = vector.load %arg7[%c0_15, %c0_16] : memref<128x128xbf16, #tpu.memory_space<vmem>>, vector<128x128xbf16>
    tpu.vector_store %arg7[%c0_15, %c0_16], %18 {strides = array<i32>} : memref<128x128xbf16, #tpu.memory_space<vmem>>, vector<128x128xbf16>,
    %20 = arith.truncf %17 : vector<128x128xf32> to vector<128x128xbf16>
    %c0_17 = arith.constant 0 : index
    %c0_18 = arith.constant 0 : index
    %21 = vector.load %arg8[%c0_17, %c0_18] : memref<128x128xbf16, #tpu.memory_space<vmem>>, vector<128x128xbf16>
    tpu.vector_store %arg8[%c0_17, %c0_18], %20 {strides = array<i32>} : memref<128x128xbf16, #tpu.memory_space<vmem>>, vector<128x128xbf16>,
    %cst_19 = arith.constant dense<0.000000e+00> : vector<128xf32>
    %22 = vector.multi_reduction <add>, %12, %cst_19 [0] : vector<128x128xf32> to vector<128xf32>
    %23 = vector.shape_cast %22 : vector<128xf32> to vector<1x128xf32>
    %24 = arith.mulf %12, %12 : vector<128x128xf32>
    %cst_20 = arith.constant dense<0.000000e+00> : vector<128xf32>
    %25 = vector.multi_reduction <add>, %24, %cst_20 [0] : vector<128x128xf32> to vector<128xf32>
    %26 = vector.shape_cast %25 : vector<128xf32> to vector<1x128xf32>
    %27 = tpu.concatenate %23, %26 in 0 : vector<1x128xf32>, vector<1x128xf32> -> vector<2x128xf32>
    %c0_21 = arith.constant 0 : index
    %c0_22 = arith.constant 0 : index
    %c0_23 = arith.constant 0 : index
    %28 = vector.load %arg9[%c0_21, %c0_22, %c0_23] : memref<1x2x128xf32, #tpu.memory_space<vmem>>, vector<1x2x128xf32>
    %29 = vector.shape_cast %28 : vector<1x2x128xf32> to vector<2x128xf32>
    %30 = vector.shape_cast %27 : vector<2x128xf32> to vector<1x2x128xf32>
    tpu.vector_store %arg9[%c0_21, %c0_22, %c0_23], %30 {strides = array<i32>} : memref<1x2x128xf32, #tpu.memory_space<vmem>>, vector<1x2x128xf32>,
    %cst_24 = arith.constant dense<0.000000e+00> : vector<128xf32>
    %31 = vector.multi_reduction <add>, %17, %cst_24 [0] : vector<128x128xf32> to vector<128xf32>
    %32 = vector.shape_cast %31 : vector<128xf32> to vector<1x128xf32>
    %33 = arith.mulf %17, %17 : vector<128x128xf32>
    %cst_25 = arith.constant dense<0.000000e+00> : vector<128xf32>
    %34 = vector.multi_reduction <add>, %33, %cst_25 [0] : vector<128x128xf32> to vector<128xf32>
    %35 = vector.shape_cast %34 : vector<128xf32> to vector<1x128xf32>
    %36 = tpu.concatenate %32, %35 in 0 : vector<1x128xf32>, vector<1x128xf32> -> vector<2x128xf32>
    %c0_26 = arith.constant 0 : index
    %c0_27 = arith.constant 0 : index
    %c0_28 = arith.constant 0 : index
    %37 = vector.load %arg10[%c0_26, %c0_27, %c0_28] : memref<1x2x128xf32, #tpu.memory_space<vmem>>, vector<1x2x128xf32>
    %38 = vector.shape_cast %37 : vector<1x2x128xf32> to vector<2x128xf32>
    %39 = vector.shape_cast %36 : vector<2x128xf32> to vector<1x2x128xf32>
    tpu.vector_store %arg10[%c0_26, %c0_27, %c0_28], %39 {strides = array<i32>} : memref<1x2x128xf32, #tpu.memory_space<vmem>>, vector<1x2x128xf32>,
    return
  }
  func.func @transform_0(%arg0: i32) -> (i32, i32) {
    %c0_i32 = arith.constant 0 : i32
    %c0_i32_0 = arith.constant 0 : i32
    return %arg0, %c0_i32 : i32, i32
  }
  func.func @transform_1(%arg0: i32) -> (i32, i32) {
    %c0_i32 = arith.constant 0 : i32
    %c0_i32_0 = arith.constant 0 : i32
    %c0_i32_1 = arith.constant 0 : i32
    return %c0_i32, %c0_i32_0 : i32, i32
  }
  func.func @transform_2(%arg0: i32) -> (i32, i32) {
    %c0_i32 = arith.constant 0 : i32
    %c0_i32_0 = arith.constant 0 : i32
    %c0_i32_1 = arith.constant 0 : i32
    return %c0_i32, %c0_i32_0 : i32, i32
  }
  func.func @transform_3(%arg0: i32) -> (i32, i32) {
    %c0_i32 = arith.constant 0 : i32
    %c0_i32_0 = arith.constant 0 : i32
    %c0_i32_1 = arith.constant 0 : i32
    return %c0_i32, %c0_i32_0 : i32, i32
  }
  func.func @transform_4(%arg0: i32) -> (i32, i32, i32, i32) {
    %c0_i32 = arith.constant 0 : i32
    %c0_i32_0 = arith.constant 0 : i32
    %c0_i32_1 = arith.constant 0 : i32
    %c0_i32_2 = arith.constant 0 : i32
    return %arg0, %c0_i32, %c0_i32_0, %c0_i32_1 : i32, i32, i32, i32
  }
  func.func @transform_5(%arg0: i32) -> (i32, i32) {
    %c0_i32 = arith.constant 0 : i32
    %c0_i32_0 = arith.constant 0 : i32
    %c0_i32_1 = arith.constant 0 : i32
    return %c0_i32, %c0_i32_0 : i32, i32
  }
  func.func @transform_6(%arg0: i32) -> (i32, i32) {
    %c0_i32 = arith.constant 0 : i32
    %c0_i32_0 = arith.constant 0 : i32
    return %arg0, %c0_i32 : i32, i32
  }
  func.func @transform_7(%arg0: i32) -> (i32, i32) {
    %c0_i32 = arith.constant 0 : i32
    %c0_i32_0 = arith.constant 0 : i32
    return %arg0, %c0_i32 : i32, i32
  }
  func.func @transform_8(%arg0: i32) -> (i32, i32, i32) {
    %c0_i32 = arith.constant 0 : i32
    %c0_i32_0 = arith.constant 0 : i32
    %c0_i32_1 = arith.constant 0 : i32
    return %arg0, %c0_i32, %c0_i32_0 : i32, i32, i32
  }
  func.func @transform_9(%arg0: i32) -> (i32, i32, i32) {
    %c0_i32 = arith.constant 0 : i32
    %c0_i32_0 = arith.constant 0 : i32
    %c0_i32_1 = arith.constant 0 : i32
    return %arg0, %c0_i32, %c0_i32_0 : i32, i32, i32
  }
}

module attributes {stable_mosaic.version = 11 : i64} {
  func.func @_bn_add_relu_kernel(%arg0: i32, %arg1: memref<128x128xbf16, #tpu.memory_space<vmem>>, %arg2: memref<1x128xf32, #tpu.memory_space<vmem>>, %arg3: memref<1x128xf32, #tpu.memory_space<vmem>>, %arg4: memref<128x128xbf16, #tpu.memory_space<vmem>>, %arg5: memref<1x128xf32, #tpu.memory_space<vmem>>, %arg6: memref<1x128xf32, #tpu.memory_space<vmem>>, %arg7: memref<128x128xf32, #tpu.memory_space<vmem>>) attributes {dimension_semantics = [#tpu.dimension_semantics<parallel>], iteration_bounds = array<i64: 1>, scalar_prefetch = 0 : i64, scratch_operands = 0 : i64, tpu.core_type = #tpu.core_type<tc>, window_params = [{transform_indices = @transform_0, window_bounds = array<i64: 128, 128>}, {pipeline_mode = #tpu.pipeline_mode<synchronous>, transform_indices = @transform_1, window_bounds = array<i64: 1, 128>}, {pipeline_mode = #tpu.pipeline_mode<synchronous>, transform_indices = @transform_2, window_bounds = array<i64: 1, 128>}, {transform_indices = @transform_3, window_bounds = array<i64: 128, 128>}, {pipeline_mode = #tpu.pipeline_mode<synchronous>, transform_indices = @transform_4, window_bounds = array<i64: 1, 128>}, {pipeline_mode = #tpu.pipeline_mode<synchronous>, transform_indices = @transform_5, window_bounds = array<i64: 1, 128>}, {transform_indices = @transform_6, window_bounds = array<i64: 128, 128>}]} {
    %c0 = arith.constant 0 : index
    %c0_0 = arith.constant 0 : index
    %0 = vector.load %arg1[%c0, %c0_0] : memref<128x128xbf16, #tpu.memory_space<vmem>>, vector<128x128xbf16>
    %1 = arith.extf %0 : vector<128x128xbf16> to vector<128x128xf32>
    %c0_1 = arith.constant 0 : index
    %c0_2 = arith.constant 0 : index
    %2 = vector.load %arg2[%c0_1, %c0_2] : memref<1x128xf32, #tpu.memory_space<vmem>>, vector<1x128xf32>
    %3 = vector.broadcast %2 : vector<1x128xf32> to vector<128x128xf32>
    %4 = arith.mulf %1, %3 : vector<128x128xf32>
    %c0_3 = arith.constant 0 : index
    %c0_4 = arith.constant 0 : index
    %5 = vector.load %arg3[%c0_3, %c0_4] : memref<1x128xf32, #tpu.memory_space<vmem>>, vector<1x128xf32>
    %6 = vector.broadcast %5 : vector<1x128xf32> to vector<128x128xf32>
    %7 = arith.addf %4, %6 : vector<128x128xf32>
    %c0_5 = arith.constant 0 : index
    %c0_6 = arith.constant 0 : index
    %8 = vector.load %arg4[%c0_5, %c0_6] : memref<128x128xbf16, #tpu.memory_space<vmem>>, vector<128x128xbf16>
    %9 = arith.extf %8 : vector<128x128xbf16> to vector<128x128xf32>
    %c0_7 = arith.constant 0 : index
    %c0_8 = arith.constant 0 : index
    %10 = vector.load %arg5[%c0_7, %c0_8] : memref<1x128xf32, #tpu.memory_space<vmem>>, vector<1x128xf32>
    %11 = vector.broadcast %10 : vector<1x128xf32> to vector<128x128xf32>
    %12 = arith.mulf %9, %11 : vector<128x128xf32>
    %c0_9 = arith.constant 0 : index
    %c0_10 = arith.constant 0 : index
    %13 = vector.load %arg6[%c0_9, %c0_10] : memref<1x128xf32, #tpu.memory_space<vmem>>, vector<1x128xf32>
    %14 = vector.broadcast %13 : vector<1x128xf32> to vector<128x128xf32>
    %15 = arith.addf %12, %14 : vector<128x128xf32>
    %16 = arith.addf %7, %15 : vector<128x128xf32>
    %cst = arith.constant 0.000000e+00 : f32
    %17 = vector.broadcast %cst : f32 to vector<128x128xf32>
    %18 = arith.maximumf %16, %17 : vector<128x128xf32>
    %c0_11 = arith.constant 0 : index
    %c0_12 = arith.constant 0 : index
    %19 = vector.load %arg7[%c0_11, %c0_12] : memref<128x128xf32, #tpu.memory_space<vmem>>, vector<128x128xf32>
    tpu.vector_store %arg7[%c0_11, %c0_12], %18 {strides = array<i32>} : memref<128x128xf32, #tpu.memory_space<vmem>>, vector<128x128xf32>,
    return
  }
  func.func @transform_0(%arg0: i32) -> (i32, i32) {
    %c0_i32 = arith.constant 0 : i32
    %c0_i32_0 = arith.constant 0 : i32
    return %arg0, %c0_i32 : i32, i32
  }
  func.func @transform_1(%arg0: i32) -> (i32, i32) {
    %c0_i32 = arith.constant 0 : i32
    %c0_i32_0 = arith.constant 0 : i32
    %c0_i32_1 = arith.constant 0 : i32
    return %c0_i32, %c0_i32_0 : i32, i32
  }
  func.func @transform_2(%arg0: i32) -> (i32, i32) {
    %c0_i32 = arith.constant 0 : i32
    %c0_i32_0 = arith.constant 0 : i32
    %c0_i32_1 = arith.constant 0 : i32
    return %c0_i32, %c0_i32_0 : i32, i32
  }
  func.func @transform_3(%arg0: i32) -> (i32, i32) {
    %c0_i32 = arith.constant 0 : i32
    %c0_i32_0 = arith.constant 0 : i32
    return %arg0, %c0_i32 : i32, i32
  }
  func.func @transform_4(%arg0: i32) -> (i32, i32) {
    %c0_i32 = arith.constant 0 : i32
    %c0_i32_0 = arith.constant 0 : i32
    %c0_i32_1 = arith.constant 0 : i32
    return %c0_i32, %c0_i32_0 : i32, i32
  }
  func.func @transform_5(%arg0: i32) -> (i32, i32) {
    %c0_i32 = arith.constant 0 : i32
    %c0_i32_0 = arith.constant 0 : i32
    %c0_i32_1 = arith.constant 0 : i32
    return %c0_i32, %c0_i32_0 : i32, i32
  }
  func.func @transform_6(%arg0: i32) -> (i32, i32) {
    %c0_i32 = arith.constant 0 : i32
    %c0_i32_0 = arith.constant 0 : i32
    return %arg0, %c0_i32 : i32, i32
  }
}

</mosaic_0001>

<bundles_post_ra>
// kernel: bottleneck_block.4
= control target key start
LH: loop header
LB: loop body
LE: loop exit
PB: predicated region body
PF: predicated region fallthrough
CT: control target
= control target key end

     0   :  { %vm1145_vm0 = vcmask 1040384   ;;  %s2122_s1 = inlined_call_operand.vmem [shape: bf16[128,128], index: 1, kind: input, shape index: {}]   ;;  %s2123_s0 = inlined_call_operand.vmem [shape: bf16[512,128], index: 0, kind: input, shape index: {}]   ;;  %s2124_s2 = inlined_call_operand.vmem [shape: bf16[512,128], index: 2, kind: output, shape index: {0}]   ;;  %s2125_s3 = inlined_call_operand.vmem [shape: f32[1,2,128], index: 3, kind: output, shape index: {1}]  }
   0x1   :  { %v1651_v0 = vld [vmem:[%s2122_s1] sm:$0xff]   ;;  %v1652_v1 = vld [vmem:[%s2122_s1 + $0x8] sm:$0xff]   ;;  %v1653_v2 = vld [vmem:[%s2122_s1 + $0x10] sm:$0xff]  }
   0x2   :  { %1555 = vmatprep.subr.bf16.mxu0 %v1651_v0  ;;  %1635 = vmatprep.subr.bf16.mxu1 %v1651_v0  ;;  %v1654_v3 = vld [vmem:[%s2122_s1 + $0x18] sm:$0xff]   ;;  %v1659_v4 = vld [vmem:[%s2123_s0] sm:$0xff]   ;;  %v1656_v6 = vld [vmem:[%s2122_s1 + $0x28] sm:$0xff]  }
   0x3   :  { %1556 = vmatpush3.bf16.msra.mxu0 %v1651_v0  ;;  %1643 = vmatpush3.bf16.msra.mxu1 %v1651_v0  ;;  %v1655_v5 = vld [vmem:[%s2122_s1 + $0x20] sm:$0xff]   ;;  %v1657_v7 = vld [vmem:[%s2122_s1 + $0x30] sm:$0xff]   ;;  %v1658_v8 = vld [vmem:[%s2122_s1 + $0x38] sm:$0xff]  }
   0x4   :  { %1557 = vmatprep.subr.bf16.mxu0 %v1652_v1  ;;  %1636 = vmatprep.subr.bf16.mxu1 %v1652_v1  ;;  %v1675_v9 = vld [vmem:[%s2123_s0 + $0x80] sm:$0xff]   ;;  %v1660_v10 = vld [vmem:[%s2123_s0 + $0x8] sm:$0xff]   ;;  %v1661_v11 = vld [vmem:[%s2123_s0 + $0x10] sm:$0xff]  }
   0x5   :  { %1571 = vmatprep.mubr.bf16.mxu0 %v1659_v4  ;;  %1603 = vmatprep.mubr.bf16.mxu1 %v1675_v9  ;;  %v1676_v12 = vld [vmem:[%s2123_s0 + $0x88] sm:$0xff]   ;;  %v1677_v13 = vld [vmem:[%s2123_s0 + $0x90] sm:$0xff]   ;;  %v1662_v14 = vld [vmem:[%s2123_s0 + $0x18] sm:$0xff]  }
   0x6   :  { %v1663_v15 = vld [vmem:[%s2123_s0 + $0x20] sm:$0xff]   ;;  %v1678_v16 = vld [vmem:[%s2123_s0 + $0x98] sm:$0xff]   ;;  %v1664_v18 = vld [vmem:[%s2123_s0 + $0x28] sm:$0xff]  }
   0x7   :  { %1558 = vmatpush3.bf16.msra.mxu0 %v1652_v1  ;;  %1644 = vmatpush3.bf16.msra.mxu1 %v1652_v1  ;;  %v1679_v17 = vld [vmem:[%s2123_s0 + $0xa0] sm:$0xff]   ;;  %v1680_v19 = vld [vmem:[%s2123_s0 + $0xa8] sm:$0xff]   ;;  %v1665_v20 = vld [vmem:[%s2123_s0 + $0x30] sm:$0xff]  }
   0x8   :  { %1559 = vmatprep.subr.bf16.mxu0 %v1653_v2  ;;  %1637 = vmatprep.subr.bf16.mxu1 %v1653_v2  ;;  %v1681_v21 = vld [vmem:[%s2123_s0 + $0xb0] sm:$0xff]   ;;  %v1666_v22 = vld [vmem:[%s2123_s0 + $0x38] sm:$0xff]   ;;  %v1667_v24 = vld [vmem:[%s2123_s0 + $0x40] sm:$0xff]  }
   0x9   :  { %v1682_v23 = vld [vmem:[%s2123_s0 + $0xb8] sm:$0xff]   ;;  %v1683_v25 = vld [vmem:[%s2123_s0 + $0xc0] sm:$0xff]   ;;  %v1668_v26 = vld [vmem:[%s2123_s0 + $0x48] sm:$0xff]  }
   0xa   :  { %v1684_v27 = vld [vmem:[%s2123_s0 + $0xc8] sm:$0xff]   ;;  %v1669_v28 = vld [vmem:[%s2123_s0 + $0x50] sm:$0xff]   ;;  %v1670_v30 = vld [vmem:[%s2123_s0 + $0x58] sm:$0xff]  }
   0xb   :  { %1560 = vmatpush3.bf16.msra.mxu0 %v1653_v2  ;;  %1645 = vmatpush3.bf16.msra.mxu1 %v1653_v2  ;;  %v1685_v29 = vld [vmem:[%s2123_s0 + $0xd0] sm:$0xff]   ;;  %v1686_v31 = vld [vmem:[%s2123_s0 + $0xd8] sm:$0xff]   ;;  %v1671_v32 = vld [vmem:[%s2123_s0 + $0x60] sm:$0xff]  }
   0xc   :  { %1561 = vmatprep.subr.bf16.mxu0 %v1654_v3  ;;  %1638 = vmatprep.subr.bf16.mxu1 %v1654_v3  ;;  %v1687_v33 = vld [vmem:[%s2123_s0 + $0xe0] sm:$0xff]   ;;  %v1672_v34 = vld [vmem:[%s2123_s0 + $0x68] sm:$0xff]   ;;  %v1673_v36 = vld [vmem:[%s2123_s0 + $0x70] sm:$0xff]  }
   0xd   :  { %v1688_v35 = vld [vmem:[%s2123_s0 + $0xe8] sm:$0xff]   ;;  %v1689_v37 = vld [vmem:[%s2123_s0 + $0xf0] sm:$0xff]   ;;  %v1674_v38 = vld [vmem:[%s2123_s0 + $0x78] sm:$0xff]  }
   0xe   :  { %v1690_v39 = vld [vmem:[%s2123_s0 + $0xf8] sm:$0xff]  }
   0xf   :  { %1562 = vmatpush3.bf16.msra.mxu0 %v1654_v3  ;;  %1646 = vmatpush3.bf16.msra.mxu1 %v1654_v3 }
  0x10   :  { %1563 = vmatprep.subr.bf16.mxu0 %v1655_v5  ;;  %1639 = vmatprep.subr.bf16.mxu1 %v1655_v5 }
  0x13   :  { %1564 = vmatpush3.bf16.msra.mxu0 %v1655_v5  ;;  %1647 = vmatpush3.bf16.msra.mxu1 %v1655_v5 }
  0x14   :  { %1565 = vmatprep.subr.bf16.mxu0 %v1656_v6  ;;  %1640 = vmatprep.subr.bf16.mxu1 %v1656_v6 }
  0x17   :  { %1566 = vmatpush3.bf16.msra.mxu0 %v1656_v6  ;;  %1648 = vmatpush3.bf16.msra.mxu1 %v1656_v6 }
  0x18   :  { %1567 = vmatprep.subr.bf16.mxu0 %v1657_v7  ;;  %1641 = vmatprep.subr.bf16.mxu1 %v1657_v7 }
  0x1b   :  { %1568 = vmatpush3.bf16.msra.mxu0 %v1657_v7  ;;  %1649 = vmatpush3.bf16.msra.mxu1 %v1657_v7 }
  0x1c   :  { %1569 = vmatprep.subr.bf16.mxu0 %v1658_v8  ;;  %1642 = vmatprep.subr.bf16.mxu1 %v1658_v8 }
  0x1f   :  { %1570 = vmatpush3.bf16.msra.mxu0 %v1658_v8  ;;  %1650 = vmatpush3.bf16.msra.mxu1 %v1658_v8 }
  0x22   :  { %1572 = vmatmul.mubr.bf16.vlgmr.msra.gmra.mrb[0].mxu0 %v1660_v10  ;;  %1604 = vmatmul.mubr.bf16.vlgmr.msra.gmra.mrb[0].mxu1 %v1676_v12 }
  0x23   :  { %1575 = vmatprep.mubr.bf16.mxu0 %v1661_v11  ;;  %1607 = vmatprep.mubr.bf16.mxu1 %v1677_v13 }
  0x2a   :  { %1576 = vmatmul.mubr.bf16.gmra.mrb[4].mxu0 %v1662_v14  ;;  %1608 = vmatmul.mubr.bf16.gmra.mrb[4].mxu1 %v1678_v16 }
  0x2b   :  { %1579 = vmatprep.mubr.bf16.mxu0 %v1663_v15  ;;  %1611 = vmatprep.mubr.bf16.mxu1 %v1679_v17 }
  0x32   :  { %1580 = vmatmul.mubr.bf16.gmra.mrb[8].mxu0 %v1664_v18  ;;  %1612 = vmatmul.mubr.bf16.gmra.mrb[8].mxu1 %v1680_v19 }
  0x33   :  { %1583 = vmatprep.mubr.bf16.mxu0 %v1665_v20  ;;  %1615 = vmatprep.mubr.bf16.mxu1 %v1681_v21 }
  0x3a   :  { %1584 = vmatmul.mubr.bf16.gmra.mrb[12].mxu0 %v1666_v22  ;;  %1616 = vmatmul.mubr.bf16.gmra.mrb[12].mxu1 %v1682_v23 }
  0x3b   :  { %1587 = vmatprep.mubr.bf16.mxu0 %v1667_v24  ;;  %1619 = vmatprep.mubr.bf16.mxu1 %v1683_v25 }
  0x42   :  { %1588 = vmatmul.mubr.bf16.gmra.mrb[16].mxu0 %v1668_v26  ;;  %1620 = vmatmul.mubr.bf16.gmra.mrb[16].mxu1 %v1684_v27 }
  0x43   :  { %1591 = vmatprep.mubr.bf16.mxu0 %v1669_v28  ;;  %1623 = vmatprep.mubr.bf16.mxu1 %v1685_v29 }
  0x4a   :  { %1592 = vmatmul.mubr.bf16.gmra.mrb[20].mxu0 %v1670_v30  ;;  %1624 = vmatmul.mubr.bf16.gmra.mrb[20].mxu1 %v1686_v31 }
  0x4b   :  { %1595 = vmatprep.mubr.bf16.mxu0 %v1671_v32  ;;  %1627 = vmatprep.mubr.bf16.mxu1 %v1687_v33 }
  0x52   :  { %1596 = vmatmul.mubr.bf16.gmra.mrb[24].mxu0 %v1672_v34  ;;  %1628 = vmatmul.mubr.bf16.gmra.mrb[24].mxu1 %v1688_v35 }
  0x53   :  { %1599 = vmatprep.mubr.bf16.mxu0 %v1673_v36  ;;  %1631 = vmatprep.mubr.bf16.mxu1 %v1689_v37 }
  0x5a   :  { %1600 = vmatmul.mubr.bf16.gmra.mrb[28].mxu0 %v1674_v38  ;;  %1632 = vmatmul.mubr.bf16.gmra.mrb[28].mxu1 %v1690_v39 }
  0xf5   :  { %v1573_v40 = vpop.f32.mrb[0].mxu0  ;;  %v1831_v41 = vpop.f32.mrb[0].mxu1 }
  0xf6   :  { %v368_v42 = vpop.f32.mrb[1].mxu0  ;;  %v1833_v43 = vpop.f32.mrb[1].mxu1  ;;  %v1014_v55 = vmul.f32 %v1573_v40, %v1573_v40 }
  0xf7   :  { %v1574_v44 = vpop.f32.mrb[2].mxu0  ;;  %v1835_v45 = vpop.f32.mrb[2].mxu1  ;;  %v1012_v46 = vmul.f32 %v368_v42, %v368_v42 }
  0xf8   :  { %v1332_v47 = vpack.c.bf16 %v1574_v44, %v1573_v40  ;;  %v371_v48 = vpop.f32.mrb[3].mxu0  ;;  %v1412_v49 = vpack.c.bf16 %v1835_v45, %v1831_v41  ;;  %v1839_v50 = vpop.f32.mrb[3].mxu1  ;;  %v1015_v58 = vmul.f32 %v1574_v44, %v1574_v44 }
  0xf9   :  { %v1327_v51 = vpack.c.bf16 %v371_v48, %v368_v42  ;;  %v943_v52 = vadd.f32 %v371_v48, %v368_v42  ;;  %v1013_v53 = vmul.f32 %v371_v48, %v371_v48  ;;  %v1407_v54 = vpack.c.bf16 %v1839_v50, %v1833_v43 }
  0xfa   :  { %1484 = vst [vmem:[%s2124_s2 + $0x8] sm:$0xff] %v1332_v47   ;;  %1500 = vst [vmem:[%s2124_s2 + $0x88] sm:$0xff] %v1412_v49  }
  0xfb   :  { %1328 = vst [vmem:[%s2124_s2] sm:$0xff] %v1327_v51   ;;  %v944_v56 = vadd.f32 %v1573_v40, %v943_v52  ;;  %v1076_v57 = vadd.f32 %v1013_v53, %v1012_v46  ;;  %1499 = vst [vmem:[%s2124_s2 + $0x80] sm:$0xff] %v1407_v54  }
  0xfd   :  { %v1077_v59 = vadd.f32 %v1076_v57, %v1014_v55  ;;  %v1577_v60 = vpop.f32.mrb[4].mxu0  ;;  %v945_v61 = vadd.f32 %v1574_v44, %v944_v56  ;;  %v1855_v62 = vpop.f32.mrb[4].mxu1 }
  0xfe   :  { %v384_v63 = vpop.f32.mrb[5].mxu0  ;;  %v1857_v0 = vpop.f32.mrb[5].mxu1  ;;  %v1018_v15 = vmul.f32 %v1577_v60, %v1577_v60 }
  0xff   :  { %v946_v1 = vadd.f32 %v945_v61, %v384_v63  ;;  %v1016_v2 = vmul.f32 %v384_v63, %v384_v63  ;;  %v1078_v3 = vadd.f32 %v1077_v59, %v1015_v58  ;;  %v1578_v4 = vpop.f32.mrb[6].mxu0  ;;  %v1859_v5 = vpop.f32.mrb[6].mxu1 }
 0x100   :  { %v1342_v6 = vpack.c.bf16 %v1578_v4, %v1577_v60  ;;  %v387_v7 = vpop.f32.mrb[7].mxu0  ;;  %v1422_v8 = vpack.c.bf16 %v1859_v5, %v1855_v62  ;;  %v1863_v9 = vpop.f32.mrb[7].mxu1  ;;  %v1019_v18 = vmul.f32 %v1578_v4, %v1578_v4 }
 0x101   :  { %v1079_v10 = vadd.f32 %v1078_v3, %v1016_v2  ;;  %v1337_v11 = vpack.c.bf16 %v387_v7, %v384_v63  ;;  %v947_v12 = vadd.f32 %v946_v1, %v387_v7  ;;  %v1017_v13 = vmul.f32 %v387_v7, %v387_v7 }
 0x102   :  { %1486 = vst [vmem:[%s2124_s2 + $0x18] sm:$0xff] %v1342_v6   ;;  %1502 = vst [vmem:[%s2124_s2 + $0x98] sm:$0xff] %v1422_v8   ;;  %v1417_v14 = vpack.c.bf16 %v1863_v9, %v1857_v0 }
 0x103   :  { %1485 = vst [vmem:[%s2124_s2 + $0x10] sm:$0xff] %v1337_v11   ;;  %v948_v16 = vadd.f32 %v1577_v60, %v947_v12  ;;  %v1080_v17 = vadd.f32 %v1079_v10, %v1017_v13 }
 0x104   :  { %1501 = vst [vmem:[%s2124_s2 + $0x90] sm:$0xff] %v1417_v14  }
 0x105   :  { %v1081_v19 = vadd.f32 %v1080_v17, %v1018_v15  ;;  %v1581_v20 = vpop.f32.mrb[8].mxu0  ;;  %v949_v21 = vadd.f32 %v1578_v4, %v948_v16  ;;  %v1879_v22 = vpop.f32.mrb[8].mxu1 }
 0x106   :  { %v400_v23 = vpop.f32.mrb[9].mxu0  ;;  %v1881_v24 = vpop.f32.mrb[9].mxu1  ;;  %v1022_v39 = vmul.f32 %v1581_v20, %v1581_v20 }
 0x107   :  { %v950_v25 = vadd.f32 %v949_v21, %v400_v23  ;;  %v1020_v26 = vmul.f32 %v400_v23, %v400_v23  ;;  %v1082_v27 = vadd.f32 %v1081_v19, %v1019_v18  ;;  %v1582_v28 = vpop.f32.mrb[10].mxu0  ;;  %v1883_v29 = vpop.f32.mrb[10].mxu1 }
 0x108   :  { %v1352_v30 = vpack.c.bf16 %v1582_v28, %v1581_v20  ;;  %v403_v31 = vpop.f32.mrb[11].mxu0  ;;  %v1432_v32 = vpack.c.bf16 %v1883_v29, %v1879_v22  ;;  %v1887_v33 = vpop.f32.mrb[11].mxu1  ;;  %v1023_v44 = vmul.f32 %v1582_v28, %v1582_v28 }
 0x109   :  { %v1083_v34 = vadd.f32 %v1082_v27, %v1020_v26  ;;  %v1347_v35 = vpack.c.bf16 %v403_v31, %v400_v23  ;;  %v951_v36 = vadd.f32 %v950_v25, %v403_v31  ;;  %v1021_v37 = vmul.f32 %v403_v31, %v403_v31 }
 0x10a   :  { %1488 = vst [vmem:[%s2124_s2 + $0x28] sm:$0xff] %v1352_v30   ;;  %1504 = vst [vmem:[%s2124_s2 + $0xa8] sm:$0xff] %v1432_v32   ;;  %v1427_v38 = vpack.c.bf16 %v1887_v33, %v1881_v24 }
 0x10b   :  { %1487 = vst [vmem:[%s2124_s2 + $0x20] sm:$0xff] %v1347_v35   ;;  %v952_v40 = vadd.f32 %v1581_v20, %v951_v36  ;;  %v1084_v42 = vadd.f32 %v1083_v34, %v1021_v37 }
 0x10c   :  { %1503 = vst [vmem:[%s2124_s2 + $0xa0] sm:$0xff] %v1427_v38  }
 0x10d   :  { %v1085_v46 = vadd.f32 %v1084_v42, %v1022_v39  ;;  %v1585_v47 = vpop.f32.mrb[12].mxu0  ;;  %v953_v48 = vadd.f32 %v1582_v28, %v952_v40  ;;  %v1903_v49 = vpop.f32.mrb[12].mxu1 }
 0x10e   :  { %v416_v51 = vpop.f32.mrb[13].mxu0  ;;  %v1905_v52 = vpop.f32.mrb[13].mxu1  ;;  %v1026_v6 = vmul.f32 %v1585_v47, %v1585_v47 }
 0x10f   :  { %v954_v53 = vadd.f32 %v953_v48, %v416_v51  ;;  %v1024_v54 = vmul.f32 %v416_v51, %v416_v51  ;;  %v1086_v55 = vadd.f32 %v1085_v46, %v1023_v44  ;;  %v1586_v56 = vpop.f32.mrb[14].mxu0  ;;  %v1907_v57 = vpop.f32.mrb[14].mxu1 }
 0x110   :  { %v1362_v58 = vpack.c.bf16 %v1586_v56, %v1585_v47  ;;  %v419_v59 = vpop.f32.mrb[15].mxu0  ;;  %v1442_v60 = vpack.c.bf16 %v1907_v57, %v1903_v49  ;;  %v1911_v61 = vpop.f32.mrb[15].mxu1  ;;  %v1027_v10 = vmul.f32 %v1586_v56, %v1586_v56 }
 0x111   :  { %v1087_v63 = vadd.f32 %v1086_v55, %v1024_v54  ;;  %v1357_v1 = vpack.c.bf16 %v419_v59, %v416_v51  ;;  %v955_v2 = vadd.f32 %v954_v53, %v419_v59  ;;  %v1025_v3 = vmul.f32 %v419_v59, %v419_v59 }
 0x112   :  { %1490 = vst [vmem:[%s2124_s2 + $0x38] sm:$0xff] %v1362_v58   ;;  %1506 = vst [vmem:[%s2124_s2 + $0xb8] sm:$0xff] %v1442_v60   ;;  %v1437_v4 = vpack.c.bf16 %v1911_v61, %v1905_v52 }
 0x113   :  { %1489 = vst [vmem:[%s2124_s2 + $0x30] sm:$0xff] %v1357_v1   ;;  %v956_v7 = vadd.f32 %v1585_v47, %v955_v2  ;;  %v1088_v8 = vadd.f32 %v1087_v63, %v1025_v3 }
 0x114   :  { %1505 = vst [vmem:[%s2124_s2 + $0xb0] sm:$0xff] %v1437_v4  }
 0x115   :  { %v1089_v11 = vadd.f32 %v1088_v8, %v1026_v6  ;;  %v1589_v12 = vpop.f32.mrb[16].mxu0  ;;  %v957_v13 = vadd.f32 %v1586_v56, %v956_v7  ;;  %v1927_v14 = vpop.f32.mrb[16].mxu1 }
 0x116   :  { %v432_v15 = vpop.f32.mrb[17].mxu0  ;;  %v1929_v16 = vpop.f32.mrb[17].mxu1  ;;  %v1030_v35 = vmul.f32 %v1589_v12, %v1589_v12 }
 0x117   :  { %v958_v17 = vadd.f32 %v957_v13, %v432_v15  ;;  %v1028_v18 = vmul.f32 %v432_v15, %v432_v15  ;;  %v1090_v19 = vadd.f32 %v1089_v11, %v1027_v10  ;;  %v1590_v20 = vpop.f32.mrb[18].mxu0  ;;  %v1931_v21 = vpop.f32.mrb[18].mxu1 }
 0x118   :  { %v1372_v23 = vpack.c.bf16 %v1590_v20, %v1589_v12  ;;  %v435_v25 = vpop.f32.mrb[19].mxu0  ;;  %v1452_v26 = vpack.c.bf16 %v1931_v21, %v1927_v14  ;;  %v1935_v27 = vpop.f32.mrb[19].mxu1  ;;  %v1031_v38 = vmul.f32 %v1590_v20, %v1590_v20 }
 0x119   :  { %v1091_v28 = vadd.f32 %v1090_v19, %v1028_v18  ;;  %v1367_v30 = vpack.c.bf16 %v435_v25, %v432_v15  ;;  %v959_v31 = vadd.f32 %v958_v17, %v435_v25  ;;  %v1029_v32 = vmul.f32 %v435_v25, %v435_v25 }
 0x11a   :  { %1492 = vst [vmem:[%s2124_s2 + $0x48] sm:$0xff] %v1372_v23   ;;  %1508 = vst [vmem:[%s2124_s2 + $0xc8] sm:$0xff] %v1452_v26   ;;  %v1447_v34 = vpack.c.bf16 %v1935_v27, %v1929_v16 }
 0x11b   :  { %1491 = vst [vmem:[%s2124_s2 + $0x40] sm:$0xff] %v1367_v30   ;;  %v960_v36 = vadd.f32 %v1589_v12, %v959_v31  ;;  %v1092_v37 = vadd.f32 %v1091_v28, %v1029_v32 }
 0x11c   :  { %1507 = vst [vmem:[%s2124_s2 + $0xc0] sm:$0xff] %v1447_v34  }
 0x11d   :  { %v1093_v39 = vadd.f32 %v1092_v37, %v1030_v35  ;;  %v1593_v40 = vpop.f32.mrb[20].mxu0  ;;  %v961_v42 = vadd.f32 %v1590_v20, %v960_v36  ;;  %v1951_v44 = vpop.f32.mrb[20].mxu1 }
 0x11e   :  { %v448_v46 = vpop.f32.mrb[21].mxu0  ;;  %v1953_v47 = vpop.f32.mrb[21].mxu1  ;;  %v1034_v6 = vmul.f32 %v1593_v40, %v1593_v40 }
 0x11f   :  { %v962_v48 = vadd.f32 %v961_v42, %v448_v46  ;;  %v1032_v51 = vmul.f32 %v448_v46, %v448_v46  ;;  %v1094_v53 = vadd.f32 %v1093_v39, %v1031_v38  ;;  %v1594_v54 = vpop.f32.mrb[22].mxu0  ;;  %v1955_v55 = vpop.f32.mrb[22].mxu1 }
 0x120   :  { %v1382_v56 = vpack.c.bf16 %v1594_v54, %v1593_v40  ;;  %v451_v58 = vpop.f32.mrb[23].mxu0  ;;  %v1462_v59 = vpack.c.bf16 %v1955_v55, %v1951_v44  ;;  %v1959_v60 = vpop.f32.mrb[23].mxu1  ;;  %v1035_v10 = vmul.f32 %v1594_v54, %v1594_v54 }
 0x121   :  { %v1095_v63 = vadd.f32 %v1094_v53, %v1032_v51  ;;  %v1377_v1 = vpack.c.bf16 %v451_v58, %v448_v46  ;;  %v963_v2 = vadd.f32 %v962_v48, %v451_v58  ;;  %v1033_v3 = vmul.f32 %v451_v58, %v451_v58 }
 0x122   :  { %1494 = vst [vmem:[%s2124_s2 + $0x58] sm:$0xff] %v1382_v56   ;;  %1510 = vst [vmem:[%s2124_s2 + $0xd8] sm:$0xff] %v1462_v59   ;;  %v1457_v4 = vpack.c.bf16 %v1959_v60, %v1953_v47 }
 0x123   :  { %1493 = vst [vmem:[%s2124_s2 + $0x50] sm:$0xff] %v1377_v1   ;;  %v964_v7 = vadd.f32 %v1593_v40, %v963_v2  ;;  %v1096_v8 = vadd.f32 %v1095_v63, %v1033_v3 }
 0x124   :  { %1509 = vst [vmem:[%s2124_s2 + $0xd0] sm:$0xff] %v1457_v4  }
 0x125   :  { %v1097_v11 = vadd.f32 %v1096_v8, %v1034_v6  ;;  %v1597_v12 = vpop.f32.mrb[24].mxu0  ;;  %v965_v13 = vadd.f32 %v1594_v54, %v964_v7  ;;  %v1975_v15 = vpop.f32.mrb[24].mxu1 }
 0x126   :  { %v464_v17 = vpop.f32.mrb[25].mxu0  ;;  %v1977_v18 = vpop.f32.mrb[25].mxu1  ;;  %v1038_v39 = vmul.f32 %v1597_v12, %v1597_v12 }
 0x127   :  { %v966_v19 = vadd.f32 %v965_v13, %v464_v17  ;;  %v1036_v20 = vmul.f32 %v464_v17, %v464_v17  ;;  %v1098_v23 = vadd.f32 %v1097_v11, %v1035_v10  ;;  %v1598_v25 = vpop.f32.mrb[26].mxu0  ;;  %v1979_v26 = vpop.f32.mrb[26].mxu1 }
 0x128   :  { %v1392_v28 = vpack.c.bf16 %v1598_v25, %v1597_v12  ;;  %v467_v30 = vpop.f32.mrb[27].mxu0  ;;  %v1472_v31 = vpack.c.bf16 %v1979_v26, %v1975_v15  ;;  %v1983_v32 = vpop.f32.mrb[27].mxu1  ;;  %v1039_v46 = vmul.f32 %v1598_v25, %v1598_v25 }
 0x129   :  { %v1099_v34 = vadd.f32 %v1098_v23, %v1036_v20  ;;  %v1387_v35 = vpack.c.bf16 %v467_v30, %v464_v17  ;;  %v967_v36 = vadd.f32 %v966_v19, %v467_v30  ;;  %v1037_v37 = vmul.f32 %v467_v30, %v467_v30 }
 0x12a   :  { %1496 = vst [vmem:[%s2124_s2 + $0x68] sm:$0xff] %v1392_v28   ;;  %1512 = vst [vmem:[%s2124_s2 + $0xe8] sm:$0xff] %v1472_v31   ;;  %v1467_v38 = vpack.c.bf16 %v1983_v32, %v1977_v18  ;;  %v1044_v31 = vmul.f32 %v1833_v43, %v1833_v43 }
 0x12b   :  { %1495 = vst [vmem:[%s2124_s2 + $0x60] sm:$0xff] %v1387_v35   ;;  %v968_v40 = vadd.f32 %v1597_v12, %v967_v36  ;;  %v1100_v42 = vadd.f32 %v1099_v34, %v1037_v37 }
 0x12c   :  { %1511 = vst [vmem:[%s2124_s2 + $0xe0] sm:$0xff] %v1467_v38   ;;  %v1045_v38 = vmul.f32 %v1839_v50, %v1839_v50 }
 0x12d   :  { %v1101_v48 = vadd.f32 %v1100_v42, %v1038_v39  ;;  %v1601_v51 = vpop.f32.mrb[28].mxu0  ;;  %v969_v53 = vadd.f32 %v1598_v25, %v968_v40  ;;  %v1999_v54 = vpop.f32.mrb[28].mxu1  ;;  %v1046_v39 = vmul.f32 %v1831_v41, %v1831_v41 }
 0x12e   :  { %v480_v56 = vpop.f32.mrb[29].mxu0  ;;  %v2001_v58 = vpop.f32.mrb[29].mxu1  ;;  %v1042_v19 = vmul.f32 %v1601_v51, %v1601_v51 }
 0x12f   :  { %v970_v59 = vadd.f32 %v969_v53, %v480_v56  ;;  %v1040_v63 = vmul.f32 %v480_v56, %v480_v56  ;;  %v1102_v1 = vadd.f32 %v1101_v48, %v1039_v46  ;;  %v1602_v2 = vpop.f32.mrb[30].mxu0  ;;  %v2003_v3 = vpop.f32.mrb[30].mxu1  ;;  %v1047_v46 = vmul.f32 %v1835_v45, %v1835_v45 }
 0x130   :  { %v1402_v4 = vpack.c.bf16 %v1602_v2, %v1601_v51  ;;  %v483_v6 = vpop.f32.mrb[31].mxu0  ;;  %v1482_v7 = vpack.c.bf16 %v2003_v3, %v1999_v54  ;;  %v2007_v8 = vpop.f32.mrb[31].mxu1  ;;  %v1043_v25 = vmul.f32 %v1602_v2, %v1602_v2 }
 0x131   :  { %v1103_v10 = vadd.f32 %v1102_v1, %v1040_v63  ;;  %v1397_v11 = vpack.c.bf16 %v483_v6, %v480_v56  ;;  %v971_v12 = vadd.f32 %v970_v59, %v483_v6  ;;  %v1041_v13 = vmul.f32 %v483_v6, %v483_v6 }
 0x132   :  { %1498 = vst [vmem:[%s2124_s2 + $0x78] sm:$0xff] %v1402_v4   ;;  %1514 = vst [vmem:[%s2124_s2 + $0xf8] sm:$0xff] %v1482_v7   ;;  %v1477_v17 = vpack.c.bf16 %v2007_v8, %v2001_v58  ;;  %v1049_v63 = vmul.f32 %v1863_v9, %v1863_v9 }
 0x133   :  { %1497 = vst [vmem:[%s2124_s2 + $0x70] sm:$0xff] %v1397_v11   ;;  %v972_v20 = vadd.f32 %v1601_v51, %v971_v12  ;;  %v1104_v23 = vadd.f32 %v1103_v10, %v1041_v13  ;;  %v1053_v12 = vmul.f32 %v1887_v33, %v1887_v33 }
 0x134   :  { %1513 = vst [vmem:[%s2124_s2 + $0xf0] sm:$0xff] %v1477_v17  }
 0x135   :  { %v1105_v28 = vadd.f32 %v1104_v23, %v1042_v19  ;;  %v973_v30 = vadd.f32 %v1602_v2, %v972_v20 }
 0x137   :  { %v974_v34 = vadd.f32 %v973_v30, %v1833_v43  ;;  %v1106_v35 = vadd.f32 %v1105_v28, %v1043_v25  ;;  %v1048_v43 = vmul.f32 %v1857_v0, %v1857_v0  ;;  %v1057_v30 = vmul.f32 %v1911_v61, %v1911_v61 }
 0x139   :  { %v1107_v36 = vadd.f32 %v1106_v35, %v1044_v31  ;;  %v975_v37 = vadd.f32 %v974_v34, %v1839_v50 }
 0x13b   :  { %v976_v40 = vadd.f32 %v1831_v41, %v975_v37  ;;  %v1108_v42 = vadd.f32 %v1107_v36, %v1045_v38  ;;  %v1050_v41 = vmul.f32 %v1855_v62, %v1855_v62 }
 0x13d   :  { %v1109_v48 = vadd.f32 %v1108_v42, %v1046_v39  ;;  %v977_v51 = vadd.f32 %v1835_v45, %v976_v40  ;;  %v1051_v45 = vmul.f32 %v1859_v5, %v1859_v5  ;;  %v1061_v40 = vmul.f32 %v1935_v27, %v1935_v27 }
 0x13f   :  { %v978_v53 = vadd.f32 %v977_v51, %v1857_v0  ;;  %v1110_v56 = vadd.f32 %v1109_v48, %v1047_v46  ;;  %v1052_v0 = vmul.f32 %v1881_v24, %v1881_v24 }
 0x141   :  { %v1111_v59 = vadd.f32 %v1110_v56, %v1048_v43  ;;  %v979_v50 = vadd.f32 %v978_v53, %v1863_v9 }
 0x143   :  { %v980_v1 = vadd.f32 %v1855_v62, %v979_v50  ;;  %v1112_v2 = vadd.f32 %v1111_v59, %v1049_v63  ;;  %v1054_v62 = vmul.f32 %v1879_v22, %v1879_v22  ;;  %v1065_v59 = vmul.f32 %v1959_v60, %v1959_v60 }
 0x145   :  { %v1113_v4 = vadd.f32 %v1112_v2, %v1050_v41  ;;  %v981_v6 = vadd.f32 %v1859_v5, %v980_v1  ;;  %v1055_v5 = vmul.f32 %v1883_v29, %v1883_v29 }
 0x147   :  { %v982_v7 = vadd.f32 %v981_v6, %v1881_v24  ;;  %v1114_v10 = vadd.f32 %v1113_v4, %v1051_v45  ;;  %v1056_v24 = vmul.f32 %v1905_v52, %v1905_v52  ;;  %v1069_v6 = vmul.f32 %v1983_v32, %v1983_v32 }
 0x149   :  { %v1115_v11 = vadd.f32 %v1114_v10, %v1052_v0  ;;  %v983_v9 = vadd.f32 %v982_v7, %v1887_v33 }
 0x14b   :  { %v984_v13 = vadd.f32 %v1879_v22, %v983_v9  ;;  %v1116_v17 = vadd.f32 %v1115_v11, %v1053_v12  ;;  %v1058_v22 = vmul.f32 %v1903_v49, %v1903_v49 }
 0x14d   :  { %v1117_v19 = vadd.f32 %v1116_v17, %v1054_v62  ;;  %v985_v20 = vadd.f32 %v1883_v29, %v984_v13  ;;  %v1059_v29 = vmul.f32 %v1907_v57, %v1907_v57  ;;  %v1073_v13 = vmul.f32 %v2007_v8, %v2007_v8 }
 0x14f   :  { %v986_v23 = vadd.f32 %v985_v20, %v1905_v52  ;;  %v1118_v25 = vadd.f32 %v1117_v19, %v1055_v5  ;;  %v1060_v52 = vmul.f32 %v1929_v16, %v1929_v16 }
 0x151   :  { %v1119_v28 = vadd.f32 %v1118_v25, %v1056_v24  ;;  %v987_v33 = vadd.f32 %v986_v23, %v1911_v61 }
 0x153   :  { %v988_v31 = vadd.f32 %v1903_v49, %v987_v33  ;;  %v1120_v34 = vadd.f32 %v1119_v28, %v1057_v30  ;;  %v1062_v49 = vmul.f32 %v1927_v14, %v1927_v14 }
 0x155   :  { %v1121_v35 = vadd.f32 %v1120_v34, %v1058_v22  ;;  %v989_v36 = vadd.f32 %v1907_v57, %v988_v31  ;;  %v1063_v57 = vmul.f32 %v1931_v21, %v1931_v21 }
 0x157   :  { %v990_v37 = vadd.f32 %v989_v36, %v1929_v16  ;;  %v1122_v38 = vadd.f32 %v1121_v35, %v1059_v29  ;;  %v1064_v16 = vmul.f32 %v1953_v47, %v1953_v47 }
 0x159   :  { %v1123_v39 = vadd.f32 %v1122_v38, %v1060_v52  ;;  %v991_v61 = vadd.f32 %v990_v37, %v1935_v27 }
 0x15b   :  { %v992_v42 = vadd.f32 %v1927_v14, %v991_v61  ;;  %v1124_v46 = vadd.f32 %v1123_v39, %v1061_v40  ;;  %v1066_v14 = vmul.f32 %v1951_v44, %v1951_v44 }
 0x15d   :  { %v1125_v48 = vadd.f32 %v1124_v46, %v1062_v49  ;;  %v993_v51 = vadd.f32 %v1931_v21, %v992_v42  ;;  %v1067_v21 = vmul.f32 %v1955_v55, %v1955_v55 }
 0x15f   :  { %v994_v43 = vadd.f32 %v993_v51, %v1953_v47  ;;  %v1126_v53 = vadd.f32 %v1125_v48, %v1063_v57  ;;  %v1068_v47 = vmul.f32 %v1977_v18, %v1977_v18 }
 0x161   :  { %v1127_v56 = vadd.f32 %v1126_v53, %v1064_v16  ;;  %v995_v27 = vadd.f32 %v994_v43, %v1959_v60 }
 0x163   :  { %v996_v50 = vadd.f32 %v1951_v44, %v995_v27  ;;  %v1128_v63 = vadd.f32 %v1127_v56, %v1065_v59  ;;  %v1070_v44 = vmul.f32 %v1975_v15, %v1975_v15 }
 0x165   :  { %v1129_v41 = vadd.f32 %v1128_v63, %v1066_v14  ;;  %v997_v1 = vadd.f32 %v1955_v55, %v996_v50  ;;  %v1071_v55 = vmul.f32 %v1979_v26, %v1979_v26 }
 0x167   :  { %v998_v2 = vadd.f32 %v997_v1, %v1977_v18  ;;  %v1130_v45 = vadd.f32 %v1129_v41, %v1067_v21  ;;  %v1072_v18 = vmul.f32 %v2001_v58, %v2001_v58 }
 0x169   :  { %v1131_v4 = vadd.f32 %v1130_v45, %v1068_v47  ;;  %v999_v60 = vadd.f32 %v998_v2, %v1983_v32 }
 0x16b   :  { %v1000_v0 = vadd.f32 %v1975_v15, %v999_v60  ;;  %v1132_v7 = vadd.f32 %v1131_v4, %v1069_v6  ;;  %v1074_v15 = vmul.f32 %v1999_v54, %v1999_v54 }
 0x16d   :  { %v1133_v10 = vadd.f32 %v1132_v7, %v1070_v44  ;;  %v1001_v11 = vadd.f32 %v1979_v26, %v1000_v0  ;;  %v1075_v26 = vmul.f32 %v2003_v3, %v2003_v3 }
 0x16f   :  { %v1002_v9 = vadd.f32 %v1001_v11, %v2001_v58  ;;  %v1134_v12 = vadd.f32 %v1133_v10, %v1071_v55 }
 0x171   :  { %v1135_v62 = vadd.f32 %v1134_v12, %v1072_v18  ;;  %v1003_v32 = vadd.f32 %v1002_v9, %v2007_v8 }
 0x173   :  { %v1004_v17 = vadd.f32 %v1999_v54, %v1003_v32  ;;  %v1136_v5 = vadd.f32 %v1135_v62, %v1073_v13 }
 0x175   :  { %v1005_v19 = vadd.f32 %v2003_v3, %v1004_v17  ;;  %v1137_v20 = vadd.f32 %v1136_v5, %v1074_v15 }
 0x177   :  { %v1006_v58 = vrot.slane %v1005_v19, 4  ;;  %v1138_v24 = vadd.f32 %v1137_v20, %v1075_v26 }
 0x179   :  { %v1007_v23 = vadd.f32 %v1006_v58, %v1005_v19  ;;  %v1139_v25 = vrot.slane %v1138_v24, 4 }
 0x17b   :  { %v1008_v28 = vrot.slane %v1007_v23, 2  ;;  %v1140_v33 = vadd.f32 %v1139_v25, %v1138_v24 }
 0x17d   :  { %v1009_v30 = vadd.f32 %v1008_v28, %v1007_v23  ;;  %v1141_v8 = vrot.slane %v1140_v33, 2 }
 0x17f   :  { %v1010_v22 = vrot.slane %v1009_v30, 1  ;;  %v1142_v31 = vadd.f32 %v1141_v8, %v1140_v33 }
 0x181   :  { %v1143_v34 = vrot.slane %v1142_v31, 1  ;;  %v1011_v54 = vadd.f32 %v1010_v22, %v1009_v30 }
 0x183   :  { %v1144_v29 = vadd.f32 %v1143_v34, %v1142_v31 }
 0x185   :  { %v1146_v35 = vsel %vm1145_vm0, %v1011_v54, %v1144_v29 }
 0x186   :  { %1147 = vst [vmem:[%s2125_s3] sm:$0x3] %v1146_v35 }

// kernel: bottleneck_block.6
= control target key start
LH: loop header
LB: loop body
LE: loop exit
PB: predicated region body
PF: predicated region fallthrough
CT: control target
= control target key end

     0   :  { %vm828_vm0 = vcmask 1040384   ;;  %s1496_s0 = inlined_call_operand.vmem [shape: bf16[128,128], index: 0, kind: input, shape index: {}]   ;;  %s1497_s1 = inlined_call_operand.vmem [shape: f32[1,128], index: 1, kind: input, shape index: {}]   ;;  %s1498_s2 = inlined_call_operand.vmem [shape: f32[1,128], index: 2, kind: input, shape index: {}]   ;;  %s1499_s3 = inlined_call_operand.vmem [shape: bf16[128,128], index: 3, kind: input, shape index: {}]   ;;  %s1500_s4 = inlined_call_operand.vmem [shape: bf16[16,2,8,256], index: 4, kind: input, shape index: {}]   ;;  %s1501_s5 = inlined_call_operand.vmem [shape: bf16[128,128], index: 5, kind: input, shape index: {}]   ;;  %s1502_s6 = inlined_call_operand.vmem [shape: bf16[128,128], index: 6, kind: output, shape index: {0}]   ;;  %s1503_s7 = inlined_call_operand.vmem [shape: bf16[128,128], index: 7, kind: output, shape index: {1}]   ;;  %s1504_s8 = inlined_call_operand.vmem [shape: f32[1,2,128], index: 8, kind: output, shape index: {2}]   ;;  %s1505_s9 = inlined_call_operand.vmem [shape: f32[1,2,128], index: 9, kind: output, shape index: {3}]  }
   0x1   :  { %v1230_v0 = vld [vmem:[%s1499_s3] sm:$0xff]   ;;  %v1232_v2 = vld [vmem:[%s1499_s3 + $0x8] sm:$0xff]   ;;  %v1234_v4 = vld [vmem:[%s1499_s3 + $0x10] sm:$0xff]  }
   0x2   :  { %v1231_v1 = vld [vmem:[%s1501_s5] sm:$0xff]   ;;  %1166 = vmatprep.subr.bf16.mxu0 %v1230_v0  ;;  %v1233_v3 = vld [vmem:[%s1501_s5 + $0x8] sm:$0xff]   ;;  %v1235_v5 = vld [vmem:[%s1501_s5 + $0x10] sm:$0xff]  }
   0x3   :  { %1198 = vmatprep.subr.bf16.mxu1 %v1231_v1  ;;  %1167 = vmatpush3.bf16.msra.mxu0 %v1230_v0  ;;  %v1236_v6 = vld [vmem:[%s1499_s3 + $0x18] sm:$0xff]   ;;  %v1238_v8 = vld [vmem:[%s1499_s3 + $0x20] sm:$0xff]   ;;  %v1240_v10 = vld [vmem:[%s1499_s3 + $0x28] sm:$0xff]  }
   0x4   :  { %1199 = vmatpush3.bf16.msra.mxu1 %v1231_v1  ;;  %1168 = vmatprep.subr.bf16.mxu0 %v1232_v2  ;;  %v1237_v7 = vld [vmem:[%s1501_s5 + $0x18] sm:$0xff]   ;;  %v1239_v9 = vld [vmem:[%s1501_s5 + $0x20] sm:$0xff]   ;;  %v1241_v11 = vld [vmem:[%s1501_s5 + $0x28] sm:$0xff]  }
   0x5   :  { %1200 = vmatprep.subr.bf16.mxu1 %v1233_v3  ;;  %v1002_v12 = vld [vmem:[%s1496_s0] sm:$0xff]   ;;  %v1113_v18 = vld [vmem:[%s1496_s0 + $0x8] sm:$0xff]   ;;  %v1114_v23 = vld [vmem:[%s1496_s0 + $0x10] sm:$0xff]  }
   0x6   :  { %v1346_v13 = vld [vmem:[%s1497_s1] ss:$0 sm:$0xff]  ;;  %v1003_v15 = vunpack.c.l.bf16 %v1002_v12  ;;  %v1004_v16 = vunpack.c.h.bf16 %v1002_v12  ;;  %v1007_v21 = vunpack.c.l.bf16 %v1113_v18  ;;  %v1008_v22 = vunpack.c.h.bf16 %v1113_v18  ;;  %v1242_v24 = vld [vmem:[%s1499_s3 + $0x30] sm:$0xff]   ;;  %v1115_v27 = vld [vmem:[%s1496_s0 + $0x18] sm:$0xff]  }
   0x7   :  { %1169 = vmatpush3.bf16.msra.mxu0 %v1232_v2  ;;  %v1351_v14 = vld [vmem:[%s1498_s2] ss:$0 sm:$0xff]  ;;  %v1011_v25 = vunpack.c.l.bf16 %v1114_v23  ;;  %v1012_v26 = vunpack.c.h.bf16 %v1114_v23  ;;  %v1243_v28 = vld [vmem:[%s1501_s5 + $0x30] sm:$0xff]   ;;  %v1015_v35 = vunpack.c.l.bf16 %v1115_v27  ;;  %v1016_v36 = vunpack.c.h.bf16 %v1115_v27  ;;  %v1244_v42 = vld [vmem:[%s1499_s3 + $0x38] sm:$0xff]  }
   0x8   :  { %1201 = vmatpush3.bf16.msra.mxu1 %v1233_v3  ;;  %1170 = vmatprep.subr.bf16.mxu0 %v1234_v4  ;;  %v1246_v17 = vld [vmem:[%s1500_s4] ss:$16 sps:$4 sm:$0xff]   ;;  %v161_v19 = vmul.f32 %v1003_v15, %v1346_v13  ;;  %v162_v20 = vmul.f32 %v1004_v16, %v1346_v13  ;;  %v163_v31 = vmul.f32 %v1007_v21, %v1346_v13  ;;  %v1245_v46 = vld [vmem:[%s1501_s5 + $0x38] sm:$0xff]   ;;  %v1117_v56 = vld [vmem:[%s1496_s0 + $0x28] sm:$0xff]  }
   0x9   :  { %1202 = vmatprep.subr.bf16.mxu1 %v1235_v5  ;;  %1214 = vmatprep.mubr.bf16.mxu1 %v1246_v17  ;;  %v164_v32 = vmul.f32 %v1008_v22, %v1346_v13  ;;  %v165_v33 = vmul.f32 %v1011_v25, %v1346_v13  ;;  %v166_v34 = vmul.f32 %v1012_v26, %v1346_v13  ;;  %v1116_v37 = vld [vmem:[%s1496_s0 + $0x20] sm:$0xff]   ;;  %v1118_v58 = vld [vmem:[%s1496_s0 + $0x30] sm:$0xff]   ;;  %v1023_v63 = vunpack.c.l.bf16 %v1117_v56 }
   0xa   :  { %v184_v29 = vadd.f32 %v1351_v14, %v161_v19  ;;  %v185_v30 = vadd.f32 %v1351_v14, %v162_v20  ;;  %v186_v40 = vadd.f32 %v1351_v14, %v163_v31  ;;  %v1019_v45 = vunpack.c.l.bf16 %v1116_v37  ;;  %v1247_v1 = vld [vmem:[%s1500_s4 + $0x20] ss:$16 sps:$4 sm:$0xff]  }
   0xb   :  { %1171 = vmatpush3.bf16.msra.mxu0 %v1234_v4  ;;  %v187_v41 = vadd.f32 %v1351_v14, %v164_v32  ;;  %v188_v43 = vadd.f32 %v1351_v14, %v165_v33  ;;  %v189_v44 = vadd.f32 %v1351_v14, %v166_v34  ;;  %v167_v50 = vmul.f32 %v1015_v35, %v1346_v13  ;;  %v1249_v23 = vld [vmem:[%s1500_s4 + $0x60] ss:$16 sps:$4 sm:$0xff]  }
   0xc   :  { %1203 = vmatpush3.bf16.msra.mxu1 %v1235_v5  ;;  %1172 = vmatprep.subr.bf16.mxu0 %v1236_v6  ;;  %v200_v38 = vmax.f32 %v184_v29, 0.0  ;;  %v201_v39 = vmax.f32 %v185_v30, 0.0  ;;  %v202_v48 = vmax.f32 %v186_v40, 0.0  ;;  %v168_v53 = vmul.f32 %v1016_v36, %v1346_v13  ;;  %v1250_v27 = vld [vmem:[%s1500_s4 + $0x80] ss:$16 sps:$4 sm:$0xff]  }
   0xd   :  { %1204 = vmatprep.subr.bf16.mxu1 %v1237_v7  ;;  %v203_v49 = vmax.f32 %v187_v41, 0.0  ;;  %v204_v51 = vmax.f32 %v188_v43, 0.0  ;;  %v205_v52 = vmax.f32 %v189_v44, 0.0  ;;  %v1020_v54 = vunpack.c.h.bf16 %v1116_v37  ;;  %v1251_v37 = vld [vmem:[%s1500_s4 + $0xa0] ss:$16 sps:$4 sm:$0xff]  }
   0xe   :  { %v216_v47 = vpack.c.bf16 %v201_v39, %v200_v38  ;;  %v169_v55 = vmul.f32 %v1019_v45, %v1346_v13  ;;  %v190_v60 = vadd.f32 %v1351_v14, %v167_v50  ;;  %v191_v62 = vadd.f32 %v1351_v14, %v168_v53  ;;  %v1252_v39 = vld [vmem:[%s1500_s4 + $0xc0] ss:$16 sps:$4 sm:$0xff]  }
   0xf   :  { %1173 = vmatpush3.bf16.msra.mxu0 %v1236_v6  ;;  %v170_v57 = vmul.f32 %v1020_v54, %v1346_v13  ;;  %v217_v59 = vpack.c.bf16 %v203_v49, %v202_v48  ;;  %v218_v61 = vpack.c.bf16 %v205_v52, %v204_v51  ;;  %v1024_v0 = vunpack.c.h.bf16 %v1117_v56  ;;  %v1248_v6 = vld [vmem:[%s1500_s4 + $0x40] ss:$16 sps:$4 sm:$0xff]  }
  0x10   :  { %1205 = vmatpush3.bf16.msra.mxu1 %v1237_v7  ;;  %1174 = vmatprep.subr.bf16.mxu0 %v1238_v8  ;;  %v192_v2 = vadd.f32 %v1351_v14, %v169_v55  ;;  %v1027_v4 = vunpack.c.l.bf16 %v1118_v58  ;;  %v1028_v5 = vunpack.c.h.bf16 %v1118_v58  ;;  %v206_v7 = vmax.f32 %v190_v60, 0.0 }
  0x11   :  { %1206 = vmatprep.subr.bf16.mxu1 %v1239_v9  ;;  %1182 = vmatprep.mubr.bf16.mxu0 %v216_v47  ;;  %v193_v3 = vadd.f32 %v1351_v14, %v170_v57 }
  0x12   :  { %v208_v12 = vmax.f32 %v192_v2, 0.0  ;;  %v173_v16 = vmul.f32 %v1027_v4, %v1346_v13  ;;  %v174_v17 = vmul.f32 %v1028_v5, %v1346_v13 }
  0x13   :  { %1175 = vmatpush3.bf16.msra.mxu0 %v1238_v8  ;;  %v207_v8 = vmax.f32 %v191_v62, 0.0  ;;  %v209_v15 = vmax.f32 %v193_v3, 0.0 }
  0x14   :  { %1207 = vmatpush3.bf16.msra.mxu1 %v1239_v9  ;;  %1176 = vmatprep.subr.bf16.mxu0 %v1240_v10  ;;  %v171_v9 = vmul.f32 %v1023_v63, %v1346_v13  ;;  %v196_v25 = vadd.f32 %v1351_v14, %v173_v16  ;;  %v197_v26 = vadd.f32 %v1351_v14, %v174_v17 }
  0x15   :  { %1208 = vmatprep.subr.bf16.mxu1 %v1241_v11  ;;  %v219_v19 = vpack.c.bf16 %v207_v8, %v206_v7 }
  0x16   :  { %v194_v20 = vadd.f32 %v1351_v14, %v171_v9  ;;  %v212_v32 = vmax.f32 %v196_v25, 0.0  ;;  %v213_v33 = vmax.f32 %v197_v26, 0.0 }
  0x17   :  { %1177 = vmatpush3.bf16.msra.mxu0 %v1240_v10  ;;  %v172_v10 = vmul.f32 %v1024_v0, %v1346_v13 }
  0x18   :  { %1209 = vmatpush3.bf16.msra.mxu1 %v1241_v11  ;;  %1178 = vmatprep.subr.bf16.mxu0 %v1242_v24  ;;  %v1119_v11 = vld [vmem:[%s1496_s0 + $0x38] sm:$0xff]   ;;  %v222_v38 = vpack.c.bf16 %v213_v33, %v212_v32 }
  0x19   :  { %1210 = vmatprep.subr.bf16.mxu1 %v1243_v28  ;;  %v1031_v18 = vunpack.c.l.bf16 %v1119_v11  ;;  %v195_v21 = vadd.f32 %v1351_v14, %v172_v10  ;;  %v1032_v22 = vunpack.c.h.bf16 %v1119_v11 }
  0x1b   :  { %1179 = vmatpush3.bf16.msra.mxu0 %v1242_v24  ;;  %v220_v24 = vpack.c.bf16 %v209_v15, %v208_v12  ;;  %v211_v29 = vmax.f32 %v195_v21, 0.0  ;;  %v175_v30 = vmul.f32 %v1031_v18, %v1346_v13  ;;  %v176_v31 = vmul.f32 %v1032_v22, %v1346_v13 }
  0x1c   :  { %1211 = vmatpush3.bf16.msra.mxu1 %v1243_v28  ;;  %1180 = vmatprep.subr.bf16.mxu0 %v1244_v42  ;;  %v210_v28 = vmax.f32 %v194_v20, 0.0 }
  0x1d   :  { %1212 = vmatprep.subr.bf16.mxu1 %v1245_v46  ;;  %v198_v35 = vadd.f32 %v1351_v14, %v175_v30  ;;  %v199_v36 = vadd.f32 %v1351_v14, %v176_v31  ;;  %v1253_v14 = vld [vmem:[%s1500_s4 + $0xe0] ss:$16 sps:$4 sm:$0xff]  }
  0x1e   :  { %v221_v34 = vpack.c.bf16 %v211_v29, %v210_v28 }
  0x1f   :  { %1181 = vmatpush3.bf16.msra.mxu0 %v1244_v42  ;;  %v214_v13 = vmax.f32 %v198_v35, 0.0  ;;  %v215_v40 = vmax.f32 %v199_v36, 0.0 }
  0x20   :  { %1213 = vmatpush3.bf16.msra.mxu1 %v1245_v46 }
  0x21   :  { %v223_v41 = vpack.c.bf16 %v215_v40, %v214_v13 }
  0x22   :  { %1183 = vmatmul.mubr.bf16.vlgmr.msra.gmra.mrb[0].mxu0 %v217_v59 }
  0x23   :  { %1215 = vmatmul.mubr.bf16.vlgmr.msra.gmra.mrb[0].mxu1 %v1247_v1  ;;  %1186 = vmatprep.mubr.bf16.mxu0 %v218_v61 }
  0x24   :  { %1218 = vmatprep.mubr.bf16.mxu1 %v1248_v6 }
  0x2a   :  { %1187 = vmatmul.mubr.bf16.gmra.mrb[4].mxu0 %v219_v19 }
  0x2b   :  { %1219 = vmatmul.mubr.bf16.gmra.mrb[4].mxu1 %v1249_v23  ;;  %1190 = vmatprep.mubr.bf16.mxu0 %v220_v24 }
  0x2c   :  { %1222 = vmatprep.mubr.bf16.mxu1 %v1250_v27 }
  0x32   :  { %1191 = vmatmul.mubr.bf16.gmra.mrb[8].mxu0 %v221_v34 }
  0x33   :  { %1223 = vmatmul.mubr.bf16.gmra.mrb[8].mxu1 %v1251_v37  ;;  %1194 = vmatprep.mubr.bf16.mxu0 %v222_v38 }
  0x34   :  { %1226 = vmatprep.mubr.bf16.mxu1 %v1252_v39 }
  0x3a   :  { %1195 = vmatmul.mubr.bf16.gmra.mrb[12].mxu0 %v223_v41 }
  0x3b   :  { %1227 = vmatmul.mubr.bf16.gmra.mrb[12].mxu1 %v1253_v14 }
  0xf5   :  { %v1184_v42 = vpop.f32.mrb[0].mxu0 }
  0xf6   :  { %v1216_v43 = vpop.f32.mrb[0].mxu1  ;;  %v322_v44 = vpop.f32.mrb[1].mxu0  ;;  %v793_v60 = vmul.f32 %v1184_v42, %v1184_v42 }
  0xf7   :  { %v547_v45 = vpop.f32.mrb[1].mxu1  ;;  %v1185_v46 = vpop.f32.mrb[2].mxu0  ;;  %v791_v47 = vmul.f32 %v322_v44, %v322_v44  ;;  %v854_v62 = vmul.f32 %v1216_v43, %v1216_v43 }
  0xf8   :  { %v1041_v48 = vpack.c.bf16 %v1185_v46, %v1184_v42  ;;  %v1217_v49 = vpop.f32.mrb[2].mxu1  ;;  %v325_v50 = vpop.f32.mrb[3].mxu0  ;;  %v852_v51 = vmul.f32 %v547_v45, %v547_v45  ;;  %v794_v2 = vmul.f32 %v1185_v46, %v1185_v46 }
  0xf9   :  { %v1081_v52 = vpack.c.bf16 %v1217_v49, %v1216_v43  ;;  %v1036_v53 = vpack.c.bf16 %v325_v50, %v322_v44  ;;  %v770_v54 = vadd.f32 %v325_v50, %v322_v44  ;;  %v550_v55 = vpop.f32.mrb[3].mxu1  ;;  %v792_v56 = vmul.f32 %v325_v50, %v325_v50 }
  0xfa   :  { %1120 = vst [vmem:[%s1502_s6 + $0x8] sm:$0xff] %v1041_v48   ;;  %v1076_v57 = vpack.c.bf16 %v550_v55, %v547_v45  ;;  %v831_v58 = vadd.f32 %v550_v55, %v547_v45  ;;  %v853_v59 = vmul.f32 %v550_v55, %v550_v55  ;;  %v855_v5 = vmul.f32 %v1217_v49, %v1217_v49 }
  0xfb   :  { %1127 = vst [vmem:[%s1503_s7 + $0x8] sm:$0xff] %v1081_v52   ;;  %1037 = vst [vmem:[%s1502_s6] sm:$0xff] %v1036_v53   ;;  %v771_v61 = vadd.f32 %v1184_v42, %v770_v54  ;;  %v807_v63 = vadd.f32 %v792_v56, %v791_v47 }
  0xfc   :  { %1077 = vst [vmem:[%s1503_s7] sm:$0xff] %v1076_v57   ;;  %v832_v0 = vadd.f32 %v1216_v43, %v831_v58  ;;  %v868_v1 = vadd.f32 %v853_v59, %v852_v51 }
  0xfd   :  { %v1188_v3 = vpop.f32.mrb[4].mxu0  ;;  %v772_v4 = vadd.f32 %v1185_v46, %v771_v61  ;;  %v808_v6 = vadd.f32 %v807_v63, %v793_v60 }
  0xfe   :  { %v869_v7 = vadd.f32 %v868_v1, %v854_v62  ;;  %v1220_v8 = vpop.f32.mrb[4].mxu1  ;;  %v338_v9 = vpop.f32.mrb[5].mxu0  ;;  %v833_v10 = vadd.f32 %v1217_v49, %v832_v0  ;;  %v797_v34 = vmul.f32 %v1188_v3, %v1188_v3 }
  0xff   :  { %v773_v11 = vadd.f32 %v772_v4, %v338_v9  ;;  %v795_v12 = vmul.f32 %v338_v9, %v338_v9  ;;  %v563_v15 = vpop.f32.mrb[5].mxu1  ;;  %v1189_v16 = vpop.f32.mrb[6].mxu0  ;;  %v809_v17 = vadd.f32 %v808_v6, %v794_v2  ;;  %v858_v36 = vmul.f32 %v1220_v8, %v1220_v8 }
 0x100   :  { %v834_v18 = vadd.f32 %v833_v10, %v563_v15  ;;  %v856_v19 = vmul.f32 %v563_v15, %v563_v15  ;;  %v870_v20 = vadd.f32 %v869_v7, %v855_v5  ;;  %v1221_v21 = vpop.f32.mrb[6].mxu1  ;;  %v341_v22 = vpop.f32.mrb[7].mxu0  ;;  %v1051_v23 = vpack.c.bf16 %v1189_v16, %v1188_v3 }
 0x101   :  { %v1091_v24 = vpack.c.bf16 %v1221_v21, %v1220_v8  ;;  %v566_v25 = vpop.f32.mrb[7].mxu1  ;;  %v810_v26 = vadd.f32 %v809_v17, %v795_v12  ;;  %v1046_v28 = vpack.c.bf16 %v341_v22, %v338_v9  ;;  %v774_v29 = vadd.f32 %v773_v11, %v341_v22 }
 0x102   :  { %v871_v27 = vadd.f32 %v870_v20, %v856_v19  ;;  %1122 = vst [vmem:[%s1502_s6 + $0x18] sm:$0xff] %v1051_v23   ;;  %v796_v30 = vmul.f32 %v341_v22, %v341_v22  ;;  %v1086_v31 = vpack.c.bf16 %v566_v25, %v563_v15  ;;  %v835_v32 = vadd.f32 %v834_v18, %v566_v25 }
 0x103   :  { %1129 = vst [vmem:[%s1503_s7 + $0x18] sm:$0xff] %v1091_v24   ;;  %v857_v33 = vmul.f32 %v566_v25, %v566_v25  ;;  %1121 = vst [vmem:[%s1502_s6 + $0x10] sm:$0xff] %v1046_v28   ;;  %v775_v35 = vadd.f32 %v1188_v3, %v774_v29  ;;  %v798_v40 = vmul.f32 %v1189_v16, %v1189_v16 }
 0x104   :  { %v811_v37 = vadd.f32 %v810_v26, %v796_v30  ;;  %1128 = vst [vmem:[%s1503_s7 + $0x10] sm:$0xff] %v1086_v31   ;;  %v836_v38 = vadd.f32 %v1220_v8, %v835_v32  ;;  %v859_v43 = vmul.f32 %v1221_v21, %v1221_v21 }
 0x105   :  { %v872_v39 = vadd.f32 %v871_v27, %v857_v33  ;;  %v1192_v13 = vpop.f32.mrb[8].mxu0  ;;  %v776_v42 = vadd.f32 %v1189_v16, %v775_v35 }
 0x106   :  { %v1224_v41 = vpop.f32.mrb[8].mxu1  ;;  %v354_v14 = vpop.f32.mrb[9].mxu0  ;;  %v812_v44 = vadd.f32 %v811_v37, %v797_v34  ;;  %v837_v50 = vadd.f32 %v1221_v21, %v836_v38  ;;  %v801_v5 = vmul.f32 %v1192_v13, %v1192_v13 }
 0x107   :  { %v873_v45 = vadd.f32 %v872_v39, %v858_v36  ;;  %v799_v46 = vmul.f32 %v354_v14, %v354_v14  ;;  %v579_v47 = vpop.f32.mrb[9].mxu1  ;;  %v1193_v48 = vpop.f32.mrb[10].mxu0  ;;  %v777_v49 = vadd.f32 %v776_v42, %v354_v14  ;;  %v862_v8 = vmul.f32 %v1224_v41, %v1224_v41 }
 0x108   :  { %v860_v51 = vmul.f32 %v579_v47, %v579_v47  ;;  %v1061_v52 = vpack.c.bf16 %v1193_v48, %v1192_v13  ;;  %v1225_v53 = vpop.f32.mrb[10].mxu1  ;;  %v357_v54 = vpop.f32.mrb[11].mxu0  ;;  %v813_v55 = vadd.f32 %v812_v44, %v798_v40  ;;  %v838_v59 = vadd.f32 %v837_v50, %v579_v47 }
 0x109   :  { %v874_v56 = vadd.f32 %v873_v45, %v859_v43  ;;  %v1101_v57 = vpack.c.bf16 %v1225_v53, %v1224_v41  ;;  %v582_v58 = vpop.f32.mrb[11].mxu1  ;;  %v1056_v60 = vpack.c.bf16 %v357_v54, %v354_v14  ;;  %v778_v61 = vadd.f32 %v777_v49, %v357_v54 }
 0x10a   :  { %1124 = vst [vmem:[%s1502_s6 + $0x28] sm:$0xff] %v1061_v52   ;;  %v814_v62 = vadd.f32 %v813_v55, %v799_v46  ;;  %v800_v0 = vmul.f32 %v357_v54, %v357_v54  ;;  %v1096_v1 = vpack.c.bf16 %v582_v58, %v579_v47  ;;  %v839_v3 = vadd.f32 %v838_v59, %v582_v58 }
 0x10b   :  { %v875_v63 = vadd.f32 %v874_v56, %v860_v51  ;;  %1131 = vst [vmem:[%s1503_s7 + $0x28] sm:$0xff] %v1101_v57   ;;  %1123 = vst [vmem:[%s1502_s6 + $0x20] sm:$0xff] %v1056_v60   ;;  %v779_v2 = vadd.f32 %v1192_v13, %v778_v61  ;;  %v861_v4 = vmul.f32 %v582_v58, %v582_v58 }
 0x10c   :  { %v815_v6 = vadd.f32 %v814_v62, %v800_v0  ;;  %1130 = vst [vmem:[%s1503_s7 + $0x20] sm:$0xff] %v1096_v1   ;;  %v840_v9 = vadd.f32 %v1224_v41, %v839_v3  ;;  %v802_v16 = vmul.f32 %v1193_v48, %v1193_v48  ;;  %v863_v17 = vmul.f32 %v1225_v53, %v1225_v53 }
 0x10d   :  { %v1196_v7 = vpop.f32.mrb[12].mxu0  ;;  %v876_v10 = vadd.f32 %v875_v63, %v861_v4  ;;  %v780_v15 = vadd.f32 %v1193_v48, %v779_v2 }
 0x10e   :  { %v1228_v11 = vpop.f32.mrb[12].mxu1  ;;  %v370_v12 = vpop.f32.mrb[13].mxu0  ;;  %v816_v18 = vadd.f32 %v815_v6, %v801_v5  ;;  %v841_v24 = vadd.f32 %v1225_v53, %v840_v9  ;;  %v805_v41 = vmul.f32 %v1196_v7, %v1196_v7 }
 0x10f   :  { %v803_v19 = vmul.f32 %v370_v12, %v370_v12  ;;  %v595_v20 = vpop.f32.mrb[13].mxu1  ;;  %v1197_v21 = vpop.f32.mrb[14].mxu0  ;;  %v877_v22 = vadd.f32 %v876_v10, %v862_v8  ;;  %v781_v23 = vadd.f32 %v780_v15, %v370_v12  ;;  %v866_v43 = vmul.f32 %v1228_v11, %v1228_v11 }
 0x110   :  { %v864_v25 = vmul.f32 %v595_v20, %v595_v20  ;;  %v1229_v26 = vpop.f32.mrb[14].mxu1  ;;  %v373_v27 = vpop.f32.mrb[15].mxu0  ;;  %v817_v28 = vadd.f32 %v816_v18, %v802_v16  ;;  %v1071_v29 = vpack.c.bf16 %v1197_v21, %v1196_v7  ;;  %v842_v32 = vadd.f32 %v841_v24, %v595_v20 }
 0x111   :  { %v1111_v30 = vpack.c.bf16 %v1229_v26, %v1228_v11  ;;  %v598_v31 = vpop.f32.mrb[15].mxu1  ;;  %v878_v33 = vadd.f32 %v877_v22, %v863_v17  ;;  %v1066_v34 = vpack.c.bf16 %v373_v27, %v370_v12  ;;  %v782_v36 = vadd.f32 %v781_v23, %v373_v27 }
 0x112   :  { %v818_v35 = vadd.f32 %v817_v28, %v803_v19  ;;  %1126 = vst [vmem:[%s1502_s6 + $0x38] sm:$0xff] %v1071_v29   ;;  %v804_v37 = vmul.f32 %v373_v27, %v373_v27  ;;  %v1106_v38 = vpack.c.bf16 %v598_v31, %v595_v20  ;;  %v843_v13 = vadd.f32 %v842_v32, %v598_v31 }
 0x113   :  { %1133 = vst [vmem:[%s1503_s7 + $0x38] sm:$0xff] %v1111_v30   ;;  %v879_v39 = vadd.f32 %v878_v33, %v864_v25  ;;  %1125 = vst [vmem:[%s1502_s6 + $0x30] sm:$0xff] %v1066_v34   ;;  %v865_v40 = vmul.f32 %v598_v31, %v598_v31  ;;  %v783_v14 = vadd.f32 %v1196_v7, %v782_v36 }
 0x114   :  { %v819_v42 = vadd.f32 %v818_v35, %v804_v37  ;;  %1132 = vst [vmem:[%s1503_s7 + $0x30] sm:$0xff] %v1106_v38   ;;  %v844_v44 = vadd.f32 %v1228_v11, %v843_v13  ;;  %v806_v46 = vmul.f32 %v1197_v21, %v1197_v21  ;;  %v867_v49 = vmul.f32 %v1229_v26, %v1229_v26 }
 0x115   :  { %v880_v45 = vadd.f32 %v879_v39, %v865_v40  ;;  %v784_v47 = vadd.f32 %v1197_v21, %v783_v14 }
 0x116   :  { %v820_v48 = vadd.f32 %v819_v42, %v805_v41  ;;  %v845_v50 = vadd.f32 %v1229_v26, %v844_v44 }
 0x117   :  { %v881_v51 = vadd.f32 %v880_v45, %v866_v43  ;;  %v785_v52 = vrot.slane %v784_v47, 4 }
 0x118   :  { %v821_v53 = vadd.f32 %v820_v48, %v806_v46  ;;  %v846_v54 = vrot.slane %v845_v50, 4 }
 0x119   :  { %v882_v55 = vadd.f32 %v881_v51, %v867_v49  ;;  %v786_v56 = vadd.f32 %v785_v52, %v784_v47 }
 0x11a   :  { %v822_v57 = vrot.slane %v821_v53, 4  ;;  %v847_v58 = vadd.f32 %v846_v54, %v845_v50 }
 0x11b   :  { %v883_v59 = vrot.slane %v882_v55, 4  ;;  %v787_v60 = vrot.slane %v786_v56, 2 }
 0x11c   :  { %v823_v61 = vadd.f32 %v822_v57, %v821_v53  ;;  %v848_v62 = vrot.slane %v847_v58, 2 }
 0x11d   :  { %v884_v63 = vadd.f32 %v883_v59, %v882_v55  ;;  %v788_v0 = vadd.f32 %v787_v60, %v786_v56 }
 0x11e   :  { %v824_v1 = vrot.slane %v823_v61, 2  ;;  %v849_v2 = vadd.f32 %v848_v62, %v847_v58 }
 0x11f   :  { %v885_v3 = vrot.slane %v884_v63, 2  ;;  %v789_v4 = vrot.slane %v788_v0, 1 }
 0x120   :  { %v825_v5 = vadd.f32 %v824_v1, %v823_v61  ;;  %v850_v6 = vrot.slane %v849_v2, 1 }
 0x121   :  { %v886_v7 = vadd.f32 %v885_v3, %v884_v63  ;;  %v790_v10 = vadd.f32 %v789_v4, %v788_v0 }
 0x122   :  { %v826_v8 = vrot.slane %v825_v5, 1  ;;  %v851_v12 = vadd.f32 %v850_v6, %v849_v2 }
 0x123   :  { %v887_v9 = vrot.slane %v886_v7, 1 }
 0x124   :  { %v827_v11 = vadd.f32 %v826_v8, %v825_v5 }
 0x125   :  { %v888_v15 = vadd.f32 %v887_v9, %v886_v7 }
 0x126   :  { %v829_v16 = vsel %vm828_vm0, %v790_v10, %v827_v11 }
 0x127   :  { %830 = vst [vmem:[%s1504_s8] sm:$0x3] %v829_v16  ;;  %v889_v17 = vsel %vm828_vm0, %v851_v12, %v888_v15 }
 0x128   :  { %890 = vst [vmem:[%s1505_s9] sm:$0x3] %v889_v17 }

// kernel: bottleneck_block.7
= control target key start
LH: loop header
LB: loop body
LE: loop exit
PB: predicated region body
PF: predicated region fallthrough
CT: control target
= control target key end

     0   :  { %s535_s0 = inlined_call_operand.vmem [shape: bf16[128,128], index: 0, kind: input, shape index: {}]   ;;  %s536_s1 = inlined_call_operand.vmem [shape: f32[1,128], index: 1, kind: input, shape index: {}]   ;;  %s537_s2 = inlined_call_operand.vmem [shape: f32[1,128], index: 2, kind: input, shape index: {}]   ;;  %s538_s3 = inlined_call_operand.vmem [shape: bf16[128,128], index: 3, kind: input, shape index: {}]   ;;  %s539_s4 = inlined_call_operand.vmem [shape: f32[1,128], index: 4, kind: input, shape index: {}]   ;;  %s540_s5 = inlined_call_operand.vmem [shape: f32[1,128], index: 5, kind: input, shape index: {}]   ;;  %s541_s6 = inlined_call_operand.hbm [shape: f32[128,128], index: 6, kind: output, shape index: {}]  }
   0x1   :  { %v249_v0 = vld [vmem:[%s535_s0] sm:$0xff]   ;;  %v312_v9 = vld [vmem:[%s535_s0 + $0x8] sm:$0xff]   ;;  %v313_v20 = vld [vmem:[%s535_s0 + $0x10] sm:$0xff]  }
   0x2   :  { %v397_v1 = vld [vmem:[%s536_s1] ss:$0 sm:$0xff]  ;;  %v250_v2 = vunpack.c.l.bf16 %v249_v0  ;;  %v251_v5 = vunpack.c.h.bf16 %v249_v0  ;;  %v319_v10 = vld [vmem:[%s538_s3 + $0x8] sm:$0xff]   ;;  %v254_v14 = vunpack.c.l.bf16 %v312_v9  ;;  %v255_v18 = vunpack.c.h.bf16 %v312_v9  ;;  %v320_v21 = vld [vmem:[%s538_s3 + $0x10] sm:$0xff]  }
   0x3   :  { %v281_v3 = vld [vmem:[%s538_s3] sm:$0xff]   ;;  %v286_v15 = vunpack.c.l.bf16 %v319_v10  ;;  %v287_v19 = vunpack.c.h.bf16 %v319_v10 }
   0x4   :  { %v405_v4 = vld [vmem:[%s539_s4] ss:$0 sm:$0xff]  ;;  %v282_v7 = vunpack.c.l.bf16 %v281_v3  ;;  %v283_v8 = vunpack.c.h.bf16 %v281_v3  ;;  %v63_v11 = vmul.f32 %v250_v2, %v397_v1  ;;  %v64_v13 = vmul.f32 %v251_v5, %v397_v1 }
   0x5   :  { %v410_v6 = vld [vmem:[%s537_s2] ss:$0 sm:$0xff]  ;;  %v65_v24 = vmul.f32 %v254_v14, %v397_v1  ;;  %v143_v25 = vmul.f32 %v286_v15, %v405_v4  ;;  %v66_v28 = vmul.f32 %v255_v18, %v397_v1  ;;  %v144_v29 = vmul.f32 %v287_v19, %v405_v4 }
   0x6   :  { %v422_v12 = vld [vmem:[%s540_s5] ss:$0 sm:$0xff]  ;;  %v141_v16 = vmul.f32 %v282_v7, %v405_v4  ;;  %v142_v17 = vmul.f32 %v283_v8, %v405_v4  ;;  %v86_v22 = vadd.f32 %v410_v6, %v63_v11  ;;  %v87_v23 = vadd.f32 %v410_v6, %v64_v13 }
   0x8   :  { %v164_v26 = vadd.f32 %v422_v12, %v141_v16  ;;  %v165_v27 = vadd.f32 %v422_v12, %v142_v17 }
   0x9   :  { %11 = vsyncpa [#allocation3], 0  ;;  %v88_v30 = vadd.f32 %v410_v6, %v65_v24  ;;  %v166_v31 = vadd.f32 %v422_v12, %v143_v25  ;;  %v258_v32 = vunpack.c.l.bf16 %v313_v20  ;;  %v290_v33 = vunpack.c.l.bf16 %v320_v21  ;;  %v314_v42 = vld [vmem:[%s535_s0 + $0x18] sm:$0xff]   ;;  %v315_v52 = vld [vmem:[%s535_s0 + $0x20] sm:$0xff]  }
   0xa   :  { %v180_v34 = vadd.f32 %v164_v26, %v86_v22  ;;  %v181_v35 = vadd.f32 %v165_v27, %v87_v23  ;;  %v89_v36 = vadd.f32 %v410_v6, %v66_v28  ;;  %v167_v37 = vadd.f32 %v422_v12, %v144_v29  ;;  %v321_v43 = vld [vmem:[%s538_s3 + $0x18] sm:$0xff]   ;;  %v322_v57 = vld [vmem:[%s538_s3 + $0x20] sm:$0xff]   ;;  %v316_v14 = vld [vmem:[%s535_s0 + $0x28] sm:$0xff]  }
   0xb   :  { %v182_v38 = vadd.f32 %v166_v31, %v88_v30  ;;  %v67_v39 = vmul.f32 %v258_v32, %v397_v1  ;;  %v145_v40 = vmul.f32 %v290_v33, %v405_v4  ;;  %v259_v41 = vunpack.c.h.bf16 %v313_v20  ;;  %v323_v19 = vld [vmem:[%s538_s3 + $0x28] sm:$0xff]   ;;  %v317_v32 = vld [vmem:[%s535_s0 + $0x30] sm:$0xff]  }
   0xc   :  { %v196_v44 = vmax.f32 %v180_v34, 0.0  ;;  %v197_v45 = vmax.f32 %v181_v35, 0.0  ;;  %v183_v46 = vadd.f32 %v167_v37, %v89_v36  ;;  %v291_v47 = vunpack.c.h.bf16 %v320_v21  ;;  %v324_v33 = vld [vmem:[%s538_s3 + $0x30] sm:$0xff]  }
   0xd   :  { %v198_v48 = vmax.f32 %v182_v38, 0.0  ;;  %v90_v49 = vadd.f32 %v410_v6, %v67_v39  ;;  %v168_v50 = vadd.f32 %v422_v12, %v145_v40  ;;  %v68_v51 = vmul.f32 %v259_v41, %v397_v1 }
   0xe   :  { %212 = vst [vmem:[#allocation2] sm:$0xff] %v196_v44  ;;  %213 = vst [vmem:[#allocation2 + $0x8] sm:$0xff] %v197_v45  ;;  %v199_v53 = vmax.f32 %v183_v46, 0.0  ;;  %v146_v54 = vmul.f32 %v291_v47, %v405_v4  ;;  %v262_v55 = vunpack.c.l.bf16 %v314_v42  ;;  %v294_v56 = vunpack.c.l.bf16 %v321_v43  ;;  %v318_v46 = vld [vmem:[%s535_s0 + $0x38] sm:$0xff]   ;;  %s353_s0 = smov [#allocation2]  }
   0xf   :  { %214 = vst [vmem:[#allocation2 + $0x10] sm:$0xff] %v198_v48  ;;  %v184_v58 = vadd.f32 %v168_v50, %v90_v49  ;;  %v91_v59 = vadd.f32 %v410_v6, %v68_v51  ;;  %v263_v60 = vunpack.c.h.bf16 %v314_v42  ;;  %v295_v61 = vunpack.c.h.bf16 %v321_v43 }
  0x10   :  { %215 = vst [vmem:[#allocation2 + $0x18] sm:$0xff] %v199_v53  ;;  %v169_v62 = vadd.f32 %v422_v12, %v146_v54  ;;  %v69_v63 = vmul.f32 %v262_v55, %v397_v1  ;;  %v147_v0 = vmul.f32 %v294_v56, %v405_v4  ;;  %v266_v2 = vunpack.c.l.bf16 %v315_v52  ;;  %v325_v55 = vld [vmem:[%s538_s3 + $0x38] sm:$0xff]   ;;  %s233_s3 = sshll.u32 %s353_s0, 4  ;;  %s234_s3 = int_to_ptr.vmem [resolvable:$true] %s233_s3 }
  0x11   :  { %v200_v3 = vmax.f32 %v184_v58, 0.0  ;;  %v70_v5 = vmul.f32 %v263_v60, %v397_v1  ;;  %v148_v7 = vmul.f32 %v295_v61, %v405_v4  ;;  %v298_v8 = vunpack.c.l.bf16 %v322_v57  ;;  %s329_s8 = scalar_lea.vmem %s234_s3, 2048  ;;  %p334_p1 = scmp.lt.s32.totalorder %s234_s3, %s234_s3 }
  0x12   :  { %v185_v9 = vadd.f32 %v169_v62, %v91_v59  ;;  %v92_v10 = vadd.f32 %v410_v6, %v69_v63  ;;  %v170_v11 = vadd.f32 %v422_v12, %v147_v0  ;;  %v71_v13 = vmul.f32 %v266_v2, %v397_v1  ;;  %p330_p0 = scmp.ne.s32.totalorder %s234_s3, %s329_s8  ;;  %p335_p2 = scmp.lt.s32.totalorder %s329_s8, %s329_s8 }
  0x13   :  { %216 = vst [vmem:[#allocation2 + $0x20] sm:$0xff] %v200_v3  ;;  %v93_v15 = vadd.f32 %v410_v6, %v70_v5  ;;  %v171_v16 = vadd.f32 %v422_v12, %v148_v7  ;;  %v149_v17 = vmul.f32 %v298_v8, %v405_v4  ;;  %v267_v18 = vunpack.c.h.bf16 %v315_v52 }
  0x14   :  { %v201_v20 = vmax.f32 %v185_v9, 0.0  ;;  %v186_v21 = vadd.f32 %v170_v11, %v92_v10  ;;  %v94_v22 = vadd.f32 %v410_v6, %v71_v13  ;;  %v299_v23 = vunpack.c.h.bf16 %v322_v57  ;;  %p336_p3 = por %p335_p2, %p334_p1 }
  0x15   :  { %v187_v24 = vadd.f32 %v171_v16, %v93_v15  ;;  %v172_v25 = vadd.f32 %v422_v12, %v149_v17  ;;  %v72_v26 = vmul.f32 %v267_v18, %v397_v1  ;;  %v270_v27 = vunpack.c.l.bf16 %v316_v14 }
  0x16   :  { %217 = vst [vmem:[#allocation2 + $0x28] sm:$0xff] %v201_v20  ;;  %v202_v28 = vmax.f32 %v186_v21, 0.0  ;;  %v150_v29 = vmul.f32 %v299_v23, %v405_v4  ;;  %v302_v30 = vunpack.c.l.bf16 %v323_v19  ;;  %v271_v31 = vunpack.c.h.bf16 %v316_v14  ;;  %p337_p4 = pnand %p336_p3, %p330_p0 }
  0x17   :  { %v203_v34 = vmax.f32 %v187_v24, 0.0  ;;  %v188_v35 = vadd.f32 %v172_v25, %v94_v22  ;;  %v95_v36 = vadd.f32 %v410_v6, %v72_v26  ;;  %v73_v37 = vmul.f32 %v270_v27, %v397_v1 }
  0x18   :  { %218 = vst [vmem:[#allocation2 + $0x30] sm:$0xff] %v202_v28  ;;  %v173_v38 = vadd.f32 %v422_v12, %v150_v29  ;;  %v151_v39 = vmul.f32 %v302_v30, %v405_v4  ;;  %v74_v40 = vmul.f32 %v271_v31, %v397_v1  ;;  %v303_v41 = vunpack.c.h.bf16 %v323_v19 }
  0x19   :  { %219 = vst [vmem:[#allocation2 + $0x38] sm:$0xff] %v203_v34  ;;  %v204_v42 = vmax.f32 %v188_v35, 0.0  ;;  %v96_v43 = vadd.f32 %v410_v6, %v73_v37  ;;  %v274_v44 = vunpack.c.l.bf16 %v317_v32  ;;  %v306_v45 = vunpack.c.l.bf16 %v324_v33 }
  0x1a   :  { %v189_v47 = vadd.f32 %v173_v38, %v95_v36  ;;  %v174_v48 = vadd.f32 %v422_v12, %v151_v39  ;;  %v97_v49 = vadd.f32 %v410_v6, %v74_v40  ;;  %v152_v50 = vmul.f32 %v303_v41, %v405_v4 }
  0x1b   :  { %220 = vst [vmem:[#allocation2 + $0x40] sm:$0xff] %v204_v42  ;;  %v75_v51 = vmul.f32 %v274_v44, %v397_v1  ;;  %v153_v52 = vmul.f32 %v306_v45, %v405_v4  ;;  %v275_v53 = vunpack.c.h.bf16 %v317_v32  ;;  %v307_v54 = vunpack.c.h.bf16 %v324_v33 }
  0x1c   :  { %v205_v56 = vmax.f32 %v189_v47, 0.0  ;;  %v190_v57 = vadd.f32 %v174_v48, %v96_v43  ;;  %v175_v58 = vadd.f32 %v422_v12, %v152_v50  ;;  %v278_v59 = vunpack.c.l.bf16 %v318_v46 }
  0x1d   :  { %v98_v60 = vadd.f32 %v410_v6, %v75_v51  ;;  %v176_v61 = vadd.f32 %v422_v12, %v153_v52  ;;  %v76_v62 = vmul.f32 %v275_v53, %v397_v1  ;;  %v154_v63 = vmul.f32 %v307_v54, %v405_v4 }
  0x1e   :  { %221 = vst [vmem:[#allocation2 + $0x48] sm:$0xff] %v205_v56  ;;  %v206_v0 = vmax.f32 %v190_v57, 0.0  ;;  %v191_v2 = vadd.f32 %v175_v58, %v97_v49  ;;  %v77_v3 = vmul.f32 %v278_v59, %v397_v1  ;;  %v310_v5 = vunpack.c.l.bf16 %v325_v55 }
  0x1f   :  { %v192_v7 = vadd.f32 %v176_v61, %v98_v60  ;;  %v99_v8 = vadd.f32 %v410_v6, %v76_v62  ;;  %v177_v9 = vadd.f32 %v422_v12, %v154_v63  ;;  %v279_v10 = vunpack.c.h.bf16 %v318_v46 }
  0x20   :  { %222 = vst [vmem:[#allocation2 + $0x50] sm:$0xff] %v206_v0  ;;  %v207_v11 = vmax.f32 %v191_v2, 0.0  ;;  %v100_v13 = vadd.f32 %v410_v6, %v77_v3  ;;  %v155_v14 = vmul.f32 %v310_v5, %v405_v4  ;;  %v311_v15 = vunpack.c.h.bf16 %v325_v55 }
  0x21   :  { %v208_v16 = vmax.f32 %v192_v7, 0.0  ;;  %v193_v17 = vadd.f32 %v177_v9, %v99_v8  ;;  %v78_v18 = vmul.f32 %v279_v10, %v397_v1 }
  0x22   :  { %223 = vst [vmem:[#allocation2 + $0x58] sm:$0xff] %v207_v11  ;;  %v178_v19 = vadd.f32 %v422_v12, %v155_v14  ;;  %v156_v20 = vmul.f32 %v311_v15, %v405_v4 }
  0x23   :  { %224 = vst [vmem:[#allocation2 + $0x60] sm:$0xff] %v208_v16  ;;  %v209_v21 = vmax.f32 %v193_v17, 0.0  ;;  %v101_v22 = vadd.f32 %v410_v6, %v78_v18 }
  0x24   :  { %v194_v23 = vadd.f32 %v178_v19, %v100_v13  ;;  %v179_v24 = vadd.f32 %v422_v12, %v156_v20 }
  0x25   :  { %225 = vst [vmem:[#allocation2 + $0x68] sm:$0xff] %v209_v21 }
  0x26   :  { %v210_v25 = vmax.f32 %v194_v23, 0.0  ;;  %v195_v26 = vadd.f32 %v179_v24, %v101_v22 }
  0x28   :  { %226 = vst [vmem:[#allocation2 + $0x70] sm:$0xff] %v210_v25  ;;  %v211_v1 = vmax.f32 %v195_v26, 0.0 }
  0x2a   :  { %227 = vst [vmem:[#allocation2 + $0x78] sm:$0xff] %v211_v1 }
  0x2b   :  { %340 = shalt.err (!%p337_p4)
}
  0x2c   :  { %s341_s10 = scalar_lea.hbm %s541_s6, 2048 }
  0x2d   :  { %p342_p5 = scmp.ne.s32.totalorder %s541_s6, %s341_s10  ;;  %p345_p6 = scmp.lt.u32.totalorder %s341_s10, %s541_s6 }
  0x2f   :  { %p347_p7 = pnand %p345_p6, %p342_p5 }
  0x31   :  { %350 = shalt.err (!%p347_p7)
}
  0x32   :  { %s354_s5 = smov 128   ;;  %s355_s14 = smov 8  }
  0x33   :  { %239 = dma.vmem_to_hbm [thread:$0]  %s234_s3, 2048, %s541_s6, [#allocation3], %s354_s5, %s354_s5, %s355_s14  }
  0x34   :  { %351 = dma.done.wait [#allocation3], 2048  }
  0x35   :  { %352 = vsyncadd [#allocation3], 4294965248 }
  0x36   :  { %243 = vsyncpa [#allocation3], 1 }

// kernel: bottleneck_block.5
= control target key start
LH: loop header
LB: loop body
LE: loop exit
PB: predicated region body
PF: predicated region fallthrough
CT: control target
= control target key end

     0   :  { %s3450_s18 = smov 0   ;;  %s4430_s0 = inlined_call_operand.vmem [shape: bf16[2,16,8,256], index: 0, kind: input, shape index: {}]   ;;  %s4431_s1 = inlined_call_operand.vmem [shape: bf16[1152,128], index: 1, kind: input, shape index: {}]   ;;  %s4432_s2 = inlined_call_operand.vmem [shape: f32[1,1,256], index: 2, kind: input, shape index: {}]   ;;  %s4433_s3 = inlined_call_operand.vmem [shape: f32[1,1,256], index: 3, kind: input, shape index: {}]   ;;  %s4434_s4 = inlined_call_operand.vmem [shape: bf16[2,64,128], index: 4, kind: output, shape index: {0}]   ;;  %s4435_s5 = inlined_call_operand.vmem [shape: f32[2,2,128], index: 5, kind: output, shape index: {1}]  }
   0x1 LB: > { %s2925_s19 = sadd.s32 4294967295, %s3417_s18   ;;  %p2929_p0 = scmp.ge.s32.totalorder %s3417_s18, 1  ;;  %s3417_s18 = sphi %s3450_s18, %s16_s18  }
   0x2   : > { %p190_p1 = scmp.lt.s32.totalorder %s3417_s18, 3 }
   0x4   : > { %p191_p2 = pnand %p2929_p0, %p190_p1 }
   0x6   : > { %194 = sbr.rel (%p191_p2) target bundleno = 484 (0x1e4), region = 36 }
   0xd   : > { %v3339_v0 = vld [vmem:[%s4431_s1 + $0x40] sm:$0xff]   ;;  %v3343_v4 = vld [vmem:[%s4431_s1 + $0x48] sm:$0xff]   ;;  %v3347_v8 = vld [vmem:[%s4431_s1 + $0x50] sm:$0xff]   ;;  %v3419_v12 = vmov 0   ;;  %p222_p3 = scmp.lt.s32.totalorder %s2925_s19, 1  ;;  %v287_v23 = vlaneseq  ;;  %vm446_vm0 = vcmask 1040384  }
   0xe   : > { %v3340_v1 = vld [vmem:[%s4431_s1 + $0xc0] sm:$0xff]   ;;  %3118 = vmatprep.subr.bf16.mxu0 %v3339_v0  ;;  %v3344_v5 = vld [vmem:[%s4431_s1 + $0xc8] sm:$0xff]   ;;  %v3348_v9 = vld [vmem:[%s4431_s1 + $0xd0] sm:$0xff]   ;;  %437 = vst [vmem:[#allocation2] sm:$0xff] %v3419_v12  ;;  %vm449_vm1 = vcmask 1044484   ;;  %vm819_vm9 = vcmask 1043456  }
   0xf   : > { %v3341_v2 = vld [vmem:[%s4431_s1] sm:$0xff]   ;;  %3158 = vmatprep.subr.bf16.mxu1 %v3340_v1  ;;  %v3345_v6 = vld [vmem:[%s4431_s1 + $0x8] sm:$0xff]   ;;  %v3349_v10 = vld [vmem:[%s4431_s1 + $0x10] sm:$0xff]   ;;  %438 = vst [vmem:[#allocation2 + $0x8] sm:$0x11] %v3419_v12  ;;  %s4472_s19 = smov (!%p222_p3, %s2925_s19), 1 }
  0x10   : > { %v3342_v3 = vld [vmem:[%s4431_s1 + $0x80] sm:$0xff]   ;;  %3119 = vmatpush3.bf16.msra.mxu0 %v3341_v2  ;;  %v3346_v7 = vld [vmem:[%s4431_s1 + $0x88] sm:$0xff]   ;;  %v3350_v11 = vld [vmem:[%s4431_s1 + $0x90] sm:$0xff]   ;;  %439 = vst [vmem:[#allocation2 + $0x10] sm:$0xff] %v3419_v12  ;;  %v288_v28 = vshrl.u32 %v287_v23, 7  ;;  %s3069_s7 = sshll.u32 %s4472_s19, 7 }
  0x11   : > { %3159 = vmatpush3.bf16.msra.mxu1 %v3342_v3  ;;  %3120 = vmatprep.subr.bf16.mxu0 %v3343_v4  ;;  %440 = vst [vmem:[#allocation2 + $0x18] sm:$0x11] %v3419_v12  ;;  %442 = vst [vmem:[#allocation2 + $0x120] sm:$0xff] %v3419_v12  ;;  %v3351_v13 = vld [vmem:[%s4431_s1 + $0x58] sm:$0xff]   ;;  %v3355_v17 = vld [vmem:[%s4431_s1 + $0x60] sm:$0xff]   ;;  %s3564_s16 = scalar_lea.vmem %s4430_s0, %s3069_s7  ;;  %vm821_vm10 = vcmask 1047556  }
  0x12   : > { %3160 = vmatprep.subr.bf16.mxu1 %v3344_v5  ;;  %443 = vst [vmem:[#allocation2 + $0x128] sm:$0x11] %v3419_v12  ;;  %444 = vst [vmem:[#allocation2 + $0x130] sm:$0xff] %v3419_v12  ;;  %v3352_v14 = vld [vmem:[%s4431_s1 + $0xd8] sm:$0xff]   ;;  %v3356_v18 = vld [vmem:[%s4431_s1 + $0xe0] sm:$0xff]   ;;  %v289_v33 = vsub.s32 0, %v288_v28 }
  0x13   : > { %445 = vst [vmem:[#allocation2 + $0x138] sm:$0x11] %v3419_v12  ;;  %v3353_v15 = vld [vmem:[%s4431_s1 + $0x18] sm:$0xff]   ;;  %v3357_v19 = vld [vmem:[%s4431_s1 + $0x20] sm:$0xff]   ;;  %v3359_v21 = vld [vmem:[%s4431_s1 + $0x68] sm:$0xff]   ;;  %v293_v35 = vsub.s32 1, %v288_v28 }
  0x14   : > { %3121 = vmatpush3.bf16.msra.mxu0 %v3345_v6  ;;  %v3354_v16 = vld [vmem:[%s4431_s1 + $0x98] sm:$0xff]   ;;  %v3358_v20 = vld [vmem:[%s4431_s1 + $0xa0] sm:$0xff]   ;;  %v3360_v22 = vld [vmem:[%s4431_s1 + $0xe8] sm:$0xff]   ;;  %vm447_vm2 = vsmask.f32 256  ;;  %s3070_s11 = sshll.u32 %s4472_s19, 5 }
  0x15   : > { %3161 = vmatpush3.bf16.msra.mxu1 %v3346_v7  ;;  %3122 = vmatprep.subr.bf16.mxu0 %v3347_v8  ;;  %v3361_v24 = vld [vmem:[%s4431_s1 + $0x28] sm:$0xff]   ;;  %v3363_v26 = vld [vmem:[%s4431_s1 + $0x70] sm:$0xff]   ;;  %v3367_v31 = vld [vmem:[%s4431_s1 + $0x78] sm:$0xff]   ;;  %vm450_vm4 = vsmask.f32 4352  ;;  %s231_s14 = scalar_lea.vmem %s4434_s4, %s3070_s11  ;;  %s2934_s15 = sshll.u32 %s4472_s19, 1 }
  0x16   : > { %3162 = vmatprep.subr.bf16.mxu1 %v3348_v9  ;;  %v3362_v25 = vld [vmem:[%s4431_s1 + $0xa8] sm:$0xff]   ;;  %v3364_v27 = vld [vmem:[%s4431_s1 + $0xf0] sm:$0xff]   ;;  %v3368_v32 = vld [vmem:[%s4431_s1 + $0xf8] sm:$0xff]   ;;  %vm513_vm5 = vsmask.f32 7938  ;;  %s235_s21 = scalar_lea.vmem %s4435_s5, %s2934_s15 }
  0x17   : > { %v3365_v29 = vld [vmem:[%s4431_s1 + $0x30] sm:$0xff]   ;;  %v3369_v34 = vld [vmem:[%s4431_s1 + $0x38] sm:$0xff]   ;;  %v237_v37 = vld [vmem:[%s3564_s16] sm:$0xff]  ;;  %vm515_vm6 = vsmask.f32 7954 }
  0x18   : > { %3123 = vmatpush3.bf16.msra.mxu0 %v3349_v10  ;;  %v3366_v30 = vld [vmem:[%s4431_s1 + $0xb0] sm:$0xff]   ;;  %v3370_v36 = vld [vmem:[%s4431_s1 + $0xb8] sm:$0xff]   ;;  %v285_v39 = vld [vmem:[%s4432_s2] sm:$0x3]  ;;  %v253_v40 = vunpack.c.l.bf16 %v237_v37  ;;  %v254_v41 = vunpack.c.h.bf16 %v237_v37 }
  0x19   : > { %3163 = vmatpush3.bf16.msra.mxu1 %v3350_v11  ;;  %3124 = vmatprep.subr.bf16.mxu0 %v3351_v13  ;;  %v239_v38 = vld [vmem:[%s3564_s16 + $0x10] sm:$0xff]  ;;  %v329_v44 = vld [vmem:[%s4433_s3] sm:$0x3]  ;;  %v3574_v45 = vrot.slane %v285_v39, %v289_v33  ;;  %v3576_v46 = vrot.slane %v285_v39, %v293_v35  ;;  %vm448_vm3 = vmand %vm446_vm0, %vm447_vm2  ;;  %vm946_vm2 = vsmask.f32 7440 }
  0x1a   : > { %3164 = vmatprep.subr.bf16.mxu1 %v3352_v14  ;;  %v257_v42 = vunpack.c.l.bf16 %v239_v38  ;;  %v258_v43 = vunpack.c.h.bf16 %v239_v38  ;;  %v3578_v47 = vrot.slane %v329_v44, %v289_v33  ;;  %v3580_v48 = vrot.slane %v329_v44, %v293_v35  ;;  %v459_v49 = vld [vmem:[#allocation2 + $0x20] sm:$0x11]  ;;  %v238_v50 = vld [vmem:[%s3564_s16 + $0x8] sm:$0xff]  ;;  %vm451_vm7 = vmand %vm449_vm1, %vm450_vm4 }
  0x1b   : > { %v255_v51 = vunpack.c.l.bf16 %v238_v50  ;;  %v297_v52 = vmul.f32 %v3574_v45, %v253_v40  ;;  %v298_v53 = vmul.f32 %v3576_v46, %v254_v41  ;;  %v465_v56 = vld [vmem:[#allocation2 + $0x40] sm:$0x11]  ;;  %vm3589_vm8 = vmor %vm451_vm7, %vm448_vm3  ;;  %v256_v59 = vunpack.c.h.bf16 %v238_v50  ;;  %v456_v61 = vld [vmem:[#allocation2 + $0x10] sm:$0x11] }
  0x1c   : > { %3125 = vmatpush3.bf16.msra.mxu0 %v3353_v15  ;;  %v301_v54 = vmul.f32 %v3574_v45, %v257_v42  ;;  %v302_v55 = vmul.f32 %v3576_v46, %v258_v43  ;;  %v453_v57 = vld [vmem:[#allocation2] sm:$0x11]  ;;  %v462_v62 = vld [vmem:[#allocation2 + $0x30] sm:$0x11]  ;;  %vm3600_vm11 = vmand %vm446_vm0, %vm513_vm5  ;;  %v460_v6 = vsel %vm3589_vm8, 0, %v459_v49  ;;  %v466_v7 = vsel %vm3589_vm8, 0, %v465_v56 }
  0x1d   : > { %3165 = vmatpush3.bf16.msra.mxu1 %v3354_v16  ;;  %3126 = vmatprep.subr.bf16.mxu0 %v3355_v17  ;;  %v299_v60 = vmul.f32 %v3574_v45, %v255_v51  ;;  %v341_v63 = vadd.f32 %v3578_v47, %v297_v52  ;;  %v342_v0 = vadd.f32 %v3580_v48, %v298_v53  ;;  %v507_v4 = vld [vmem:[#allocation2 + $0x120] sm:$0x11]  ;;  %v510_v5 = vld [vmem:[#allocation2 + $0x130] sm:$0x11]  ;;  %vm3610_vm12 = vmand %vm449_vm1, %vm515_vm6  ;;  %v457_v23 = vsel %vm3589_vm8, 0, %v456_v61 }
  0x1e   : > { %3166 = vmatprep.subr.bf16.mxu1 %v3356_v18  ;;  %v345_v1 = vadd.f32 %v3578_v47, %v301_v54  ;;  %v346_v2 = vadd.f32 %v3580_v48, %v302_v55  ;;  %v300_v9 = vmul.f32 %v3576_v46, %v256_v59  ;;  %v518_v11 = vld [vmem:[#allocation2 + $0x8] sm:$0x11]  ;;  %v521_v12 = vld [vmem:[#allocation2 + $0x18] sm:$0x11]  ;;  %461 = vst [vmem:[#allocation2 + $0x20] sm:$0x11] %v460_v6  ;;  %vm3628_vm13 = vmor %vm3610_vm12, %vm3600_vm11 }
  0x1f   : > { %v343_v10 = vadd.f32 %v3578_v47, %v299_v60  ;;  %v373_v13 = vmax.f32 %v341_v63, 0.0  ;;  %v374_v14 = vmax.f32 %v342_v0, 0.0  ;;  %467 = vst [vmem:[#allocation2 + $0x40] sm:$0x11] %v466_v7  ;;  %v527_v17 = vld [vmem:[#allocation2 + $0x38] sm:$0x11]  ;;  %vm3647_vm14 = vmand %vm819_vm9, %vm513_vm5 }
  0x20   : > { %3127 = vmatpush3.bf16.msra.mxu0 %v3357_v19  ;;  %v377_v15 = vmax.f32 %v345_v1, 0.0  ;;  %v378_v16 = vmax.f32 %v346_v2, 0.0  ;;  %v572_v18 = vld [vmem:[#allocation2 + $0x128] sm:$0x11]  ;;  %v575_v19 = vld [vmem:[#allocation2 + $0x138] sm:$0x11]  ;;  %vm822_vm15 = vmand %vm821_vm10, %vm515_vm6 }
  0x21   : > { %3167 = vmatpush3.bf16.msra.mxu1 %v3358_v20  ;;  %3128 = vmatprep.subr.bf16.mxu0 %v3359_v21  ;;  %v344_v20 = vadd.f32 %v3580_v48, %v300_v9  ;;  %v375_v21 = vmax.f32 %v343_v10, 0.0  ;;  %458 = vst [vmem:[#allocation2 + $0x10] sm:$0x11] %v457_v23  ;;  %v463_v28 = vsel %vm3589_vm8, 0, %v462_v62  ;;  %v522_v33 = vsel %vm3628_vm13, 0, %v521_v12  ;;  %v3372_v38 = vld [vmem:[%s4431_s1 + $0x1c0] sm:$0xff]   ;;  %vm3667_vm3 = vmor %vm822_vm15, %vm3647_vm14 }
  0x22   : > { %3168 = vmatprep.subr.bf16.mxu1 %v3360_v22  ;;  %v454_v22 = vsel %vm3589_vm8, 0, %v453_v57  ;;  %464 = vst [vmem:[#allocation2 + $0x30] sm:$0x11] %v463_v28  ;;  %523 = vst [vmem:[#allocation2 + $0x18] sm:$0x11] %v522_v33  ;;  %v528_v40 = vsel %vm3628_vm13, 0, %v527_v17 }
  0x23   : > { %455 = vst [vmem:[#allocation2] sm:$0x11] %v454_v22  ;;  %v573_v41 = vsel %vm3628_vm13, 0, %v572_v18  ;;  %v576_v42 = vsel %vm3628_vm13, 0, %v575_v19  ;;  %529 = vst [vmem:[#allocation2 + $0x38] sm:$0x11] %v528_v40 }
  0x24   : > { %3129 = vmatpush3.bf16.msra.mxu0 %v3361_v24  ;;  %v3371_v24 = vld [vmem:[%s4431_s1 + $0x140] sm:$0xff]   ;;  %574 = vst [vmem:[#allocation2 + $0x128] sm:$0x11] %v573_v41  ;;  %577 = vst [vmem:[#allocation2 + $0x138] sm:$0x11] %v576_v42  ;;  %v4449_v56 = vmov 0 }
  0x25   : > { %3169 = vmatpush3.bf16.msra.mxu1 %v3362_v25  ;;  %3130 = vmatprep.subr.bf16.mxu0 %v3363_v26  ;;  %v3071_v26 = vpack.c.bf16 %v374_v14, %v373_v13  ;;  %v824_v50 = vld [vmem:[#allocation2 + $0x20] sm:$0xff]  ;;  %vm945_vm1 = vsmask.f32 3328  ;;  %v4450_v56 = vsel %vm3667_vm3, 4294967295, %v4449_v56 }
  0x26   : > { %3170 = vmatprep.subr.bf16.mxu1 %v3364_v27  ;;  %v3073_v27 = vpack.c.bf16 %v378_v16, %v377_v15  ;;  %v836_v51 = vld [vmem:[#allocation2 + $0x40] sm:$0xff]  ;;  %4451 = vst [vmem:[#allocation3_spill] sm:$0xff] %v4450_v56  ;;  %vm3687_vm4 = vmor %vm945_vm1, %vm946_vm2 }
  0x27   : > { %v662_v35 = vshll.u32 %v3071_v26, 16  ;;  %v241_v23 = vld [vmem:[%s3564_s16 + $0x20] sm:$0xff] }
  0x28   : > { %3131 = vmatpush3.bf16.msra.mxu0 %v3365_v29  ;;  %v508_v29 = vsel %vm3589_vm8, 0, %v507_v4  ;;  %v678_v37 = vshll.u32 %v3073_v27, 16  ;;  %v929_v59 = vld [vmem:[#allocation2 + $0x10] sm:$0xf]  ;;  %v3671_v60 = vld [vmem:[#allocation2 + $0x14] sm:$0xf]  ;;  %v261_v28 = vunpack.c.l.bf16 %v241_v23 }
  0x29   : > { %3171 = vmatpush3.bf16.msra.mxu1 %v3366_v30  ;;  %3132 = vmatprep.subr.bf16.mxu0 %v3367_v31  ;;  %v376_v30 = vmax.f32 %v344_v20, 0.0  ;;  %509 = vst [vmem:[#allocation2 + $0x120] sm:$0x11] %v508_v29  ;;  %v511_v31 = vsel %vm3589_vm8, 0, %v510_v5  ;;  %v830_v63 = vld [vmem:[#allocation2 + $0x30] sm:$0xff]  ;;  %v949_v0 = vshrl.u32 %v929_v59, 16  ;;  %v262_v29 = vunpack.c.h.bf16 %v241_v23 }
  0x2a   : > { %3172 = vmatprep.subr.bf16.mxu1 %v3368_v32  ;;  %v519_v32 = vsel %vm3628_vm13, 0, %v518_v11  ;;  %512 = vst [vmem:[#allocation2 + $0x130] sm:$0x11] %v511_v31  ;;  %v952_v1 = vshll.u32 %v929_v59, 16  ;;  %v930_v4 = vld [vmem:[#allocation2 + $0x18] sm:$0x1]  ;;  %v305_v42 = vmul.f32 %v3574_v45, %v261_v28 }
  0x2b   : > { %520 = vst [vmem:[#allocation2 + $0x8] sm:$0x11] %v519_v32  ;;  %v3072_v43 = vpack.c.bf16 %v376_v30, %v375_v21  ;;  %v1060_v5 = vld [vmem:[#allocation2 + $0x1c] sm:$0x1]  ;;  %v1069_v6 = vshrl.u32 %v3671_v60, 16  ;;  %v951_v7 = vrot.slane %v949_v0, 4 }
  0x2c   : > { %3133 = vmatpush3.bf16.msra.mxu0 %v3369_v34  ;;  %v659_v34 = vshrl.u32 %v3071_v26, 16  ;;  %v954_v8 = vrot.slane %v952_v1, 5  ;;  %v958_v9 = vshll.u32 %v930_v4, 16  ;;  %v1072_v10 = vshll.u32 %v3671_v60, 16  ;;  %v833_v12 = vld [vmem:[#allocation2 + $0x38] sm:$0x11] }
  0x2d   : > { %3173 = vmatpush3.bf16.msra.mxu1 %v3370_v36  ;;  %3198 = vmatprep.subr.bf16.mxu0 %v3371_v24  ;;  %v675_v36 = vshrl.u32 %v3073_v27, 16  ;;  %v667_v52 = vshrl.u32 %v3072_v43, 16  ;;  %v670_v53 = vshll.u32 %v3072_v43, 16  ;;  %v1071_v13 = vrot.slane %v1069_v6, 4  ;;  %v243_v27 = vld [vmem:[%s3564_s16 + $0x30] sm:$0xff] }
  0x2e   : > { %v3657_v44 = vrot.slane %v659_v34, 7  ;;  %3238 = vmatprep.subr.bf16.mxu1 %v3372_v38  ;;  %v1078_v14 = vshll.u32 %v1060_v5, 16  ;;  %v955_v16 = vor.u32 %v954_v8, %v951_v7  ;;  %v3683_v17 = vrot.slane %v958_v9, 5  ;;  %v471_v5 = vld [vmem:[#allocation2 + $0x60] sm:$0x11] }
  0x2f   : > { %v3659_v49 = vrot.slane %v675_v36, 7  ;;  %v669_v57 = vrot.slane %v667_v52, 7  ;;  %v1074_v18 = vrot.slane %v1072_v10, 5  ;;  %v265_v34 = vunpack.c.l.bf16 %v243_v27  ;;  %v477_v6 = vld [vmem:[#allocation2 + $0x80] sm:$0x11] }
  0x30   : > { %v664_v54 = vor.u32 %v662_v35, %v3657_v44  ;;  %v3691_v20 = vrot.slane %v955_v16, 4  ;;  %v3693_v22 = vrot.slane %v1078_v14, 5  ;;  %v266_v35 = vunpack.c.h.bf16 %v243_v27 }
  0x31   : > { %v680_v55 = vor.u32 %v678_v37, %v3659_v49  ;;  %v672_v2 = vor.u32 %v670_v53, %v669_v57  ;;  %v673_v3 = vrot.slane %v669_v57, 4  ;;  %v1075_v21 = vor.u32 %v1074_v18, %v1071_v13 }
  0x32   : > { %v825_v61 = vsel %vm3667_vm3, %v664_v54, %v824_v50  ;;  %v961_v32 = vsel %vm3687_vm4, %v3691_v20, %v3683_v17  ;;  %v306_v43 = vmul.f32 %v3576_v46, %v262_v29  ;;  %v349_v23 = vadd.f32 %v3578_v47, %v305_v42  ;;  %v3377_v20 = vld [vmem:[%s4431_s1 + $0x108] sm:$0xff]  }
  0x33   : > { %v837_v62 = vsel %vm3667_vm3, %v680_v55, %v836_v51  ;;  %826 = vst [vmem:[#allocation2 + $0x20] sm:$0xff] %v825_v61  ;;  %v831_v11 = vsel %vm3667_vm3, %v672_v2, %v830_v63  ;;  %v834_v15 = vsel %vm3589_vm8, %v673_v3, %v833_v12  ;;  %v3703_v33 = vrot.slane %v1075_v21, 4 }
  0x34   : > { %838 = vst [vmem:[#allocation2 + $0x40] sm:$0xff] %v837_v62  ;;  %832 = vst [vmem:[#allocation2 + $0x30] sm:$0xff] %v831_v11  ;;  %v309_v62 = vmul.f32 %v3574_v45, %v265_v34  ;;  %v310_v63 = vmul.f32 %v3576_v46, %v266_v35  ;;  %v350_v27 = vadd.f32 %v3580_v48, %v306_v43  ;;  %v472_v35 = vsel %vm3589_vm8, 0, %v471_v5 }
  0x35   : > { %835 = vst [vmem:[#allocation2 + $0x38] sm:$0x11] %v834_v15  ;;  %v1081_v41 = vsel %vm3687_vm4, %v3703_v33, %v3693_v22  ;;  %473 = vst [vmem:[#allocation2 + $0x60] sm:$0x11] %v472_v35  ;;  %v533_v33 = vld [vmem:[#allocation2 + $0x58] sm:$0x11] }
  0x36   : > { %v353_v28 = vadd.f32 %v3578_v47, %v309_v62  ;;  %v354_v29 = vadd.f32 %v3580_v48, %v310_v63  ;;  %v468_v63 = vld [vmem:[#allocation2 + $0x50] sm:$0x11] }
  0x38   : > { %v386_v42 = vmax.f32 %v354_v29, 0.0 }
  0x3a   : > { %v1180_v30 = vld [vmem:[#allocation2 + $0x24] sm:$0xf]  ;;  %v1188_v24 = vld [vmem:[#allocation2 + $0x20] sm:$0xf] }
  0x3b   : > { %v1181_v31 = vld [vmem:[#allocation2 + $0x44] sm:$0xf]  ;;  %v1325_v36 = vshrl.u32 %v1180_v30, 16  ;;  %v1328_v37 = vshll.u32 %v1180_v30, 16  ;;  %v931_v54 = vld [vmem:[#allocation2 + $0x30] sm:$0xf] }
  0x3c   : > { %v1339_v38 = vshrl.u32 %v1181_v31, 16  ;;  %v1342_v39 = vshll.u32 %v1181_v31, 16  ;;  %v2963_v40 = vcombine.low %v1180_v30, %v1181_v31  ;;  %v932_v55 = vld [vmem:[#allocation2 + $0x38] sm:$0x1]  ;;  %v963_v57 = vshrl.u32 %v931_v54, 16 }
  0x3d   : > { %v1327_v50 = vrot.slane %v1325_v36, 4  ;;  %v1330_v51 = vrot.slane %v1328_v37, 5  ;;  %v966_v59 = vshll.u32 %v931_v54, 16  ;;  %v922_v61 = vld [vmem:[#allocation2 + $0x34] sm:$0xf]  ;;  %v972_v2 = vshll.u32 %v932_v55, 16 }
  0x3e   : > { %v1341_v52 = vrot.slane %v1339_v38, 4  ;;  %v1344_v53 = vrot.slane %v1342_v39, 5  ;;  %2534 = vmatprep.mubr.bf16.mxu1 %v2963_v40  ;;  %v1061_v3 = vld [vmem:[#allocation2 + $0x3c] sm:$0x1]  ;;  %v1083_v4 = vshrl.u32 %v922_v61, 16  ;;  %v965_v7 = vrot.slane %v963_v57, 4 }
  0x3f   : > { %v1331_v0 = vor.u32 %v1330_v51, %v1327_v50  ;;  %v968_v8 = vrot.slane %v966_v59, 5  ;;  %v1086_v9 = vshll.u32 %v922_v61, 16  ;;  %v1092_v10 = vshll.u32 %v1061_v3, 16  ;;  %v240_v30 = vld [vmem:[%s3564_s16 + $0x18] sm:$0xff]  ;;  %v242_v37 = vld [vmem:[%s3564_s16 + $0x28] sm:$0xff]  ;;  %v3374_v51 = vld [vmem:[%s4431_s1 + $0x180] sm:$0xff]  }
  0x40   : > { %v1345_v1 = vor.u32 %v1344_v53, %v1341_v52  ;;  %v974_v13 = vrot.slane %v972_v2, 5  ;;  %v1085_v14 = vrot.slane %v1083_v4, 4  ;;  %v2951_v21 = vcombine.low %v3671_v60, %v922_v61  ;;  %v3373_v60 = vld [vmem:[%s4431_s1 + $0x100] sm:$0xff]   ;;  %v3375_v52 = vld [vmem:[%s4431_s1 + $0x148] sm:$0xff]   ;;  %v474_v4 = vld [vmem:[#allocation2 + $0x70] sm:$0x11] }
  0x41   : > { %v3713_v11 = vrot.slane %v1331_v0, 4  ;;  %v969_v15 = vor.u32 %v968_v8, %v965_v7  ;;  %v1088_v16 = vrot.slane %v1086_v9, 5  ;;  %v1094_v18 = vrot.slane %v1092_v10, 5  ;;  %v3376_v57 = vld [vmem:[%s4431_s1 + $0x1c8] sm:$0xff]  }
  0x42   : > { %v3715_v12 = vrot.slane %v1345_v1, 4  ;;  %v478_v36 = vsel %vm3589_vm8, 0, %v477_v6  ;;  %v381_v38 = vmax.f32 %v349_v23, 0.0  ;;  %v382_v39 = vmax.f32 %v350_v27, 0.0  ;;  %v3378_v7 = vld [vmem:[%s4431_s1 + $0x188] sm:$0xff]  }
  0x43   : > { %v970_v31 = vrot.slane %v969_v15, 4  ;;  %v1089_v34 = vor.u32 %v1088_v16, %v1085_v14  ;;  %v385_v40 = vmax.f32 %v353_v28, 0.0  ;;  %479 = vst [vmem:[#allocation2 + $0x80] sm:$0x11] %v478_v36  ;;  %v259_v53 = vunpack.c.l.bf16 %v240_v30  ;;  %v539_v16 = vld [vmem:[#allocation2 + $0x78] sm:$0x11] }
  0x44   : > { %v260_v54 = vunpack.c.h.bf16 %v240_v30  ;;  %v3075_v59 = vpack.c.bf16 %v382_v39, %v381_v38  ;;  %v263_v62 = vunpack.c.l.bf16 %v242_v37  ;;  %v264_v1 = vunpack.c.h.bf16 %v242_v37  ;;  %v3381_v38 = vld [vmem:[%s4431_s1 + $0x110] sm:$0xff]  }
  0x45   : > { %v975_v43 = vsel %vm3687_vm4, %v970_v31, %v974_v13  ;;  %v1090_v50 = vrot.slane %v1089_v34, 4  ;;  %v3077_v61 = vpack.c.bf16 %v386_v42, %v385_v40  ;;  %v303_v2 = vmul.f32 %v3574_v45, %v259_v53  ;;  %v3379_v31 = vld [vmem:[%s4431_s1 + $0x150] sm:$0xff]   ;;  %v483_v53 = vld [vmem:[#allocation2 + $0xa0] sm:$0x11] }
  0x46   : > { %v2955_v55 = vcombine.low %v961_v32, %v975_v43  ;;  %v304_v3 = vmul.f32 %v3576_v46, %v260_v54  ;;  %v691_v32 = vshrl.u32 %v3075_v59, 16  ;;  %v694_v5 = vshll.u32 %v3075_v59, 16  ;;  %v247_v39 = vld [vmem:[%s3564_s16 + $0x50] sm:$0xff]  ;;  %v3384_v59 = vld [vmem:[%s4431_s1 + $0x1d8] sm:$0xff]  }
  0x47   : > { %v1095_v0 = vsel %vm3687_vm4, %v1090_v50, %v1094_v18  ;;  %v707_v6 = vshrl.u32 %v3077_v61, 16  ;;  %v710_v8 = vshll.u32 %v3077_v61, 16  ;;  %v307_v9 = vmul.f32 %v3574_v45, %v263_v62  ;;  %v245_v18 = vld [vmem:[%s3564_s16 + $0x40] sm:$0xff]  ;;  %v3382_v50 = vld [vmem:[%s4431_s1 + $0x190] sm:$0xff]  }
  0x48   : > { %2469 = vmatprep.mubr.bf16.mxu0 %v2955_v55  ;;  %v2959_v17 = vcombine.low %v1081_v41, %v1095_v0  ;;  %v308_v10 = vmul.f32 %v3576_v46, %v264_v1  ;;  %v347_v22 = vadd.f32 %v3578_v47, %v303_v2  ;;  %v3765_v41 = vrot.slane %v691_v32, 7  ;;  %v489_v62 = vld [vmem:[#allocation2 + $0xc0] sm:$0x11] }
  0x49   : > { %2470 = vmatmul.mubr.bf16.vlgmr.msra.gmra.mrb[0].mxu0 %v2951_v21  ;;  %v3767_v13 = vrot.slane %v707_v6, 7  ;;  %v348_v14 = vadd.f32 %v3580_v48, %v304_v3  ;;  %v469_v15 = vsel %vm3589_vm8, 0, %v468_v63  ;;  %v848_v21 = vld [vmem:[#allocation2 + $0x60] sm:$0xff]  ;;  %v351_v27 = vadd.f32 %v3578_v47, %v307_v9 }
  0x4a   : > { %2535 = vmatmul.mubr.bf16.vlgmr.msra.gmra.mrb[0].mxu1 %v2959_v17  ;;  %3199 = vmatpush3.bf16.msra.mxu0 %v3373_v60  ;;  %v860_v23 = vld [vmem:[#allocation2 + $0x80] sm:$0xff]  ;;  %v352_v28 = vadd.f32 %v3580_v48, %v308_v10  ;;  %v379_v29 = vmax.f32 %v347_v22, 0.0  ;;  %470 = vst [vmem:[#allocation2 + $0x50] sm:$0x11] %v469_v15  ;;  %v475_v30 = vsel %vm3589_vm8, 0, %v474_v4  ;;  %v696_v34 = vor.u32 %v694_v5, %v3765_v41  ;;  %v3380_v60 = vld [vmem:[%s4431_s1 + $0x1d0] sm:$0xff]  }
  0x4b   : > { %3239 = vmatpush3.bf16.msra.mxu1 %v3374_v51  ;;  %3200 = vmatprep.subr.bf16.mxu0 %v3375_v52  ;;  %v712_v35 = vor.u32 %v710_v8, %v3767_v13  ;;  %v380_v36 = vmax.f32 %v348_v14, 0.0  ;;  %476 = vst [vmem:[#allocation2 + $0x70] sm:$0x11] %v475_v30  ;;  %v534_v37 = vsel %vm3628_vm13, 0, %v533_v33  ;;  %v383_v40 = vmax.f32 %v351_v27, 0.0  ;;  %v3383_v51 = vld [vmem:[%s4431_s1 + $0x158] sm:$0xff]  }
  0x4c   : > { %3240 = vmatprep.subr.bf16.mxu1 %v3376_v57  ;;  %v384_v42 = vmax.f32 %v352_v28, 0.0  ;;  %535 = vst [vmem:[#allocation2 + $0x58] sm:$0x11] %v534_v37  ;;  %v540_v43 = vsel %vm3628_vm13, 0, %v539_v16  ;;  %v269_v52 = vunpack.c.l.bf16 %v245_v18  ;;  %v849_v54 = vsel %vm3667_vm3, %v696_v34, %v848_v21  ;;  %v3385_v17 = vld [vmem:[%s4431_s1 + $0x118] sm:$0xff]   ;;  %v3387_v16 = vld [vmem:[%s4431_s1 + $0x160] sm:$0xff]  }
  0x4d   : > { %v861_v55 = vsel %vm3667_vm3, %v712_v35, %v860_v23  ;;  %541 = vst [vmem:[#allocation2 + $0x78] sm:$0x11] %v540_v43  ;;  %v3074_v57 = vpack.c.bf16 %v380_v36, %v379_v29  ;;  %v270_v61 = vunpack.c.h.bf16 %v245_v18  ;;  %850 = vst [vmem:[#allocation2 + $0x60] sm:$0xff] %v849_v54  ;;  %v273_v0 = vunpack.c.l.bf16 %v247_v39  ;;  %v3819_v10 = vld [vmem:[%s3564_s16 + $0x38] sm:$0xff]  ;;  %v3388_v18 = vld [vmem:[%s4431_s1 + $0x1e0] sm:$0xff]  }
  0x4e   : > { %3201 = vmatpush3.bf16.msra.mxu0 %v3377_v20  ;;  %862 = vst [vmem:[#allocation2 + $0x80] sm:$0xff] %v861_v55  ;;  %v3076_v63 = vpack.c.bf16 %v384_v42, %v383_v40  ;;  %v274_v1 = vunpack.c.h.bf16 %v247_v39  ;;  %v313_v2 = vmul.f32 %v3574_v45, %v269_v52  ;;  %v484_v32 = vsel %vm3589_vm8, 0, %v483_v53  ;;  %v3389_v36 = vld [vmem:[%s4431_s1 + $0x120] sm:$0xff]   ;;  %v246_v55 = vld [vmem:[%s3564_s16 + $0x48] sm:$0xff] }
  0x4f   : > { %3241 = vmatpush3.bf16.msra.mxu1 %v3378_v7  ;;  %3202 = vmatprep.subr.bf16.mxu0 %v3379_v31  ;;  %v683_v3 = vshrl.u32 %v3074_v57, 16  ;;  %v686_v4 = vshll.u32 %v3074_v57, 16  ;;  %v314_v20 = vmul.f32 %v3576_v46, %v270_v61  ;;  %v3386_v7 = vld [vmem:[%s4431_s1 + $0x198] sm:$0xff]   ;;  %v317_v8 = vmul.f32 %v3574_v45, %v273_v0  ;;  %485 = vst [vmem:[#allocation2 + $0xa0] sm:$0x11] %v484_v32  ;;  %v3390_v43 = vld [vmem:[%s4431_s1 + $0x1a0] sm:$0xff]  }
  0x50   : > { %3242 = vmatprep.subr.bf16.mxu1 %v3380_v60  ;;  %v699_v5 = vshrl.u32 %v3076_v63, 16  ;;  %v702_v6 = vshll.u32 %v3076_v63, 16  ;;  %v318_v9 = vmul.f32 %v3576_v46, %v274_v1  ;;  %v357_v33 = vadd.f32 %v3578_v47, %v313_v2  ;;  %v480_v0 = vld [vmem:[#allocation2 + $0x90] sm:$0x11]  ;;  %v3391_v2 = vld [vmem:[%s4431_s1 + $0x168] sm:$0xff]  }
  0x51   : > { %v685_v22 = vrot.slane %v683_v3, 7  ;;  %v358_v14 = vadd.f32 %v3580_v48, %v314_v20  ;;  %v490_v15 = vsel %vm3589_vm8, 0, %v489_v62  ;;  %v842_v23 = vld [vmem:[#allocation2 + $0x50] sm:$0xff]  ;;  %v361_v27 = vadd.f32 %v3578_v47, %v317_v8  ;;  %v3392_v32 = vld [vmem:[%s4431_s1 + $0x1e8] sm:$0xff]  }
  0x52   : > { %3203 = vmatpush3.bf16.msra.mxu0 %v3381_v38  ;;  %v701_v21 = vrot.slane %v699_v5, 7  ;;  %v362_v28 = vadd.f32 %v3580_v48, %v318_v9  ;;  %491 = vst [vmem:[#allocation2 + $0xc0] sm:$0x11] %v490_v15  ;;  %v389_v34 = vmax.f32 %v357_v33, 0.0  ;;  %v854_v38 = vld [vmem:[#allocation2 + $0x70] sm:$0xff]  ;;  %v267_v57 = vunpack.c.l.bf16 %v3819_v10  ;;  %v3394_v15 = vld [vmem:[%s4431_s1 + $0x1a8] sm:$0xff]  }
  0x53   : > { %3243 = vmatpush3.bf16.msra.mxu1 %v3382_v50  ;;  %3204 = vmatprep.subr.bf16.mxu0 %v3383_v51  ;;  %v688_v29 = vor.u32 %v686_v4, %v685_v22  ;;  %v689_v30 = vrot.slane %v685_v22, 4  ;;  %v845_v31 = vld [vmem:[#allocation2 + $0x58] sm:$0x11]  ;;  %v390_v35 = vmax.f32 %v358_v14, 0.0  ;;  %v393_v40 = vmax.f32 %v361_v27, 0.0  ;;  %v3393_v14 = vld [vmem:[%s4431_s1 + $0x128] sm:$0xff]  }
  0x54   : > { %3244 = vmatprep.subr.bf16.mxu1 %v3384_v59  ;;  %v704_v37 = vor.u32 %v702_v6, %v701_v21  ;;  %v705_v60 = vrot.slane %v701_v21, 4  ;;  %v857_v39 = vld [vmem:[#allocation2 + $0x78] sm:$0x11]  ;;  %v394_v42 = vmax.f32 %v362_v28, 0.0  ;;  %v1182_v50 = vld [vmem:[#allocation2 + $0x64] sm:$0xf]  ;;  %v268_v63 = vunpack.c.h.bf16 %v3819_v10 }
  0x55   : > { %v1183_v51 = vld [vmem:[#allocation2 + $0x84] sm:$0xf]  ;;  %v843_v52 = vsel %vm3667_vm3, %v688_v29, %v842_v23  ;;  %v846_v53 = vsel %vm3589_vm8, %v689_v30, %v845_v31  ;;  %v3079_v54 = vpack.c.bf16 %v390_v35, %v389_v34  ;;  %v1353_v59 = vshrl.u32 %v1182_v50, 16  ;;  %v486_v1 = vld [vmem:[#allocation2 + $0xb0] sm:$0x11] }
  0x56   : > { %3205 = vmatpush3.bf16.msra.mxu0 %v3385_v17  ;;  %v1356_v61 = vshll.u32 %v1182_v50, 16  ;;  %v1367_v62 = vshrl.u32 %v1183_v51, 16  ;;  %844 = vst [vmem:[#allocation2 + $0x50] sm:$0xff] %v843_v52  ;;  %847 = vst [vmem:[#allocation2 + $0x58] sm:$0x11] %v846_v53  ;;  %v2964_v3 = vcombine.low %v1182_v50, %v1183_v51  ;;  %v855_v4 = vsel %vm3667_vm3, %v704_v37, %v854_v38  ;;  %v3871_v27 = vld [vmem:[%s3564_s16 + $0x60] sm:$0xff] }
  0x57   : > { %3245 = vmatpush3.bf16.msra.mxu1 %v3386_v7  ;;  %3206 = vmatprep.subr.bf16.mxu0 %v3387_v16  ;;  %v858_v17 = vsel %vm3589_vm8, %v705_v60, %v857_v39  ;;  %v3081_v20 = vpack.c.bf16 %v394_v42, %v393_v40  ;;  %v3856_v5 = vrot.slane %v1353_v59, 4  ;;  %v1370_v8 = vshll.u32 %v1183_v51, 16  ;;  %856 = vst [vmem:[#allocation2 + $0x70] sm:$0xff] %v855_v4  ;;  %v872_v35 = vld [vmem:[#allocation2 + $0xa0] sm:$0xff] }
  0x58   : > { %3246 = vmatprep.subr.bf16.mxu1 %v3388_v18  ;;  %v3858_v6 = vrot.slane %v1356_v61, 5  ;;  %v3860_v7 = vrot.slane %v1367_v62, 4  ;;  %859 = vst [vmem:[#allocation2 + $0x78] sm:$0x11] %v858_v17  ;;  %2542 = vmatprep.mubr.bf16.mxu1 %v2964_v3  ;;  %v723_v9 = vshrl.u32 %v3079_v54, 16  ;;  %v726_v10 = vshll.u32 %v3079_v54, 16 }
  0x59   : > { %v739_v22 = vshrl.u32 %v3081_v20, 16  ;;  %v742_v33 = vshll.u32 %v3081_v20, 16  ;;  %v271_v16 = vunpack.c.l.bf16 %v246_v55  ;;  %v272_v18 = vunpack.c.h.bf16 %v246_v55 }
  0x5a   : > { %3207 = vmatpush3.bf16.msra.mxu0 %v3389_v36  ;;  %v311_v21 = vmul.f32 %v3574_v45, %v267_v57  ;;  %v312_v23 = vmul.f32 %v3576_v46, %v268_v63  ;;  %v3873_v28 = vrot.slane %v723_v9, 7  ;;  %v481_v30 = vsel %vm3589_vm8, 0, %v480_v0  ;;  %v884_v36 = vld [vmem:[#allocation2 + $0xc0] sm:$0xff] }
  0x5b   : > { %3247 = vmatpush3.bf16.msra.mxu1 %v3390_v43  ;;  %3208 = vmatprep.subr.bf16.mxu0 %v3391_v2  ;;  %v3875_v29 = vrot.slane %v739_v22, 7  ;;  %v487_v31 = vsel %vm3589_vm8, 0, %v486_v1  ;;  %v3881_v34 = vrot.slane %v1370_v8, 5  ;;  %v315_v37 = vmul.f32 %v3574_v45, %v271_v16  ;;  %482 = vst [vmem:[#allocation2 + $0x90] sm:$0x11] %v481_v30 }
  0x5c   : > { %3248 = vmatprep.subr.bf16.mxu1 %v3392_v32  ;;  %v316_v60 = vmul.f32 %v3576_v46, %v272_v18  ;;  %v3886_v38 = vadd.f32 %v3578_v47, %v311_v21  ;;  %488 = vst [vmem:[#allocation2 + $0xb0] sm:$0x11] %v487_v31  ;;  %v728_v43 = vor.u32 %v726_v10, %v3873_v28  ;;  %v277_v52 = vunpack.c.l.bf16 %v3871_v27  ;;  %v3395_v21 = vld [vmem:[%s4431_s1 + $0x170] sm:$0xff]  }
  0x5d   : > { %v933_v39 = vld [vmem:[#allocation2 + $0x50] sm:$0xf]  ;;  %v934_v40 = vld [vmem:[#allocation2 + $0x58] sm:$0x1]  ;;  %v3888_v42 = vld [vmem:[#allocation2 + $0x54] sm:$0xf]  ;;  %v744_v50 = vor.u32 %v742_v33, %v3875_v29  ;;  %v3893_v51 = vadd.f32 %v3580_v48, %v312_v23  ;;  %v3904_v2 = vadd.f32 %v3578_v47, %v315_v37  ;;  %v278_v3 = vunpack.c.h.bf16 %v3871_v27 }
  0x5e   : > { %3209 = vmatpush3.bf16.msra.mxu0 %v3393_v14  ;;  %v977_v53 = vshrl.u32 %v933_v39, 16  ;;  %v980_v54 = vshll.u32 %v933_v39, 16  ;;  %v986_v55 = vshll.u32 %v934_v40, 16  ;;  %v1062_v57 = vld [vmem:[#allocation2 + $0x5c] sm:$0x1]  ;;  %v1097_v59 = vshrl.u32 %v3888_v42, 16 }
  0x5f   : > { %3249 = vmatpush3.bf16.msra.mxu1 %v3394_v15  ;;  %v935_v61 = vld [vmem:[#allocation2 + $0x70] sm:$0xf]  ;;  %v936_v62 = vld [vmem:[#allocation2 + $0x78] sm:$0x1]  ;;  %v3897_v63 = vld [vmem:[#allocation2 + $0x74] sm:$0xf]  ;;  %v873_v0 = vsel %vm3667_vm3, %v728_v43, %v872_v35  ;;  %v885_v1 = vsel %vm3667_vm3, %v744_v50, %v884_v36  ;;  %v3908_v32 = vadd.f32 %v3580_v48, %v316_v60  ;;  %3210 = vmatprep.subr.bf16.mxu0 %v3395_v21 }
  0x60   : > { %v979_v4 = vrot.slane %v977_v53, 4  ;;  %v982_v17 = vrot.slane %v980_v54, 5  ;;  %v991_v20 = vshrl.u32 %v935_v61, 16  ;;  %874 = vst [vmem:[#allocation2 + $0xa0] sm:$0xff] %v873_v0  ;;  %886 = vst [vmem:[#allocation2 + $0xc0] sm:$0xff] %v885_v1  ;;  %v994_v8 = vshll.u32 %v935_v61, 16 }
  0x61   : > { %v1000_v9 = vshll.u32 %v936_v62, 16  ;;  %v1063_v10 = vld [vmem:[#allocation2 + $0x7c] sm:$0x1]  ;;  %v1099_v22 = vrot.slane %v1097_v59, 4  ;;  %v1100_v33 = vshll.u32 %v3888_v42, 16  ;;  %v1106_v16 = vshll.u32 %v1062_v57, 16 }
  0x62   : > { %v983_v14 = vor.u32 %v982_v17, %v979_v4  ;;  %v993_v15 = vrot.slane %v991_v20, 4  ;;  %v1111_v18 = vshrl.u32 %v3897_v63, 16  ;;  %v988_v23 = vrot.slane %v986_v55, 5  ;;  %v3917_v54 = vld [vmem:[%s3564_s16 + $0x70] sm:$0xff] }
  0x63   : > { %v996_v30 = vrot.slane %v994_v8, 5  ;;  %v1102_v31 = vrot.slane %v1100_v33, 5  ;;  %v1114_v35 = vshll.u32 %v3897_v63, 16  ;;  %v1002_v37 = vrot.slane %v1000_v9, 5  ;;  %v3396_v57 = vld [vmem:[%s4431_s1 + $0x1f0] sm:$0xff]  }
  0x64   : > { %v984_v36 = vrot.slane %v983_v14, 4  ;;  %v1113_v60 = vrot.slane %v1111_v18, 4  ;;  %v1120_v39 = vshll.u32 %v1063_v10, 16  ;;  %v1108_v50 = vrot.slane %v1106_v16, 5  ;;  %v3397_v0 = vld [vmem:[%s4431_s1 + $0x130] sm:$0xff]   ;;  %3250 = vmatprep.subr.bf16.mxu1 %v3396_v57 }
  0x65   : > { %v997_v40 = vor.u32 %v996_v30, %v993_v15  ;;  %v1103_v43 = vor.u32 %v1102_v31, %v1099_v22  ;;  %v1116_v53 = vrot.slane %v1114_v35, 5  ;;  %v2952_v59 = vcombine.low %v3888_v42, %v3897_v63  ;;  %v545_v10 = vld [vmem:[#allocation2 + $0x98] sm:$0x11]  ;;  %3211 = vmatpush3.bf16.msra.mxu0 %v3397_v0  ;;  %v495_v18 = vld [vmem:[#allocation2 + $0xe0] sm:$0x11]  ;;  %v3398_v21 = vld [vmem:[%s4431_s1 + $0x1b0] sm:$0xff]  }
  0x66   : > { %v1122_v55 = vrot.slane %v1120_v39, 5  ;;  %v387_v61 = vmax.f32 %v3886_v38, 0.0  ;;  %v388_v62 = vmax.f32 %v3893_v51, 0.0  ;;  %v989_v1 = vsel %vm3687_vm4, %v984_v36, %v988_v23  ;;  %v551_v22 = vld [vmem:[#allocation2 + $0xb8] sm:$0x11]  ;;  %3251 = vmatpush3.bf16.msra.mxu1 %v3398_v21  ;;  %v250_v21 = vld [vmem:[%s3564_s16 + $0x68] sm:$0xff] }
  0x67   : > { %v998_v4 = vrot.slane %v997_v40, 4  ;;  %v1104_v17 = vrot.slane %v1103_v43, 4  ;;  %v1117_v20 = vor.u32 %v1116_v53, %v1113_v60  ;;  %v1184_v8 = vld [vmem:[#allocation2 + $0xa4] sm:$0xf]  ;;  %v281_v16 = vunpack.c.l.bf16 %v3917_v54  ;;  %v3399_v36 = vld [vmem:[%s4431_s1 + $0x178] sm:$0xff]  }
  0x68   : > { %v3931_v9 = vld [vmem:[#allocation2 + $0xc4] sm:$0xf]  ;;  %v1381_v42 = vshrl.u32 %v1184_v8, 16  ;;  %v1384_v38 = vshll.u32 %v1184_v8, 16  ;;  %v391_v39 = vmax.f32 %v3904_v2, 0.0  ;;  %v392_v40 = vmax.f32 %v3908_v32, 0.0  ;;  %3212 = vmatprep.subr.bf16.mxu0 %v3399_v36 }
  0x69   : > { %v1395_v51 = vshrl.u32 %v3931_v9, 16  ;;  %v1398_v63 = vshll.u32 %v3931_v9, 16  ;;  %v1003_v33 = vsel %vm3687_vm4, %v998_v4, %v1002_v37  ;;  %v1109_v14 = vsel %vm3687_vm4, %v1104_v17, %v1108_v50  ;;  %v501_v43 = vld [vmem:[#allocation2 + $0x100] sm:$0x11]  ;;  %v3400_v50 = vld [vmem:[%s4431_s1 + $0x1f8] sm:$0xff]  }
  0x6a   : > { %v1118_v15 = vrot.slane %v1117_v20, 4  ;;  %v2956_v23 = vcombine.low %v989_v1, %v1003_v33  ;;  %v3943_v30 = vrot.slane %v1381_v42, 4  ;;  %v3945_v31 = vrot.slane %v1384_v38, 5  ;;  %v3965_v1 = vld [vmem:[%s3564_s16 + $0x58] sm:$0xff]  ;;  %3252 = vmatprep.subr.bf16.mxu1 %v3400_v50  ;;  %v3992_v33 = vld [vmem:[%s4431_s1 + $0x200] sm:$0xff]  }
  0x6b   : > { %v2965_v35 = vcombine.low %v1184_v8, %v3931_v9  ;;  %v3953_v60 = vrot.slane %v1395_v51, 4  ;;  %v546_v57 = vsel %vm3628_vm13, 0, %v545_v10  ;;  %v3078_v0 = vpack.c.bf16 %v388_v62, %v387_v61  ;;  %v3402_v51 = vld [vmem:[%s4431_s1 + $0x1b8] sm:$0xff]  }
  0x6c   : > { %v1123_v37 = vsel %vm3687_vm4, %v1118_v15, %v1122_v55  ;;  %2477 = vmatprep.mubr.bf16.mxu0 %v2956_v23  ;;  %v552_v55 = vsel %vm3628_vm13, 0, %v551_v22  ;;  %547 = vst [vmem:[#allocation2 + $0x98] sm:$0x11] %v546_v57  ;;  %v3080_v2 = vpack.c.bf16 %v392_v40, %v391_v39  ;;  %v282_v32 = vunpack.c.h.bf16 %v3917_v54  ;;  %v3401_v54 = vld [vmem:[%s4431_s1 + $0x138] sm:$0xff]   ;;  %v866_v15 = vld [vmem:[#allocation2 + $0x90] sm:$0xff]  ;;  %3253 = vmatpush3.bf16.msra.mxu1 %v3402_v51 }
  0x6d   : > { %v2960_v53 = vcombine.low %v1109_v14, %v1123_v37  ;;  %2478 = vmatmul.mubr.bf16.gmra.mrb[4].mxu0 %v2952_v59  ;;  %553 = vst [vmem:[#allocation2 + $0xb8] sm:$0x11] %v552_v55  ;;  %v321_v4 = vmul.f32 %v3574_v45, %v277_v52  ;;  %v322_v17 = vmul.f32 %v3576_v46, %v278_v3  ;;  %v715_v61 = vshrl.u32 %v3078_v0, 16  ;;  %v878_v37 = vld [vmem:[#allocation2 + $0xb0] sm:$0xff]  ;;  %v557_v51 = vld [vmem:[#allocation2 + $0xd8] sm:$0x11] }
  0x6e   : > { %v718_v62 = vshll.u32 %v3078_v0, 16  ;;  %v325_v20 = vmul.f32 %v3574_v45, %v281_v16  ;;  %v496_v59 = vsel %vm3589_vm8, 0, %v495_v18  ;;  %v731_v8 = vshrl.u32 %v3080_v2, 16  ;;  %3213 = vmatpush3.bf16.msra.mxu0 %v3401_v54  ;;  %3314 = vmatprep.subr.bf16.mxu1 %v3992_v33 }
  0x6f   : > { %2543 = vmatmul.mubr.bf16.gmra.mrb[4].mxu1 %v2960_v53  ;;  %v734_v52 = vshll.u32 %v3080_v2, 16  ;;  %v326_v27 = vmul.f32 %v3576_v46, %v282_v32  ;;  %v365_v3 = vadd.f32 %v3578_v47, %v321_v4  ;;  %497 = vst [vmem:[#allocation2 + $0xe0] sm:$0x11] %v496_v59  ;;  %v717_v10 = vrot.slane %v715_v61, 7  ;;  %3290 = vmatprep.subr.bf16.mxu0 %v3992_v33  ;;  %v492_v59 = vld [vmem:[#allocation2 + $0xd0] sm:$0x11] }
  0x70   : > { %2550 = vmatprep.mubr.bf16.mxu1 %v2965_v35  ;;  %v366_v22 = vadd.f32 %v3580_v48, %v322_v17  ;;  %v369_v42 = vadd.f32 %v3578_v47, %v325_v20  ;;  %v502_v38 = vsel %vm3589_vm8, 0, %v501_v43  ;;  %v733_v14 = vrot.slane %v731_v8, 7 }
  0x71   : > { %v370_v16 = vadd.f32 %v3580_v48, %v326_v27  ;;  %v397_v18 = vmax.f32 %v365_v3, 0.0  ;;  %503 = vst [vmem:[#allocation2 + $0x100] sm:$0x11] %v502_v38  ;;  %v275_v23 = vunpack.c.l.bf16 %v3965_v1  ;;  %v720_v35 = vor.u32 %v718_v62, %v717_v10  ;;  %v498_v3 = vld [vmem:[#allocation2 + $0xf0] sm:$0x11] }
  0x72   : > { %v721_v36 = vrot.slane %v717_v10, 4  ;;  %v398_v39 = vmax.f32 %v366_v22, 0.0  ;;  %v401_v40 = vmax.f32 %v369_v42, 0.0  ;;  %v736_v43 = vor.u32 %v734_v52, %v733_v14 }
  0x73   : > { %v737_v50 = vrot.slane %v733_v14, 4  ;;  %v402_v53 = vmax.f32 %v370_v16, 0.0  ;;  %v276_v57 = vunpack.c.h.bf16 %v3965_v1  ;;  %v867_v55 = vsel %vm3667_vm3, %v720_v35, %v866_v15  ;;  %v869_v0 = vld [vmem:[#allocation2 + $0x98] sm:$0x11] }
  0x74   : > { %v881_v2 = vld [vmem:[#allocation2 + $0xb8] sm:$0x11]  ;;  %v3083_v32 = vpack.c.bf16 %v398_v39, %v397_v18  ;;  %v279_v4 = vunpack.c.l.bf16 %v250_v21  ;;  %v280_v17 = vunpack.c.h.bf16 %v250_v21  ;;  %868 = vst [vmem:[#allocation2 + $0x90] sm:$0xff] %v867_v55  ;;  %v870_v61 = vsel %vm3589_vm8, %v721_v36, %v869_v0 }
  0x75   : > { %v879_v62 = vsel %vm3667_vm3, %v736_v43, %v878_v37  ;;  %v882_v1 = vsel %vm3589_vm8, %v737_v50, %v881_v2  ;;  %v3085_v20 = vpack.c.bf16 %v402_v53, %v401_v40  ;;  %871 = vst [vmem:[#allocation2 + $0x98] sm:$0x11] %v870_v61  ;;  %v319_v52 = vmul.f32 %v3574_v45, %v275_v23  ;;  %v563_v14 = vld [vmem:[#allocation2 + $0xf8] sm:$0x11]  ;;  %v4018_v23 = vld [vmem:[#allocation2 + $0x30] sm:$0xf] }
  0x76   : > { %880 = vst [vmem:[#allocation2 + $0xb0] sm:$0xff] %v879_v62  ;;  %883 = vst [vmem:[#allocation2 + $0xb8] sm:$0x11] %v882_v1  ;;  %v755_v54 = vshrl.u32 %v3083_v32, 16  ;;  %v758_v8 = vshll.u32 %v3083_v32, 16  ;;  %v320_v27 = vmul.f32 %v3576_v46, %v276_v57  ;;  %v323_v42 = vmul.f32 %v3574_v45, %v279_v4  ;;  %v896_v36 = vld [vmem:[#allocation2 + $0xe0] sm:$0xff] }
  0x77   : > { %v771_v10 = vshrl.u32 %v3085_v20, 16  ;;  %v774_v22 = vshll.u32 %v3085_v20, 16  ;;  %v324_v38 = vmul.f32 %v3576_v46, %v280_v17  ;;  %v363_v16 = vadd.f32 %v3578_v47, %v319_v52 }
  0x78   : > { %v4012_v15 = vrot.slane %v755_v54, 7  ;;  %v364_v18 = vadd.f32 %v3580_v48, %v320_v27  ;;  %v493_v21 = vsel %vm3589_vm8, 0, %v492_v59  ;;  %v367_v37 = vadd.f32 %v3578_v47, %v323_v42  ;;  %v908_v53 = vld [vmem:[#allocation2 + $0x100] sm:$0xff] }
  0x79   : > { %v4020_v35 = vrot.slane %v771_v10, 7  ;;  %v368_v39 = vadd.f32 %v3580_v48, %v324_v38  ;;  %494 = vst [vmem:[#allocation2 + $0xd0] sm:$0x11] %v493_v21  ;;  %v499_v40 = vsel %vm3589_vm8, 0, %v498_v3  ;;  %v4028_v43 = vrot.slane %v1398_v63, 5 }
  0x7a   : > { %4454 = vst [vmem:[#allocation4_spill] sm:$0xff] %v4012_v15  ;;  %v760_v50 = vor.u32 %v758_v8, %v4012_v15  ;;  %v395_v57 = vmax.f32 %v363_v16, 0.0  ;;  %500 = vst [vmem:[#allocation2 + $0xf0] sm:$0x11] %v499_v40  ;;  %v558_v55 = vsel %vm3628_vm13, 0, %v557_v51  ;;  %v396_v2 = vmax.f32 %v364_v18, 0.0 }
  0x7b   : > { %4455 = vst [vmem:[#allocation5_spill] sm:$0xff] %v4020_v35  ;;  %v776_v0 = vor.u32 %v774_v22, %v4020_v35  ;;  %v399_v32 = vmax.f32 %v367_v37, 0.0  ;;  %559 = vst [vmem:[#allocation2 + $0xd8] sm:$0x11] %v558_v55  ;;  %v564_v4 = vsel %vm3628_vm13, 0, %v563_v14  ;;  %v400_v63 = vmax.f32 %v368_v39, 0.0 }
  0x7c   : > { %v937_v17 = vld [vmem:[#allocation2 + $0x90] sm:$0xf]  ;;  %v897_v9 = vsel %vm3667_vm3, %v760_v50, %v896_v36  ;;  %565 = vst [vmem:[#allocation2 + $0xf8] sm:$0x11] %v564_v4  ;;  %v1462_v61 = vshrl.u32 %v4018_v23, 16  ;;  %v1465_v62 = vshll.u32 %v4018_v23, 16  ;;  %v4042_v14 = vpack.c.bf16 %v396_v2, %v395_v57 }
  0x7d   : > { %v938_v1 = vld [vmem:[#allocation2 + $0x98] sm:$0x1]  ;;  %v939_v20 = vld [vmem:[#allocation2 + $0xb0] sm:$0xf]  ;;  %898 = vst [vmem:[#allocation2 + $0xe0] sm:$0xff] %v897_v9  ;;  %v909_v54 = vsel %vm3667_vm3, %v776_v0, %v908_v53  ;;  %v1005_v8 = vshrl.u32 %v937_v17, 16 }
  0x7e   : > { %v940_v59 = vld [vmem:[#allocation2 + $0xb8] sm:$0x1]  ;;  %v1008_v52 = vshll.u32 %v937_v17, 16  ;;  %v1014_v27 = vshll.u32 %v938_v1, 16  ;;  %v1019_v3 = vshrl.u32 %v939_v20, 16  ;;  %910 = vst [vmem:[#allocation2 + $0x100] sm:$0xff] %v909_v54 }
  0x7f   : > { %v925_v10 = vld [vmem:[#allocation2 + $0x94] sm:$0xf]  ;;  %v1022_v22 = vshll.u32 %v939_v20, 16  ;;  %v1028_v42 = vshll.u32 %v940_v59, 16  ;;  %v1064_v51 = vld [vmem:[#allocation2 + $0x9c] sm:$0x1] }
  0x80   : > { %v926_v38 = vld [vmem:[#allocation2 + $0xb4] sm:$0xf]  ;;  %v1007_v16 = vrot.slane %v1005_v8, 4  ;;  %v1010_v18 = vrot.slane %v1008_v52, 5  ;;  %v1016_v21 = vrot.slane %v1014_v27, 5  ;;  %v1021_v36 = vrot.slane %v1019_v3, 4 }
  0x81   : > { %v1065_v37 = vld [vmem:[#allocation2 + $0xbc] sm:$0x1]  ;;  %v1024_v39 = vrot.slane %v1022_v22, 5  ;;  %v1030_v40 = vrot.slane %v1028_v42, 5  ;;  %v1125_v50 = vshrl.u32 %v925_v10, 16  ;;  %v1128_v53 = vshll.u32 %v925_v10, 16 }
  0x82   : > { %v1011_v55 = vor.u32 %v1010_v18, %v1007_v16  ;;  %v1134_v0 = vshll.u32 %v1064_v51, 16  ;;  %v1139_v4 = vshrl.u32 %v926_v38, 16  ;;  %v1142_v17 = vshll.u32 %v926_v38, 16 }
  0x83   : > { %v1025_v9 = vor.u32 %v1024_v39, %v1021_v36  ;;  %v1127_v1 = vrot.slane %v1125_v50, 4  ;;  %v1130_v20 = vrot.slane %v1128_v53, 5  ;;  %v1148_v59 = vshll.u32 %v1065_v37, 16 }
  0x84   : > { %v1012_v54 = vrot.slane %v1011_v55, 4  ;;  %v1141_v57 = vrot.slane %v1139_v4, 4  ;;  %v1144_v2 = vrot.slane %v1142_v17, 5  ;;  %v1186_v8 = vld [vmem:[#allocation2 + $0xe4] sm:$0xf]  ;;  %v3084_v52 = vpack.c.bf16 %v400_v63, %v399_v32 }
  0x85   : > { %v1026_v27 = vrot.slane %v1025_v9, 4  ;;  %v1131_v3 = vor.u32 %v1130_v20, %v1127_v1  ;;  %v1136_v26 = vrot.slane %v1134_v0, 5  ;;  %v1409_v22 = vshrl.u32 %v1186_v8, 16  ;;  %v4046_v18 = vld [vmem:[#allocation2 + $0x104] sm:$0xf] }
  0x86   : > { %v1017_v42 = vsel %vm3687_vm4, %v1012_v54, %v1016_v21  ;;  %v1145_v16 = vor.u32 %v1144_v2, %v1141_v57  ;;  %v1150_v51 = vrot.slane %v1148_v59, 5  ;;  %v1412_v36 = vshll.u32 %v1186_v8, 16  ;;  %v1446_v32 = vld [vmem:[#allocation2 + $0x38] sm:$0x1]  ;;  %v1447_v21 = vld [vmem:[#allocation2 + $0x50] sm:$0xf] }
  0x87   : > { %v1031_v37 = vsel %vm3687_vm4, %v1026_v27, %v1030_v40  ;;  %v1132_v39 = vrot.slane %v1131_v3, 4  ;;  %v2953_v50 = vcombine.low %v925_v10, %v926_v38  ;;  %v1423_v53 = vshrl.u32 %v4046_v18, 16  ;;  %v1448_v10 = vld [vmem:[#allocation2 + $0x58] sm:$0x1]  ;;  %v890_v57 = vld [vmem:[#allocation2 + $0xd0] sm:$0xff] }
  0x88   : > { %v2957_v63 = vcombine.low %v1017_v42, %v1031_v37  ;;  %v1146_v55 = vrot.slane %v1145_v16, 4  ;;  %v4051_v0 = vrot.slane %v1409_v22, 4  ;;  %v1426_v4 = vshll.u32 %v4046_v18, 16  ;;  %v902_v3 = vld [vmem:[#allocation2 + $0xf0] sm:$0xff]  ;;  %v524_v42 = vld [vmem:[#allocation2 + $0x28] sm:$0x11] }
  0x89   : > { %v1137_v17 = vsel %vm3687_vm4, %v1132_v39, %v1136_v26  ;;  %v4056_v9 = vrot.slane %v1412_v36, 5  ;;  %v2966_v1 = vcombine.low %v1186_v8, %v4046_v18  ;;  %v747_v40 = vshrl.u32 %v4042_v14, 16  ;;  %v893_v26 = vld [vmem:[#allocation2 + $0xd8] sm:$0x11]  ;;  %v530_v39 = vld [vmem:[#allocation2 + $0x48] sm:$0x11] }
  0x8a   : > { %2485 = vmatprep.mubr.bf16.mxu0 %v2957_v63  ;;  %v1151_v38 = vsel %vm3687_vm4, %v1146_v55, %v1150_v51  ;;  %v750_v20 = vshll.u32 %v4042_v14, 16  ;;  %v763_v59 = vshrl.u32 %v3084_v52, 16  ;;  %v766_v54 = vshll.u32 %v3084_v52, 16  ;;  %v905_v36 = vld [vmem:[#allocation2 + $0xf8] sm:$0x11] }
  0x8b   : > { %v2961_v2 = vcombine.low %v1137_v17, %v1151_v38  ;;  %2486 = vmatmul.mubr.bf16.gmra.mrb[8].mxu0 %v2953_v50  ;;  %v749_v27 = vrot.slane %v747_v40, 7  ;;  %v1464_v8 = vrot.slane %v1462_v61, 4  ;;  %v1467_v22 = vrot.slane %v1465_v62, 5 }
  0x8c   : > { %v765_v16 = vrot.slane %v763_v59, 7  ;;  %v1471_v51 = vshll.u32 %v1446_v32, 16  ;;  %v1476_v37 = vshrl.u32 %v1447_v21, 16  ;;  %v1479_v14 = vshll.u32 %v1447_v21, 16  ;;  %v1190_v59 = vld [vmem:[#allocation2 + $0x40] sm:$0xf] }
  0x8d   : > { %2551 = vmatmul.mubr.bf16.gmra.mrb[8].mxu1 %v2961_v2  ;;  %v752_v52 = vor.u32 %v750_v20, %v749_v27  ;;  %v753_v63 = vrot.slane %v749_v27, 4  ;;  %v1468_v50 = vor.u32 %v1467_v22, %v1464_v8  ;;  %v1485_v55 = vshll.u32 %v1448_v10, 16  ;;  %v1449_v2 = vld [vmem:[#allocation2 + $0x70] sm:$0xf]  ;;  %v4079_v22 = vld [vmem:[#allocation2 + $0x34] sm:$0xf] }
  0x8e   : > { %2558 = vmatprep.mubr.bf16.mxu1 %v2966_v1  ;;  %v768_v17 = vor.u32 %v766_v54, %v765_v16  ;;  %v769_v40 = vrot.slane %v765_v16, 4  ;;  %v1473_v38 = vrot.slane %v1471_v51, 5  ;;  %v1478_v61 = vrot.slane %v1476_v37, 4 }
  0x8f   : > { %v891_v23 = vsel %vm3667_vm3, %v752_v52, %v890_v57  ;;  %v894_v62 = vsel %vm3589_vm8, %v753_v63, %v893_v26  ;;  %v1469_v32 = vrot.slane %v1468_v50, 4  ;;  %v1481_v21 = vrot.slane %v1479_v14, 5  ;;  %v1450_v57 = vld [vmem:[#allocation2 + $0x78] sm:$0x1]  ;;  %v4087_v52 = vld [vmem:[#allocation2 + $0x90] sm:$0xf] }
  0x90   : > { %892 = vst [vmem:[#allocation2 + $0xd0] sm:$0xff] %v891_v23  ;;  %895 = vst [vmem:[#allocation2 + $0xd8] sm:$0x11] %v894_v62  ;;  %v903_v1 = vsel %vm3667_vm3, %v768_v17, %v902_v3  ;;  %v906_v10 = vsel %vm3589_vm8, %v769_v40, %v905_v36  ;;  %v1487_v20 = vrot.slane %v1485_v55, 5  ;;  %v525_v54 = vsel %vm3628_vm13, 0, %v524_v42 }
  0x91   : > { %904 = vst [vmem:[#allocation2 + $0xf0] sm:$0xff] %v903_v1  ;;  %907 = vst [vmem:[#allocation2 + $0xf8] sm:$0x11] %v906_v10  ;;  %v1482_v27 = vor.u32 %v1481_v21, %v1478_v61  ;;  %v531_v26 = vsel %vm3628_vm13, 0, %v530_v39  ;;  %v1205_v8 = vshrl.u32 %v1188_v24, 16  ;;  %v1208_v16 = vshll.u32 %v1188_v24, 16 }
  0x92   : > { %526 = vst [vmem:[#allocation2 + $0x28] sm:$0x11] %v525_v54  ;;  %532 = vst [vmem:[#allocation2 + $0x48] sm:$0x11] %v531_v26  ;;  %v4081_v3 = vld [vmem:[#allocation2 + $0x54] sm:$0xf]  ;;  %v1474_v55 = vsel %vm3687_vm4, %v1469_v32, %v1473_v38  ;;  %v1415_v25 = vor.u32 %v4056_v9, %v4051_v0 }
  0x93   : > { %v1219_v36 = vshrl.u32 %v1190_v59, 16  ;;  %v1222_v51 = vshll.u32 %v1190_v59, 16  ;;  %v1490_v37 = vshrl.u32 %v1449_v2, 16  ;;  %v4085_v42 = vrot.slane %v1423_v53, 4 }
  0x94   : > { %v1483_v14 = vrot.slane %v1482_v27, 4  ;;  %v1493_v63 = vshll.u32 %v1449_v2, 16  ;;  %v1499_v50 = vshll.u32 %v1450_v57, 16  ;;  %v4091_v39 = vrot.slane %v1426_v4, 5  ;;  %v4131_v4 = vld [vmem:[#allocation2 + $0x94] sm:$0xf] }
  0x95   : > { %4456 = vst [vmem:[#allocation6_spill] sm:$0xff] %v4085_v42  ;;  %v4095_v24 = vrot.slane %v1205_v8, 4  ;;  %v4097_v17 = vrot.slane %v1208_v16, 5  ;;  %v4101_v40 = vrot.slane %v1219_v36, 4  ;;  %v4103_v61 = vrot.slane %v1222_v51, 5 }
  0x96   : > { %4457 = vst [vmem:[#allocation7_spill] sm:$0xff] %v4091_v39  ;;  %v1488_v53 = vsel %vm3687_vm4, %v1483_v14, %v1487_v20  ;;  %v4105_v23 = vrot.slane %v1490_v37, 4  ;;  %v4107_v62 = vrot.slane %v1493_v63, 5  ;;  %v4109_v18 = vrot.slane %v1499_v50, 5  ;;  %v4125_v63 = vld [vmem:[#allocation2 + $0x74] sm:$0xf] }
  0x97   : > { %v941_v32 = vld [vmem:[#allocation2 + $0xd0] sm:$0xf]  ;;  %v942_v21 = vld [vmem:[#allocation2 + $0xd8] sm:$0x1]  ;;  %v4113_v59 = vld [vmem:[#allocation2 + $0xd4] sm:$0xf]  ;;  %v4121_v26 = vcombine.low %v1474_v55, %v1488_v53  ;;  %v1225_v38 = vor.u32 %v4103_v61, %v4101_v40 }
  0x98   : > { %v943_v20 = vld [vmem:[#allocation2 + $0xf0] sm:$0xf]  ;;  %v944_v54 = vld [vmem:[#allocation2 + $0xf8] sm:$0x1]  ;;  %v1033_v57 = vshrl.u32 %v941_v32, 16  ;;  %v1036_v27 = vshll.u32 %v941_v32, 16  ;;  %v1496_v55 = vor.u32 %v4107_v62, %v4105_v23 }
  0x99   : > { %v1042_v16 = vshll.u32 %v942_v21, 16  ;;  %v1047_v36 = vshrl.u32 %v943_v20, 16  ;;  %v1050_v51 = vshll.u32 %v943_v20, 16  ;;  %v1056_v37 = vshll.u32 %v944_v54, 16  ;;  %v928_v14 = vld [vmem:[#allocation2 + $0xf4] sm:$0xf] }
  0x9a   : > { %v1035_v50 = vrot.slane %v1033_v57, 4  ;;  %v1038_v2 = vrot.slane %v1036_v27, 5  ;;  %v1066_v1 = vld [vmem:[#allocation2 + $0xdc] sm:$0x1]  ;;  %v1153_v54 = vshrl.u32 %v4113_v59, 16  ;;  %v1156_v57 = vshll.u32 %v4113_v59, 16 }
  0x9b   : > { %v1067_v10 = vld [vmem:[#allocation2 + $0xfc] sm:$0x1]  ;;  %v1044_v53 = vrot.slane %v1042_v16, 5  ;;  %v1049_v32 = vrot.slane %v1047_v36, 4  ;;  %v1052_v8 = vrot.slane %v1050_v51, 5  ;;  %v1058_v21 = vrot.slane %v1056_v37, 5 }
  0x9c   : > { %v1039_v20 = vor.u32 %v1038_v2, %v1035_v50  ;;  %v1162_v27 = vshll.u32 %v1066_v1, 16  ;;  %v827_v56 = vld [vmem:[#allocation2 + $0x28] sm:$0x11]  ;;  %v1167_v42 = vshrl.u32 %v928_v14, 16  ;;  %v1170_v35 = vshll.u32 %v928_v14, 16 }
  0x9d   : > { %v1053_v39 = vor.u32 %v1052_v8, %v1049_v32  ;;  %v1176_v40 = vshll.u32 %v1067_v10, 16  ;;  %v839_v61 = vld [vmem:[#allocation2 + $0x48] sm:$0x11]  ;;  %v1155_v23 = vrot.slane %v1153_v54, 4  ;;  %v1158_v62 = vrot.slane %v1156_v57, 5 }
  0x9e   : > { %v1040_v15 = vrot.slane %v1039_v20, 4  ;;  %v2976_v16 = vcombine.low %v4125_v63, %v4131_v4  ;;  %v1164_v51 = vrot.slane %v1162_v27, 5  ;;  %v1169_v2 = vrot.slane %v1167_v42, 4  ;;  %v1452_v54 = vld [vmem:[#allocation2 + $0x98] sm:$0x1] }
  0x9f   : > { %v1054_v36 = vrot.slane %v1053_v39, 4  ;;  %v1172_v37 = vrot.slane %v1170_v35, 5  ;;  %v1159_v50 = vor.u32 %v1158_v62, %v1155_v23  ;;  %v4458_v8 = vrot.slane %v3657_v44, 4  ;;  %v536_v39 = vld [vmem:[#allocation2 + $0x68] sm:$0x11] }
  0xa0   : > { %v1045_v1 = vsel %vm3687_vm4, %v1040_v15, %v1044_v53  ;;  %v4459_v32 = vrot.slane %v3659_v49, 4  ;;  %v1178_v57 = vrot.slane %v1176_v40, 5  ;;  %v2954_v15 = vcombine.low %v4113_v59, %v928_v14  ;;  %v542_v44 = vld [vmem:[#allocation2 + $0x88] sm:$0x11]  ;;  %v252_v53 = vld [vmem:[%s3564_s16 + $0x78] sm:$0xff] }
  0xa1   : > { %v828_v10 = vsel %vm3589_vm8, %v4458_v8, %v827_v56  ;;  %v1059_v42 = vsel %vm3687_vm4, %v1054_v36, %v1058_v21  ;;  %v1173_v35 = vor.u32 %v1172_v37, %v1169_v2  ;;  %v1160_v56 = vrot.slane %v1159_v50, 4 }
  0xa2   : > { %v840_v20 = vsel %vm3589_vm8, %v4459_v32, %v839_v61  ;;  %829 = vst [vmem:[#allocation2 + $0x28] sm:$0x11] %v828_v10  ;;  %v2958_v27 = vcombine.low %v1045_v1, %v1059_v42  ;;  %v4460_v49 = vshrl.u32 %v4087_v52, 16  ;;  %v1387_v61 = vor.u32 %v3945_v31, %v3943_v30  ;;  %v569_v31 = vld [vmem:[#allocation2 + $0x118] sm:$0x11] }
  0xa3   : > { %841 = vst [vmem:[#allocation2 + $0x48] sm:$0x11] %v840_v20  ;;  %v1174_v62 = vrot.slane %v1173_v35, 4  ;;  %v4461_v8 = vshll.u32 %v4087_v52, 16  ;;  %v1513_v36 = vshll.u32 %v1452_v54, 16  ;;  %v537_v59 = vsel %vm3628_vm13, 0, %v536_v39 }
  0xa4   : > { %v1506_v23 = vrot.slane %v4460_v49, 4  ;;  %2493 = vmatprep.mubr.bf16.mxu0 %v2958_v27  ;;  %v1165_v14 = vsel %vm3687_vm4, %v1160_v56, %v1164_v51  ;;  %v1497_v40 = vrot.slane %v1496_v55, 4  ;;  %538 = vst [vmem:[#allocation2 + $0x68] sm:$0x11] %v537_v59  ;;  %v543_v2 = vsel %vm3628_vm13, 0, %v542_v44 }
  0xa5   : > { %v1509_v21 = vrot.slane %v4461_v8, 5  ;;  %v283_v37 = vunpack.c.l.bf16 %v252_v53  ;;  %v1179_v1 = vsel %vm3687_vm4, %v1174_v62, %v1178_v57  ;;  %2494 = vmatmul.mubr.bf16.gmra.mrb[12].mxu0 %v2954_v15  ;;  %v4462_v52 = vor.u32 %v4097_v17, %v4095_v24  ;;  %544 = vst [vmem:[#allocation2 + $0x88] sm:$0x11] %v543_v2  ;;  %v4170_v39 = vld [vmem:[#allocation2 + $0xb4] sm:$0xf] }
  0xa6   : > { %v1515_v32 = vrot.slane %v1513_v36, 5  ;;  %v2962_v20 = vcombine.low %v1165_v14, %v1179_v1  ;;  %v1226_v54 = vrot.slane %v1225_v38, 4  ;;  %v697_v55 = vrot.slane %v3765_v41, 4  ;;  %v4183_v38 = vld [vmem:[#allocation2 + $0xd4] sm:$0xf] }
  0xa7   : > { %v1212_v50 = vrot.slane %v4462_v52, 4  ;;  %v1510_v10 = vor.u32 %v1509_v21, %v1506_v23  ;;  %v713_v51 = vrot.slane %v3767_v13, 4  ;;  %v4463_v35 = vor.u32 %v3858_v6, %v3856_v5 }
  0xa8   : > { %v4464_v24 = vor.u32 %v3881_v34, %v3860_v7  ;;  %v1610_v15 = vshrl.u32 %v4125_v63, 16  ;;  %2559 = vmatmul.mubr.bf16.gmra.mrb[12].mxu1 %v2962_v20  ;;  %v1502_v27 = vsel %vm3687_vm4, %v1497_v40, %v4109_v18  ;;  %v1401_v5 = vor.u32 %v4028_v43, %v3953_v60  ;;  %v560_v60 = vld [vmem:[#allocation2 + $0xe8] sm:$0x11] }
  0xa9   : > { %v1511_v42 = vrot.slane %v1510_v10, 4  ;;  %v4175_v57 = vrot.slane %v4463_v35, 4  ;;  %v1316_v41 = vld [vmem:[#allocation2 + $0x2c] sm:$0x1]  ;;  %v1189_v44 = vld [vmem:[#allocation2 + $0x28] sm:$0x1]  ;;  %v284_v6 = vunpack.c.h.bf16 %v252_v53  ;;  %v4191_v7 = vmul.f32 %v3574_v45, %v283_v37  ;;  %2664 = vmatprep.mubr.bf16.mxu1 %v4121_v26 }
  0xaa   : > { %v4180_v17 = vrot.slane %v4464_v24, 4  ;;  %v1317_v13 = vld [vmem:[#allocation2 + $0x4c] sm:$0x1]  ;;  %v1334_v34 = vshll.u32 %v1316_v41, 16  ;;  %v1191_v49 = vld [vmem:[#allocation2 + $0x48] sm:$0x1]  ;;  %v2977_v26 = vcombine.low %v4170_v39, %v4183_v38 }
  0xab   : > { %v1348_v56 = vshll.u32 %v1317_v13, 16  ;;  %v1214_v23 = vshll.u32 %v1189_v44, 16  ;;  %v1516_v62 = vsel %vm3687_vm4, %v1511_v42, %v1515_v32  ;;  %v1228_v8 = vshll.u32 %v1191_v49, 16  ;;  %v1192_v53 = vld [vmem:[#allocation2 + $0x60] sm:$0xf] }
  0xac   : > { %v1613_v21 = vshll.u32 %v4125_v63, 16  ;;  %v1624_v18 = vshrl.u32 %v4131_v4, 16  ;;  %v1627_v36 = vshll.u32 %v4131_v4, 16  ;;  %v1336_v59 = vrot.slane %v1334_v34, 5  ;;  %v851_v40 = vld [vmem:[#allocation2 + $0x68] sm:$0x11] }
  0xad   : > { %v1350_v45 = vrot.slane %v1348_v56, 5  ;;  %v1216_v14 = vrot.slane %v1214_v23, 5  ;;  %v1230_v2 = vrot.slane %v1228_v8, 5  ;;  %v2980_v37 = vcombine.low %v1502_v27, %v1516_v62  ;;  %v863_v52 = vld [vmem:[#allocation2 + $0x88] sm:$0x11] }
  0xae   : > { %v852_v1 = vsel %vm3589_vm8, %v697_v55, %v851_v40  ;;  %v1194_v10 = vld [vmem:[#allocation2 + $0x80] sm:$0xf]  ;;  %v4204_v32 = vmul.f32 %v3576_v46, %v284_v6  ;;  %v1337_v20 = vsel %vm3687_vm4, %v3713_v11, %v1336_v59  ;;  %v864_v55 = vsel %vm3589_vm8, %v713_v51, %v863_v52  ;;  %v1453_v24 = vld [vmem:[#allocation2 + $0xb0] sm:$0xf]  ;;  %v3404_v11 = vld [vmem:[%s4431_s1 + $0x208] sm:$0xff]  }
  0xaf   : > { %v1351_v42 = vsel %vm3687_vm4, %v3715_v12, %v1350_v45  ;;  %v1217_v35 = vsel %vm3687_vm4, %v1212_v50, %v1216_v14  ;;  %853 = vst [vmem:[#allocation2 + $0x68] sm:$0x11] %v852_v1  ;;  %v1231_v46 = vsel %vm3687_vm4, %v1226_v54, %v1230_v2  ;;  %865 = vst [vmem:[#allocation2 + $0x88] sm:$0x11] %v864_v55  ;;  %v4221_v13 = vrot.slane %v1610_v15, 4 }
  0xb0   : > { %v2971_v41 = vcombine.low %v1337_v20, %v1351_v42  ;;  %v4223_v12 = vrot.slane %v1613_v21, 5  ;;  %v1454_v44 = vld [vmem:[#allocation2 + $0xb8] sm:$0x1]  ;;  %v2967_v50 = vcombine.low %v1217_v35, %v1231_v46  ;;  %v1233_v27 = vshrl.u32 %v1192_v53, 16  ;;  %v1455_v51 = vld [vmem:[#allocation2 + $0xd0] sm:$0xf] }
  0xb1   : > { %v1236_v6 = vshll.u32 %v1192_v53, 16  ;;  %v1247_v34 = vshrl.u32 %v1194_v10, 16  ;;  %v4465_v56 = vcombine.low %v4079_v22, %v4081_v3  ;;  %v4228_v54 = vrot.slane %v1624_v18, 4  ;;  %v1456_v23 = vld [vmem:[#allocation2 + $0xd8] sm:$0x1]  ;;  %v3405_v18 = vld [vmem:[%s4431_s1 + $0x210] sm:$0xff]  }
  0xb2   : > { %2599 = vmatprep.mubr.bf16.mxu0 %v2971_v41  ;;  %v1250_v49 = vshll.u32 %v1194_v10, 16  ;;  %v1518_v62 = vshrl.u32 %v1453_v24, 16  ;;  %v1521_v15 = vshll.u32 %v1453_v24, 16  ;;  %v4231_v8 = vrot.slane %v1627_v36, 5  ;;  %v548_v45 = vld [vmem:[#allocation2 + $0xa8] sm:$0x11] }
  0xb3   : > { %2665 = vmatmul.mubr.bf16.vlgmr.msra.gmra.mrb[16].mxu1 %v4465_v56  ;;  %2600 = vmatmul.mubr.bf16.vlgmr.msra.gmra.mrb[16].mxu0 %v2967_v50  ;;  %v1235_v21 = vrot.slane %v1233_v27, 4  ;;  %v1238_v53 = vrot.slane %v1236_v6, 5  ;;  %v1249_v59 = vrot.slane %v1247_v34, 4  ;;  %v1532_v1 = vshrl.u32 %v1455_v51, 16  ;;  %v554_v42 = vld [vmem:[#allocation2 + $0xc8] sm:$0x11] }
  0xb4   : > { %3322 = vmatpush3.bf16.msra.mxu1 %v3992_v33  ;;  %3291 = vmatpush3.bf16.msra.mxu0 %v3992_v33  ;;  %v1252_v14 = vrot.slane %v1250_v49, 5  ;;  %v1520_v40 = vrot.slane %v1518_v62, 4  ;;  %v1523_v2 = vrot.slane %v1521_v15, 5  ;;  %v1527_v36 = vshll.u32 %v1454_v44, 16  ;;  %v3406_v62 = vld [vmem:[%s4431_s1 + $0x218] sm:$0xff]  }
  0xb5   : > { %3315 = vmatprep.subr.bf16.mxu1 %v3404_v11  ;;  %3292 = vmatprep.subr.bf16.mxu0 %v3404_v11  ;;  %v1239_v52 = vor.u32 %v1238_v53, %v1235_v21  ;;  %v1535_v10 = vshll.u32 %v1455_v51, 16  ;;  %v1541_v20 = vshll.u32 %v1456_v23, 16  ;;  %v1534_v41 = vrot.slane %v1532_v1, 4  ;;  %v1196_v1 = vld [vmem:[#allocation2 + $0xa0] sm:$0xf] }
  0xb6   : > { %2672 = vmatprep.mubr.bf16.mxu1 %v2980_v37  ;;  %v1318_v35 = vld [vmem:[#allocation2 + $0x6c] sm:$0x1]  ;;  %v1193_v55 = vld [vmem:[#allocation2 + $0x68] sm:$0x1]  ;;  %v1253_v24 = vor.u32 %v1252_v14, %v1249_v59  ;;  %v1524_v33 = vor.u32 %v1523_v2, %v1520_v40  ;;  %v549_v46 = vsel %vm3628_vm13, 0, %v548_v45  ;;  %v1616_v6 = vor.u32 %v4223_v12, %v4221_v13 }
  0xb7   : > { %v1319_v50 = vld [vmem:[#allocation2 + $0x8c] sm:$0x1]  ;;  %v1362_v27 = vshll.u32 %v1318_v35, 16  ;;  %v1195_v37 = vld [vmem:[#allocation2 + $0x88] sm:$0x1]  ;;  %v1240_v34 = vrot.slane %v1239_v52, 4  ;;  %v4243_v44 = vadd.f32 %v3578_v47, %v4191_v7 }
  0xb8   : > { %3323 = vmatpush3.bf16.msra.mxu1 %v3404_v11  ;;  %550 = vst [vmem:[#allocation2 + $0xa8] sm:$0x11] %v549_v46  ;;  %3293 = vmatpush3.bf16.msra.mxu0 %v3404_v11  ;;  %v1376_v51 = vshll.u32 %v1319_v50, 16  ;;  %v1242_v56 = vshll.u32 %v1193_v55, 16  ;;  %v1254_v49 = vrot.slane %v1253_v24, 4  ;;  %v1256_v23 = vshll.u32 %v1195_v37, 16 }
  0xb9   : > { %3316 = vmatprep.subr.bf16.mxu1 %v3405_v18  ;;  %v1364_v15 = vrot.slane %v1362_v27, 5  ;;  %3294 = vmatprep.subr.bf16.mxu0 %v3405_v18  ;;  %v1525_v13 = vrot.slane %v1524_v33, 4  ;;  %v1529_v12 = vrot.slane %v1527_v36, 5  ;;  %v1537_v21 = vrot.slane %v1535_v10, 5  ;;  %v1198_v10 = vld [vmem:[#allocation2 + $0xc0] sm:$0xf] }
  0xba   : > { %v1378_v53 = vrot.slane %v1376_v51, 5  ;;  %v1244_v47 = vrot.slane %v1242_v56, 5  ;;  %v1258_v7 = vrot.slane %v1256_v23, 5  ;;  %v555_v11 = vsel %vm3628_vm13, 0, %v554_v42  ;;  %v3408_v27 = vld [vmem:[%s4431_s1 + $0x228] sm:$0xff]  }
  0xbb   : > { %2673 = vmatmul.mubr.bf16.gmra.mrb[20].mxu1 %v2976_v16  ;;  %v1365_v59 = vsel %vm3687_vm4, %v4175_v57, %v1364_v15  ;;  %v1538_v45 = vor.u32 %v1537_v21, %v1534_v41  ;;  %v1543_v14 = vrot.slane %v1541_v20, 5  ;;  %556 = vst [vmem:[#allocation2 + $0xc8] sm:$0x11] %v555_v11  ;;  %v729_v40 = vrot.slane %v3873_v28, 4  ;;  %v3407_v57 = vld [vmem:[%s4431_s1 + $0x220] sm:$0xff]  }
  0xbc   : > { %3324 = vmatpush3.bf16.msra.mxu1 %v3405_v18  ;;  %v1379_v4 = vsel %vm3687_vm4, %v4180_v17, %v1378_v53  ;;  %v4260_v63 = vrot.slane %v1616_v6, 4  ;;  %v1245_v16 = vsel %vm3687_vm4, %v1240_v34, %v1244_v47  ;;  %v1259_v2 = vsel %vm3687_vm4, %v1254_v49, %v1258_v7  ;;  %3295 = vmatpush3.bf16.msra.mxu0 %v3405_v18  ;;  %v504_v20 = vld [vmem:[#allocation2 + $0x110] sm:$0x11]  ;;  %v566_v34 = vld [vmem:[#allocation2 + $0x108] sm:$0x11] }
  0xbd   : > { %3317 = vmatprep.subr.bf16.mxu1 %v3406_v62  ;;  %v2972_v28 = vcombine.low %v1365_v59, %v1379_v4  ;;  %v2968_v52 = vcombine.low %v1245_v16, %v1259_v2  ;;  %3296 = vmatprep.subr.bf16.mxu0 %v3406_v62  ;;  %v1530_v17 = vsel %vm3687_vm4, %v1525_v13, %v1529_v12  ;;  %v1539_v36 = vrot.slane %v1538_v45, 4  ;;  %v1458_v16 = vld [vmem:[#allocation2 + $0xf8] sm:$0x1] }
  0xbe   : > { %v745_v42 = vrot.slane %v3875_v29, 4  ;;  %v4275_v18 = vrot.slane %v1387_v61, 4  ;;  %v1638_v55 = vshrl.u32 %v4170_v39, 16  ;;  %v372_v24 = vadd.f32 %v3580_v48, %v4204_v32  ;;  %v1457_v61 = vld [vmem:[#allocation2 + $0xf0] sm:$0xf] }
  0xbf   : > { %v875_v35 = vld [vmem:[#allocation2 + $0xa8] sm:$0x11]  ;;  %2607 = vmatprep.mubr.bf16.mxu0 %v2972_v28  ;;  %v1544_v33 = vsel %vm3687_vm4, %v1539_v36, %v1543_v14  ;;  %v4287_v29 = vrot.slane %v1401_v5, 4  ;;  %v1261_v30 = vshrl.u32 %v1196_v1, 16  ;;  %v1641_v48 = vshll.u32 %v4170_v39, 16 }
  0xc0   : > { %3325 = vmatpush3.bf16.msra.mxu1 %v3406_v62  ;;  %v876_v41 = vsel %vm3589_vm8, %v729_v40, %v875_v35  ;;  %2608 = vmatmul.mubr.bf16.gmra.mrb[20].mxu0 %v2968_v52  ;;  %v2981_v46 = vcombine.low %v1530_v17, %v1544_v33  ;;  %v1652_v32 = vshrl.u32 %v4183_v38, 16  ;;  %v1655_v50 = vshll.u32 %v4183_v38, 16  ;;  %v4466_v35 = vld [vmem:[#allocation4_spill] sm:$0xff] }
  0xc1   : > { %877 = vst [vmem:[#allocation2 + $0xa8] sm:$0x11] %v876_v41  ;;  %3318 = vmatprep.subr.bf16.mxu1 %v3407_v57  ;;  %3297 = vmatpush3.bf16.msra.mxu0 %v3406_v62  ;;  %v4295_v43 = vrot.slane %v1638_v55, 4  ;;  %v1263_v5 = vrot.slane %v1261_v30, 4  ;;  %v1264_v6 = vshll.u32 %v1196_v1, 16  ;;  %v1275_v37 = vshrl.u32 %v1198_v10, 16 }
  0xc2   : > { %2680 = vmatprep.mubr.bf16.mxu1 %v2981_v46  ;;  %v887_v51 = vld [vmem:[#allocation2 + $0xc8] sm:$0x11]  ;;  %3298 = vmatprep.subr.bf16.mxu0 %v3407_v57  ;;  %v1278_v56 = vshll.u32 %v1198_v10, 16  ;;  %v403_v49 = vmax.f32 %v4243_v44, 0.0  ;;  %v404_v23 = vmax.f32 %v372_v24, 0.0  ;;  %v505_v15 = vsel %vm3589_vm8, 0, %v504_v20 }
  0xc3   : > { %v888_v13 = vsel %vm3589_vm8, %v745_v42, %v887_v51  ;;  %2681 = vmatmul.mubr.bf16.gmra.mrb[24].mxu1 %v2977_v26  ;;  %v1266_v62 = vrot.slane %v1264_v6, 5  ;;  %v1277_v12 = vrot.slane %v1275_v37, 4  ;;  %506 = vst [vmem:[#allocation2 + $0x110] sm:$0x11] %v505_v15  ;;  %v570_v21 = vsel %vm3628_vm13, 0, %v569_v31  ;;  %v3409_v26 = vld [vmem:[%s4431_s1 + $0x230] sm:$0xff]  }
  0xc4   : > { %889 = vst [vmem:[#allocation2 + $0xc8] sm:$0x11] %v888_v13  ;;  %v1280_v53 = vrot.slane %v1278_v56, 5  ;;  %3326 = vmatpush3.bf16.msra.mxu1 %v3407_v57  ;;  %571 = vst [vmem:[#allocation2 + $0x118] sm:$0x11] %v570_v21  ;;  %v3086_v44 = vpack.c.bf16 %v404_v23, %v403_v49  ;;  %v1546_v47 = vshrl.u32 %v1457_v61, 16 }
  0xc5   : > { %v1549_v7 = vshll.u32 %v1457_v61, 16  ;;  %v4307_v11 = vrot.slane %v1641_v48, 5  ;;  %v1267_v59 = vor.u32 %v1266_v62, %v1263_v5  ;;  %3299 = vmatpush3.bf16.msra.mxu0 %v3407_v57  ;;  %3319 = vmatprep.subr.bf16.mxu1 %v3408_v27  ;;  %v561_v39 = vsel %vm3628_vm13, 0, %v560_v60  ;;  %v4467_v24 = vld [vmem:[#allocation5_spill] sm:$0xff]  ;;  %v3410_v41 = vld [vmem:[%s4431_s1 + $0x238] sm:$0xff]   ;;  %v4469_v5 = vld [vmem:[#allocation7_spill] sm:$0xff] }
  0xc6   : > { %v567_v38 = vsel %vm3628_vm13, 0, %v566_v34  ;;  %v4316_v45 = vrot.slane %v1652_v32, 4  ;;  %v4318_v14 = vrot.slane %v1655_v50, 5  ;;  %3300 = vmatprep.subr.bf16.mxu0 %v3408_v27  ;;  %v779_v40 = vshrl.u32 %v3086_v44, 16  ;;  %562 = vst [vmem:[#allocation2 + $0xe8] sm:$0x11] %v561_v39 }
  0xc7   : > { %v782_v4 = vshll.u32 %v3086_v44, 16  ;;  %568 = vst [vmem:[#allocation2 + $0x108] sm:$0x11] %v567_v38  ;;  %v1548_v1 = vrot.slane %v1546_v47, 4  ;;  %v1551_v28 = vrot.slane %v1549_v7, 5  ;;  %v1281_v36 = vor.u32 %v1280_v53, %v1277_v12  ;;  %v4468_v60 = vld [vmem:[#allocation6_spill] sm:$0xff] }
  0xc8   : > { %v1320_v2 = vld [vmem:[#allocation2 + $0xac] sm:$0x1]  ;;  %v1197_v57 = vld [vmem:[#allocation2 + $0xa8] sm:$0x1]  ;;  %3327 = vmatpush3.bf16.msra.mxu1 %v3408_v27  ;;  %v781_v10 = vrot.slane %v779_v40, 7  ;;  %v1268_v20 = vrot.slane %v1267_v59, 4  ;;  %v1429_v6 = vor.u32 %v4469_v5, %v4468_v60  ;;  %v1644_v37 = vor.u32 %v4307_v11, %v4295_v43 }
  0xc9   : > { %v1390_v52 = vshll.u32 %v1320_v2, 16  ;;  %v1270_v17 = vshll.u32 %v1197_v57, 16  ;;  %3301 = vmatpush3.bf16.msra.mxu0 %v3408_v27  ;;  %v1555_v42 = vshll.u32 %v1458_v16, 16  ;;  %v761_v55 = vrot.slane %v4466_v35, 4  ;;  %3320 = vmatprep.subr.bf16.mxu1 %v3409_v26  ;;  %v4327_v46 = vld [vmem:[#allocation2 + $0xf4] sm:$0xf] }
  0xca   : > { %v777_v33 = vrot.slane %v4467_v24, 4  ;;  %v784_v0 = vor.u32 %v782_v4, %v781_v10  ;;  %v785_v9 = vrot.slane %v781_v10, 4  ;;  %v914_v61 = vld [vmem:[#allocation2 + $0x110] sm:$0xff]  ;;  %3302 = vmatprep.subr.bf16.mxu0 %v3409_v26  ;;  %v1552_v27 = vor.u32 %v1551_v28, %v1548_v1  ;;  %v1200_v15 = vld [vmem:[#allocation2 + $0xe0] sm:$0xf] }
  0xcb   : > { %v1392_v30 = vrot.slane %v1390_v52, 5  ;;  %v1272_v31 = vrot.slane %v1270_v17, 5  ;;  %v1321_v48 = vld [vmem:[#allocation2 + $0xcc] sm:$0x1]  ;;  %v1199_v32 = vld [vmem:[#allocation2 + $0xc8] sm:$0x1]  ;;  %v1658_v34 = vor.u32 %v4318_v14, %v4316_v45 }
  0xcc   : > { %v917_v50 = vld [vmem:[#allocation2 + $0x118] sm:$0x11]  ;;  %v1404_v56 = vshll.u32 %v1321_v48, 16  ;;  %v1282_v49 = vrot.slane %v1281_v36, 4  ;;  %v1284_v23 = vshll.u32 %v1199_v32, 16  ;;  %3328 = vmatpush3.bf16.msra.mxu1 %v3409_v26  ;;  %v915_v12 = vsel %vm3667_vm3, %v784_v0, %v914_v61 }
  0xcd   : > { %v1393_v51 = vsel %vm3687_vm4, %v4275_v18, %v1392_v30  ;;  %v1273_v13 = vsel %vm3687_vm4, %v1268_v20, %v1272_v31  ;;  %v918_v43 = vsel %vm3589_vm8, %v785_v9, %v917_v50  ;;  %v4344_v21 = vrot.slane %v1555_v42, 5  ;;  %v899_v53 = vld [vmem:[#allocation2 + $0xe8] sm:$0x11]  ;;  %3303 = vmatpush3.bf16.msra.mxu0 %v3409_v26  ;;  %3321 = vmatprep.subr.bf16.mxu1 %v3410_v41  ;;  %v1202_v45 = vld [vmem:[#allocation2 + $0x100] sm:$0xf] }
  0xce   : > { %v911_v44 = vld [vmem:[#allocation2 + $0x108] sm:$0x11]  ;;  %v1406_v18 = vrot.slane %v1404_v56, 5  ;;  %v1286_v47 = vrot.slane %v1284_v23, 5  ;;  %916 = vst [vmem:[#allocation2 + $0x110] sm:$0xff] %v915_v12  ;;  %v900_v7 = vsel %vm3589_vm8, %v761_v55, %v899_v53  ;;  %3304 = vmatprep.subr.bf16.mxu0 %v3410_v41  ;;  %v4350_v59 = vrot.slane %v1552_v27, 4 }
  0xcf   : > { %919 = vst [vmem:[#allocation2 + $0x118] sm:$0x11] %v918_v43  ;;  %v912_v11 = vsel %vm3589_vm8, %v777_v33, %v911_v44  ;;  %901 = vst [vmem:[#allocation2 + $0xe8] sm:$0x11] %v900_v7  ;;  %v4352_v39 = vrot.slane %v1415_v25, 4  ;;  %v1666_v38 = vshrl.u32 %v4327_v46, 16 }
  0xd0   : > { %913 = vst [vmem:[#allocation2 + $0x108] sm:$0x11] %v912_v11  ;;  %v1669_v26 = vshll.u32 %v4327_v46, 16  ;;  %v1407_v14 = vsel %vm3687_vm4, %v4287_v29, %v1406_v18  ;;  %v1287_v58 = vsel %vm3687_vm4, %v1282_v49, %v1286_v47  ;;  %v1289_v40 = vshrl.u32 %v1200_v15, 16  ;;  %3329 = vmatpush3.bf16.msra.mxu1 %v3410_v41  ;;  %v1577_v16 = vld [vmem:[#allocation2 + $0xbc] sm:$0x1] }
  0xd1   : > { %v1292_v4 = vshll.u32 %v1200_v15, 16  ;;  %v2973_v2 = vcombine.low %v1393_v51, %v1407_v14  ;;  %v2969_v57 = vcombine.low %v1273_v13, %v1287_v58  ;;  %v1668_v1 = vrot.slane %v1666_v38, 4  ;;  %3305 = vmatpush3.bf16.msra.mxu0 %v3410_v41  ;;  %v1578_v25 = vld [vmem:[#allocation2 + $0xdc] sm:$0x1] }
  0xd2   : > { %v1671_v28 = vrot.slane %v1669_v26, 5  ;;  %v1291_v52 = vrot.slane %v1289_v40, 4  ;;  %v1303_v36 = vshrl.u32 %v1202_v45, 16  ;;  %v1306_v10 = vshll.u32 %v1202_v45, 16 }
  0xd3   : > { %v1294_v17 = vrot.slane %v1292_v4, 5  ;;  %2615 = vmatprep.mubr.bf16.mxu0 %v2973_v2  ;;  %v1430_v20 = vrot.slane %v1429_v6, 4  ;;  %v4361_v42 = vrot.slane %v1644_v37, 4  ;;  %v1647_v35 = vshll.u32 %v1577_v16, 16  ;;  %v1573_v4 = vld [vmem:[#allocation2 + $0x3c] sm:$0x1] }
  0xd4   : > { %v1672_v29 = vor.u32 %v1671_v28, %v1668_v1  ;;  %2616 = vmatmul.mubr.bf16.gmra.mrb[24].mxu0 %v2969_v57  ;;  %v1305_v55 = vrot.slane %v1303_v36, 4  ;;  %v1308_v24 = vrot.slane %v1306_v10, 5  ;;  %v4363_v33 = vrot.slane %v1658_v34, 4 }
  0xd5   : > { %v1661_v30 = vshll.u32 %v1578_v25, 16  ;;  %v1630_v41 = vor.u32 %v4231_v8, %v4228_v54  ;;  %v1459_v31 = vld [vmem:[#allocation2 + $0x110] sm:$0xf]  ;;  %v1558_v9 = vsel %vm3687_vm4, %v4350_v59, %v4344_v21  ;;  %v1444_v61 = vld [vmem:[#allocation2 + $0x114] sm:$0xf]  ;;  %v1295_v48 = vor.u32 %v1294_v17, %v1291_v52 }
  0xd6   : > { %v1460_v0 = vld [vmem:[#allocation2 + $0x118] sm:$0x1]  ;;  %v1560_v32 = vshrl.u32 %v1459_v31, 16  ;;  %v1563_v50 = vshll.u32 %v1459_v31, 16  ;;  %v1322_v60 = vld [vmem:[#allocation2 + $0xec] sm:$0x1]  ;;  %v2978_v56 = vcombine.low %v4327_v46, %v1444_v61  ;;  %v1309_v11 = vor.u32 %v1308_v24, %v1305_v55 }
  0xd7   : > { %v1569_v27 = vshll.u32 %v1460_v0, 16  ;;  %v4371_v5 = vrot.slane %v1672_v29, 4  ;;  %v1323_v6 = vld [vmem:[#allocation2 + $0x10c] sm:$0x1]  ;;  %v1418_v37 = vshll.u32 %v1322_v60, 16  ;;  %v1680_v34 = vshrl.u32 %v1444_v61, 16 }
  0xd8   : > { %v1683_v51 = vshll.u32 %v1444_v61, 16  ;;  %v1562_v49 = vrot.slane %v1560_v32, 4  ;;  %v1565_v23 = vrot.slane %v1563_v50, 5  ;;  %v1432_v13 = vshll.u32 %v1323_v6, 16  ;;  %v1201_v62 = vld [vmem:[#allocation2 + $0xe8] sm:$0x1] }
  0xd9   : > { %v1571_v15 = vrot.slane %v1569_v27, 5  ;;  %v1420_v12 = vrot.slane %v1418_v37, 5  ;;  %v1682_v43 = vrot.slane %v1680_v34, 4  ;;  %v1203_v53 = vld [vmem:[#allocation2 + $0x108] sm:$0x1]  ;;  %v1296_v44 = vrot.slane %v1295_v48, 4 }
  0xda   : > { %v1685_v21 = vrot.slane %v1683_v51, 5  ;;  %v1566_v18 = vor.u32 %v1565_v23, %v1562_v49  ;;  %v1434_v47 = vrot.slane %v1432_v13, 5  ;;  %v1298_v7 = vshll.u32 %v1201_v62, 16  ;;  %v1574_v52 = vld [vmem:[#allocation2 + $0x5c] sm:$0x1] }
  0xdb   : > { %v1421_v59 = vsel %vm3687_vm4, %v4352_v39, %v1420_v12  ;;  %v1312_v46 = vshll.u32 %v1203_v53, 16  ;;  %v1649_v26 = vrot.slane %v1647_v35, 5  ;;  %v1310_v40 = vrot.slane %v1309_v11, 4  ;;  %v1579_v35 = vld [vmem:[#allocation2 + $0xfc] sm:$0x1] }
  0xdc   : > { %v1686_v38 = vor.u32 %v1685_v21, %v1682_v43  ;;  %v1567_v45 = vrot.slane %v1566_v18, 4  ;;  %v1435_v14 = vsel %vm3687_vm4, %v1430_v20, %v1434_v47  ;;  %v1300_v58 = vrot.slane %v1298_v7, 5  ;;  %v1575_v0 = vld [vmem:[#allocation2 + $0x7c] sm:$0x1] }
  0xdd   : > { %v2974_v16 = vcombine.low %v1421_v59, %v1435_v14  ;;  %v1314_v57 = vrot.slane %v1312_v46, 5  ;;  %v1650_v1 = vsel %vm3687_vm4, %v4361_v42, %v1649_v26  ;;  %v1663_v25 = vrot.slane %v1661_v30, 5  ;;  %v1580_v42 = vld [vmem:[#allocation2 + $0x11c] sm:$0x1] }
  0xde   : > { %v1687_v2 = vrot.slane %v1686_v38, 4  ;;  %v1572_v39 = vsel %vm3687_vm4, %v1567_v45, %v1571_v15  ;;  %v1301_v28 = vsel %vm3687_vm4, %v1296_v44, %v1300_v58  ;;  %v1582_v17 = vshrl.u32 %v4079_v22, 16  ;;  %v1576_v61 = vld [vmem:[#allocation2 + $0x9c] sm:$0x1] }
  0xdf   : > { %v2982_v36 = vcombine.low %v1558_v9, %v1572_v39  ;;  %2623 = vmatprep.mubr.bf16.mxu0 %v2974_v16  ;;  %v1315_v10 = vsel %vm3687_vm4, %v1310_v40, %v1314_v57  ;;  %v1585_v20 = vshll.u32 %v4079_v22, 16  ;;  %v1591_v29 = vshll.u32 %v1573_v4, 16 }
  0xe0   : > { %v2970_v55 = vcombine.low %v1301_v28, %v1315_v10  ;;  %v1664_v24 = vsel %vm3687_vm4, %v4363_v33, %v1663_v25  ;;  %v1584_v31 = vrot.slane %v1582_v17, 4  ;;  %v1596_v30 = vshrl.u32 %v4081_v3, 16 }
  0xe1   : > { %2688 = vmatprep.mubr.bf16.mxu1 %v2982_v36  ;;  %v2985_v9 = vcombine.low %v1650_v1, %v1664_v24  ;;  %v1587_v48 = vrot.slane %v1585_v20, 5  ;;  %v1593_v32 = vrot.slane %v1591_v29, 5  ;;  %v1599_v50 = vshll.u32 %v4081_v3, 16 }
  0xe2   : > { %2689 = vmatmul.mubr.bf16.gmra.mrb[28].mxu1 %v2978_v56  ;;  %2624 = vmatmul.mubr.bf16.gmra.mrb[28].mxu0 %v2970_v55  ;;  %v1598_v22 = vrot.slane %v1596_v30, 4  ;;  %v1605_v27 = vshll.u32 %v1574_v52, 16  ;;  %v1675_v60 = vshll.u32 %v1579_v35, 16  ;;  %v1689_v6 = vshll.u32 %v1580_v42, 16 }
  0xe3   : > { %3310 = vmatprep.mubr.bf16.mxu1 %v2985_v9  ;;  %v1588_v37 = vor.u32 %v1587_v48, %v1584_v31  ;;  %v1601_v33 = vrot.slane %v1599_v50, 5  ;;  %v1619_v34 = vshll.u32 %v1575_v0, 16  ;;  %v1633_v51 = vshll.u32 %v1576_v61, 16 }
  0xe4   : > { %v1631_v49 = vrot.slane %v1630_v41, 4  ;;  %v1607_v23 = vrot.slane %v1605_v27, 5  ;;  %v1677_v15 = vrot.slane %v1675_v60, 5  ;;  %v1691_v13 = vrot.slane %v1689_v6, 5 }
  0xe5   : > { %v1589_v62 = vrot.slane %v1588_v37, 4  ;;  %v1602_v3 = vor.u32 %v1601_v33, %v1598_v22  ;;  %v1621_v56 = vrot.slane %v1619_v34, 5  ;;  %v1635_v12 = vrot.slane %v1633_v51, 5 }
  0xe6   : > { %v1678_v43 = vsel %vm3687_vm4, %v4371_v5, %v1677_v15  ;;  %v1692_v21 = vsel %vm3687_vm4, %v1687_v2, %v1691_v13 }
  0xe7   : > { %v1594_v53 = vsel %vm3687_vm4, %v1589_v62, %v1593_v32  ;;  %v1603_v44 = vrot.slane %v1602_v3, 4  ;;  %v2986_v54 = vcombine.low %v1678_v43, %v1692_v21  ;;  %v1622_v8 = vsel %vm3687_vm4, %v4260_v63, %v1621_v56 }
  0xe8   : > { %v1636_v41 = vsel %vm3687_vm4, %v1631_v49, %v1635_v12 }
  0xe9   : > { %v1608_v18 = vsel %vm3687_vm4, %v1603_v44, %v1607_v23  ;;  %v2984_v47 = vcombine.low %v1622_v8, %v1636_v41 }
  0xea   : > { %v2983_v5 = vcombine.low %v1594_v53, %v1608_v18  ;;  %3311 = vmatmul.mubr.bf16.vlgmr.msra.gmra.mrb[32].mxu1 %v2986_v54 }
  0xec   : > { %3306 = vmatprep.mubr.bf16.mxu0 %v2983_v5 }
  0xed   : > { %3307 = vmatmul.mubr.bf16.vlgmr.msra.gmra.mrb[32].mxu0 %v2984_v47 }
 0x11c   : > { %v3134_v7 = vpop.f32.mrb[0].mxu0 }
 0x11d   : > { %v3174_v11 = vpop.f32.mrb[0].mxu1  ;;  %v3135_v59 = vpop.f32.mrb[1].mxu0 }
 0x11e   : > { %v3136_v38 = vadd.f32 %v3135_v59, %v3134_v7  ;;  %v3175_v46 = vpop.f32.mrb[1].mxu1  ;;  %v3137_v26 = vpop.f32.mrb[2].mxu0 }
 0x11f   : > { %v3176_v45 = vadd.f32 %v3175_v46, %v3174_v11  ;;  %v3177_v14 = vpop.f32.mrb[2].mxu1  ;;  %v3138_v63 = vpop.f32.mrb[3].mxu0 }
 0x120   : > { %v3139_v58 = vadd.f32 %v3138_v63, %v3137_v26  ;;  %v3178_v40 = vpop.f32.mrb[3].mxu1 }
 0x121   : > { %v2537_v4 = vadd.f32 %v3176_v45, %v3136_v38  ;;  %v3179_v16 = vadd.f32 %v3178_v40, %v3177_v14 }
 0x123   : > { %v2540_v19 = vadd.f32 %v3179_v16, %v3139_v58 }
 0x140   : > { %v3140_v2 = vpop.f32.mrb[4].mxu0 }
 0x141   : > { %v3141_v1 = vpop.f32.mrb[5].mxu0 }
 0x142   : > { %v3180_v57 = vpop.f32.mrb[4].mxu1  ;;  %v3142_v39 = vadd.f32 %v3141_v1, %v3140_v2  ;;  %v3143_v25 = vpop.f32.mrb[6].mxu0 }
 0x143   : > { %v3181_v28 = vpop.f32.mrb[5].mxu1  ;;  %v3144_v36 = vpop.f32.mrb[7].mxu0 }
 0x144   : > { %v3182_v52 = vadd.f32 %v3181_v28, %v3180_v57  ;;  %v3183_v17 = vpop.f32.mrb[6].mxu1  ;;  %v3145_v10 = vadd.f32 %v3144_v36, %v3143_v25 }
 0x145   : > { %v3184_v20 = vpop.f32.mrb[7].mxu1 }
 0x146   : > { %v2545_v29 = vadd.f32 %v3182_v52, %v3142_v39  ;;  %v3185_v35 = vadd.f32 %v3184_v20, %v3183_v17 }
 0x148   : > { %v2548_v42 = vadd.f32 %v3185_v35, %v3145_v10 }
 0x15e   : > { %v3146_v55 = vpop.f32.mrb[8].mxu0 }
 0x15f   : > { %v3147_v24 = vpop.f32.mrb[9].mxu0 }
 0x160   : > { %v3186_v31 = vpop.f32.mrb[8].mxu1  ;;  %v3148_v30 = vadd.f32 %v3147_v24, %v3146_v55  ;;  %v3149_v0 = vpop.f32.mrb[10].mxu0 }
 0x161   : > { %v3187_v61 = vpop.f32.mrb[9].mxu1  ;;  %v3150_v9 = vpop.f32.mrb[11].mxu0 }
 0x162   : > { %v3188_v48 = vadd.f32 %v3187_v61, %v3186_v31  ;;  %v3189_v32 = vpop.f32.mrb[10].mxu1  ;;  %v3151_v50 = vadd.f32 %v3150_v9, %v3149_v0 }
 0x163   : > { %v3190_v22 = vpop.f32.mrb[11].mxu1 }
 0x164   : > { %v2553_v27 = vadd.f32 %v3188_v48, %v3148_v30  ;;  %v3191_v60 = vadd.f32 %v3190_v22, %v3189_v32 }
 0x166   : > { %v2556_v6 = vadd.f32 %v3191_v60, %v3151_v50 }
 0x178   : > { %v3152_v37 = vpop.f32.mrb[12].mxu0 }
 0x179   : > { %v3153_v33 = vpop.f32.mrb[13].mxu0 }
 0x17a   : > { %v3154_v34 = vadd.f32 %v3153_v33, %v3152_v37  ;;  %v3155_v51 = vpop.f32.mrb[14].mxu0 }
 0x17b   : > { %v3192_v49 = vpop.f32.mrb[12].mxu1  ;;  %v3156_v23 = vpop.f32.mrb[15].mxu0 }
 0x17c   : > { %v3193_v15 = vpop.f32.mrb[13].mxu1  ;;  %v3157_v13 = vadd.f32 %v3156_v23, %v3155_v51 }
 0x17d   : > { %v3194_v62 = vadd.f32 %v3193_v15, %v3192_v49  ;;  %v3195_v3 = vpop.f32.mrb[14].mxu1 }
 0x17e   : > { %v3196_v56 = vpop.f32.mrb[15].mxu1 }
 0x17f   : > { %v2561_v12 = vadd.f32 %v3194_v62, %v3154_v34  ;;  %v3197_v43 = vadd.f32 %v3196_v56, %v3195_v3 }
 0x181   : > { %v2564_v21 = vadd.f32 %v3197_v43, %v3157_v13 }
 0x186   : > { %v3254_v53 = vpop.f32.mrb[16].mxu1  ;;  %v3214_v44 = vpop.f32.mrb[16].mxu0 }
 0x187   : > { %v3255_v54 = vpop.f32.mrb[17].mxu1  ;;  %v3215_v8 = vpop.f32.mrb[17].mxu0 }
 0x188   : > { %v3256_v41 = vadd.f32 %v3255_v54, %v3254_v53  ;;  %v3257_v18 = vpop.f32.mrb[18].mxu1  ;;  %v3216_v47 = vadd.f32 %v3215_v8, %v3214_v44  ;;  %v3217_v5 = vpop.f32.mrb[18].mxu0 }
 0x189   : > { %v3258_v7 = vpop.f32.mrb[19].mxu1  ;;  %v3218_v11 = vpop.f32.mrb[19].mxu0 }
 0x18a   : > { %v3259_v59 = vadd.f32 %v3258_v7, %v3257_v18  ;;  %v2602_v38 = vadd.f32 %v3216_v47, %v2537_v4  ;;  %v3219_v46 = vadd.f32 %v3218_v11, %v3217_v5 }
 0x18c   : > { %v2605_v26 = vadd.f32 %v3219_v46, %v2540_v19  ;;  %v4412_v45 = vadd.f32 %v3256_v41, %v2602_v38 }
 0x18e   : > { %v3260_v14 = vpop.f32.mrb[20].mxu1  ;;  %v4414_v58 = vadd.f32 %v3259_v59, %v2605_v26 }
 0x18f   : > { %v3261_v63 = vpop.f32.mrb[21].mxu1 }
 0x190   : > { %v3262_v40 = vadd.f32 %v3261_v63, %v3260_v14  ;;  %v3263_v16 = vpop.f32.mrb[22].mxu1 }
 0x191   : > { %v3264_v2 = vpop.f32.mrb[23].mxu1 }
 0x192   : > { %v3265_v57 = vadd.f32 %v3264_v2, %v3263_v16 }
 0x193   : > { %v3220_v1 = vpop.f32.mrb[20].mxu0 }
 0x194   : > { %v3221_v39 = vpop.f32.mrb[21].mxu0 }
 0x195   : > { %v3222_v28 = vadd.f32 %v3221_v39, %v3220_v1  ;;  %v3223_v25 = vpop.f32.mrb[22].mxu0 }
 0x196   : > { %v3224_v52 = vpop.f32.mrb[23].mxu0  ;;  %v3266_v17 = vpop.f32.mrb[24].mxu1 }
 0x197   : > { %v2610_v36 = vadd.f32 %v3222_v28, %v2545_v29  ;;  %v3225_v4 = vadd.f32 %v3224_v52, %v3223_v25  ;;  %v3267_v10 = vpop.f32.mrb[25].mxu1 }
 0x198   : > { %v3268_v19 = vadd.f32 %v3267_v10, %v3266_v17  ;;  %v3269_v20 = vpop.f32.mrb[26].mxu1 }
 0x199   : > { %v2613_v35 = vadd.f32 %v3225_v4, %v2548_v42  ;;  %v3270_v55 = vpop.f32.mrb[27].mxu1  ;;  %v2675_v24 = vadd.f32 %v3262_v40, %v2610_v36 }
 0x19a   : > { %v3271_v31 = vadd.f32 %v3270_v55, %v3269_v20 }
 0x19b   : > { %v2678_v30 = vadd.f32 %v3265_v57, %v2613_v35 }
 0x1a7   : > { %v3226_v0 = vpop.f32.mrb[24].mxu0 }
 0x1a8   : > { %v3227_v61 = vpop.f32.mrb[25].mxu0 }
 0x1a9   : > { %v3228_v9 = vadd.f32 %v3227_v61, %v3226_v0  ;;  %v3229_v48 = vpop.f32.mrb[26].mxu0 }
 0x1aa   : > { %v3230_v32 = vpop.f32.mrb[27].mxu0 }
 0x1ab   : > { %v2618_v50 = vadd.f32 %v3228_v9, %v2553_v27  ;;  %v3231_v22 = vadd.f32 %v3230_v32, %v3229_v48 }
 0x1ad   : > { %v2621_v60 = vadd.f32 %v3231_v22, %v2556_v6  ;;  %v2683_v37 = vadd.f32 %v3268_v19, %v2618_v50 }
 0x1af   : > { %v2686_v33 = vadd.f32 %v3271_v31, %v2621_v60 }
 0x1b5   : > { %v3232_v29 = vpop.f32.mrb[28].mxu0  ;;  %v3272_v34 = vpop.f32.mrb[28].mxu1 }
 0x1b6   : > { %v3233_v51 = vpop.f32.mrb[29].mxu0  ;;  %v3273_v49 = vpop.f32.mrb[29].mxu1 }
 0x1b7   : > { %v3234_v42 = vadd.f32 %v3233_v51, %v3232_v29  ;;  %v3235_v23 = vpop.f32.mrb[30].mxu0  ;;  %v3274_v15 = vadd.f32 %v3273_v49, %v3272_v34  ;;  %v3275_v13 = vpop.f32.mrb[30].mxu1 }
 0x1b8   : > { %v3236_v62 = vpop.f32.mrb[31].mxu0  ;;  %v3276_v3 = vpop.f32.mrb[31].mxu1 }
 0x1b9   : > { %v2626_v56 = vadd.f32 %v3234_v42, %v2561_v12  ;;  %v3237_v43 = vadd.f32 %v3236_v62, %v3235_v23  ;;  %v3277_v53 = vadd.f32 %v3276_v3, %v3275_v13 }
 0x1bb   : > { %v2629_v44 = vadd.f32 %v3237_v43, %v2564_v21  ;;  %v2691_v27 = vadd.f32 %v3274_v15, %v2626_v56 }
 0x1bd   : > { %v3312_v54 = vpop.f32.mrb[32].mxu1  ;;  %v2694_v6 = vadd.f32 %v3277_v53, %v2629_v44 }
 0x1be   : > { %v2756_v8 = vadd.f32 %v3312_v54, %v2691_v27  ;;  %v2747_v41 = vpop.f32.mrb[33].mxu1 }
 0x1bf   : > { %v2748_v18 = vadd.f32 %v2747_v41, %v2683_v37  ;;  %v3313_v47 = vpop.f32.mrb[34].mxu1 }
 0x1c0   : > { %v3308_v5 = vpop.f32.mrb[32].mxu0  ;;  %v2759_v7 = vadd.f32 %v3313_v47, %v2694_v6  ;;  %v2750_v11 = vpop.f32.mrb[35].mxu1 }
 0x1c1   : > { %v2740_v59 = vadd.f32 %v3308_v5, %v2675_v24  ;;  %v2731_v38 = vpop.f32.mrb[33].mxu0  ;;  %v2751_v12 = vadd.f32 %v2750_v11, %v2686_v33  ;;  %v2819_v10 = vmul.f32 %v2748_v18, %v2748_v18  ;;  %v2821_v24 = vmul.f32 %v2756_v8, %v2756_v8 }
 0x1c2   : > { %v2732_v21 = vadd.f32 %v2731_v38, %v4412_v45  ;;  %v3113_v46 = vpack.c.bf16 %v2759_v7, %v2756_v8  ;;  %v3309_v26 = vpop.f32.mrb[34].mxu0  ;;  %v2822_v0 = vmul.f32 %v2759_v7, %v2759_v7 }
 0x1c3   : > { %v2743_v14 = vadd.f32 %v3309_v26, %v2678_v30  ;;  %v3108_v63 = vpack.c.bf16 %v2751_v12, %v2748_v18  ;;  %v2734_v40 = vpop.f32.mrb[35].mxu0  ;;  %v2817_v25 = vmul.f32 %v2740_v59, %v2740_v59  ;;  %v2820_v35 = vmul.f32 %v2751_v12, %v2751_v12 }
 0x1c4   : > { %3117 = vst [vmem:[%s231_s14 + $0x18] sm:$0xff] %v3113_v46   ;;  %v2735_v16 = vadd.f32 %v2734_v40, %v4414_v58  ;;  %v2815_v57 = vmul.f32 %v2732_v21, %v2732_v21 }
 0x1c5   : > { %v3103_v2 = vpack.c.bf16 %v2743_v14, %v2740_v59  ;;  %3116 = vst [vmem:[%s231_s14 + $0x10] sm:$0xff] %v3108_v63   ;;  %v2818_v45 = vmul.f32 %v2743_v14, %v2743_v14 }
 0x1c6   : > { %v3098_v1 = vpack.c.bf16 %v2735_v16, %v2732_v21  ;;  %v2802_v39 = vadd.f32 %v2735_v16, %v2732_v21  ;;  %v2816_v28 = vmul.f32 %v2735_v16, %v2735_v16 }
 0x1c7   : > { %3115 = vst [vmem:[%s231_s14 + $0x8] sm:$0xff] %v3103_v2  }
 0x1c8   : > { %3099 = vst [vmem:[%s231_s14] sm:$0xff] %v3098_v1   ;;  %v2803_v52 = vadd.f32 %v2802_v39, %v2740_v59  ;;  %v2823_v17 = vadd.f32 %v2816_v28, %v2815_v57 }
 0x1ca   : > { %v2804_v36 = vadd.f32 %v2803_v52, %v2743_v14  ;;  %v2824_v4 = vadd.f32 %v2823_v17, %v2817_v25 }
 0x1cc   : > { %v2805_v19 = vadd.f32 %v2804_v36, %v2748_v18  ;;  %v2825_v20 = vadd.f32 %v2824_v4, %v2818_v45 }
 0x1ce   : > { %v2806_v55 = vadd.f32 %v2805_v19, %v2751_v12  ;;  %v2826_v58 = vadd.f32 %v2825_v20, %v2819_v10 }
 0x1d0   : > { %v2807_v31 = vadd.f32 %v2806_v55, %v2756_v8  ;;  %v2827_v30 = vadd.f32 %v2826_v58, %v2820_v35 }
 0x1d2   : > { %v2808_v61 = vadd.f32 %v2807_v31, %v2759_v7  ;;  %v2828_v9 = vadd.f32 %v2827_v30, %v2821_v24 }
 0x1d4   : > { %v2809_v48 = vrot.slane %v2808_v61, 4  ;;  %v2829_v32 = vadd.f32 %v2828_v9, %v2822_v0 }
 0x1d6   : > { %v2810_v50 = vadd.f32 %v2809_v48, %v2808_v61  ;;  %v2830_v22 = vrot.slane %v2829_v32, 4 }
 0x1d8   : > { %v2811_v60 = vrot.slane %v2810_v50, 2  ;;  %v2831_v37 = vadd.f32 %v2830_v22, %v2829_v32 }
 0x1da   : > { %v2812_v33 = vadd.f32 %v2811_v60, %v2810_v50  ;;  %v2832_v29 = vrot.slane %v2831_v37, 2 }
 0x1dc   : > { %v2813_v34 = vrot.slane %v2812_v33, 1  ;;  %v2833_v51 = vadd.f32 %v2832_v29, %v2831_v37 }
 0x1de   : > { %v2834_v49 = vrot.slane %v2833_v51, 1  ;;  %v2814_v42 = vadd.f32 %v2813_v34, %v2812_v33 }
 0x1e0   : > { %v2835_v23 = vadd.f32 %v2834_v49, %v2833_v51 }
 0x1e2   : > { %v2837_v15 = vsel %vm446_vm0, %v2814_v42, %v2835_v23 }
 0x1e3   : > { %2838 = vst [vmem:[%s235_s21] sm:$0x3] %v2837_v15 }
 0x1e4 PF: > { %s16_s18 = sadd.s32 1, %s3417_s18  }
 0x1e5   : > { %p13_p4 = scmp.ge.s32.totalorder %s16_s18, 4  }
 0x1e7   :  { %15 = sbr.rel (!%p13_p4) target bundleno = 1 (0x1), region = 82 }

</bundles_post_ra>
